<compile_context>
chip_gen: v7x
topology: tpu7x:2x2x1
jax: 0.10.0
libtpu: 0.0.40
codegen_flags: <defaults>
</compile_context>

<pallas_src>
import jax
import jax.numpy as jnp
from jax.experimental import pallas as pl
from jax.experimental.pallas import tpu as pltpu

BN_EPS = 1e-5


# ----------------------------------------------------------------------------
# Pallas kernel: Bt batch elements per grid step, flattened to M = Bt*N rows.
# ----------------------------------------------------------------------------
def skt_kernel(xc_ref,
               wbr_ref, bbr_ref,          # fused branch convs (block-diag), bias
               wc_ref, bc_ref,            # combine conv
               wm1a_ref, wm1b_ref, bm1_ref,
               wm2_ref, bm2_ref,
               wm3_ref, bm3_ref,
               out_ref):
    f32 = jnp.float32
    bf16 = jnp.bfloat16
    Bt, N, Cin = xc_ref.shape
    M = Bt * N

    # ---- fused branch convs:  relu(x_cat @ W_blockdiag + b)  -> fcat = [f1|f3|f5]
    x = xc_ref[...].reshape(M, Cin)                                       # bf16 input
    fcat = jnp.maximum(
        jnp.dot(x, wbr_ref[...], preferred_element_type=f32) + bbr_ref[...], 0.0)  # (M,256)
    fcat_b = fcat.astype(bf16)

    # ---- combine conv, chunked over Cout (256-wide -> one MXU pass on v6e/v7x, two on
    # v5e); per-batch maxes collected, single (Bt,1024)@(1024,512) matmul after the loop.
    CH = 256
    n_chunks = wc_ref.shape[1] // CH                       # 1024 / 256 = 4
    g_chunks = []
    for c in range(n_chunks):          # 4 iters, straight-line (== fori unroll=True);
        cs = c * CH                    # each hc dies right after its max.
        hc = jnp.maximum(
            jnp.dot(fcat_b, wc_ref[:, cs:cs + CH], preferred_element_type=f32)
            + bc_ref[:, cs:cs + CH], 0.0)                  # (M, 256) f32
        g_chunks.append(jnp.max(hc.reshape(Bt, N, CH), axis=1))   # (Bt, 256)
    g = jnp.concatenate(g_chunks, axis=-1).astype(bf16)           # (Bt, 1024)
    gz = jnp.dot(g, wm1b_ref[...], preferred_element_type=f32)    # (Bt, 512)

    # ---- mlp layer 1: f1-part via lane-aligned 128-wide slice of fcat
    #      (wm1a rows 64:128 are zero, so the f3 lanes contribute nothing).
    z1 = jnp.dot(fcat_b[:, :128], wm1a_ref[...], preferred_element_type=f32)   # (M, 512)
    z1 = z1.reshape(Bt, N, -1) + gz[:, None, :] + bm1_ref[...]
    z1 = jnp.maximum(z1, 0.0).reshape(M, -1).astype(bf16)

    # ---- mlp layers 2 / 3
    z2 = jnp.maximum(
        jnp.dot(z1, wm2_ref[...], preferred_element_type=f32) + bm2_ref[...], 0.0)   # (M,256)
    out = jnp.dot(z2.astype(bf16), wm3_ref[...], preferred_element_type=f32) + bm3_ref[...]

    out_ref[...] = out.reshape(Bt, N, -1).astype(out_ref.dtype)   # (Bt, N, 64)


# ----------------------------------------------------------------------------
# Glue: im2col, BN folding, weight fusion/padding, pallas_call wrapper.
# ----------------------------------------------------------------------------
def im2col_1d(x, k):
    """x: (B, N, C) -> (B, N, k*C), zero-padded 'same' windows (tap-major features)."""
    B, N, C = x.shape
    p = (k - 1) // 2
    xp = jnp.pad(x, ((0, 0), (p, p), (0, 0)))
    cols = [xp[:, t:t + N, :] for t in range(k)]
    return jnp.concatenate(cols, axis=-1)


def conv_to_matmul_weight(w):
    """torch Conv1d weight (Cout, Cin, k) -> matmul weight (k*Cin, Cout), tap-major."""
    cout, cin, k = w.shape
    return jnp.transpose(w, (2, 1, 0)).reshape(k * cin, cout)


def fold_bn(w_mm, b, gamma, beta, mean, var, eps=BN_EPS):
    """Fold inference-mode BatchNorm into matmul weight (K, Cout) and bias (1, Cout)."""
    s = gamma / jnp.sqrt(var + eps)
    w_eff = w_mm * s[None, :]
    b_eff = (b - mean) * s + beta
    return w_eff, b_eff[None, :]


def make_params(key):
    def conv(key, cout, cin, k):
        kw, kb = jax.random.split(key)
        w = jax.random.normal(kw, (cout, cin, k), jnp.float32) / jnp.sqrt(cin * k)
        b = 0.1 * jax.random.normal(kb, (cout,), jnp.float32)
        return w, b

    def bn(key, c):
        k1, k2, k3, k4 = jax.random.split(key, 4)
        gamma = jax.random.uniform(k1, (c,), jnp.float32, 0.5, 1.5)
        beta = 0.1 * jax.random.normal(k2, (c,), jnp.float32)
        mean = 0.1 * jax.random.normal(k3, (c,), jnp.float32)
        var = jax.random.uniform(k4, (c,), jnp.float32, 0.5, 1.5)
        return gamma, beta, mean, var

    ks = jax.random.split(key, 12)
    p = {}
    p["conv1"] = conv(ks[0], 64, 2, 1);     p["bn1"] = bn(ks[1], 64)
    p["conv2"] = conv(ks[2], 64, 2, 3);     p["bn2"] = bn(ks[3], 64)
    p["conv3"] = conv(ks[4], 128, 2, 5);    p["bn3"] = bn(ks[5], 128)
    p["convc"] = conv(ks[6], 1024, 256, 1); p["bnc"] = bn(ks[7], 1024)
    p["mlp1"] = conv(ks[8], 512, 1088, 1);  p["bnm1"] = bn(ks[9], 512)
    p["mlp2"] = conv(ks[10], 256, 512, 1);  p["bnm2"] = bn(ks[11], 256)
    p["mlp3"] = conv(jax.random.fold_in(key, 99), 64, 256, 1)   # no BN on last layer
    return p


def prepare_kernel_weights(p):
    w1, b1 = fold_bn(conv_to_matmul_weight(p["conv1"][0]), p["conv1"][1], *p["bn1"])   # (2,64)
    w3, b3 = fold_bn(conv_to_matmul_weight(p["conv2"][0]), p["conv2"][1], *p["bn2"])   # (6,64)
    w5, b5 = fold_bn(conv_to_matmul_weight(p["conv3"][0]), p["conv3"][1], *p["bn3"])   # (10,128)
    wc, bc = fold_bn(conv_to_matmul_weight(p["convc"][0]), p["convc"][1], *p["bnc"])   # (256,1024)
    wm1, bm1 = fold_bn(conv_to_matmul_weight(p["mlp1"][0]), p["mlp1"][1], *p["bnm1"])  # (1088,512)
    wm2, bm2 = fold_bn(conv_to_matmul_weight(p["mlp2"][0]), p["mlp2"][1], *p["bnm2"])  # (512,256)
    wm3 = conv_to_matmul_weight(p["mlp3"][0])                                          # (256,64)
    bm3 = p["mlp3"][1][None, :]                                                        # (1,64)

    # Fuse the three branch convs into one block-diagonal (18,256) weight:
    # x_cat = [x1|x3|x5] (2+6+10) -> [f1|f3|f5] (64+64+128).
    w_br = jnp.zeros((18, 256), jnp.float32)
    w_br = w_br.at[0:2, 0:64].set(w1)
    w_br = w_br.at[2:8, 64:128].set(w3)
    w_br = w_br.at[8:18, 128:256].set(w5)
    b_br = jnp.concatenate([b1, b3, b5], axis=-1)            # (1,256)

    # mlp layer 1: rows 0:64 consume f1 (= fcat[:, :64]). Pad to K=128 (not 256) so the
    # kernel can feed the lane-aligned fcat[:, :128] slice; rows 64:128 (f3 lanes) are 0.
    wm1a = jnp.zeros((128, 512), jnp.float32).at[0:64, :].set(wm1[:64])
    wm1b = wm1[64:]                                          # (1024, 512) consumes global feat

    bf16 = jnp.bfloat16
    return [w_br.astype(bf16), b_br,
            wc.astype(bf16), bc,
            wm1a.astype(bf16), wm1b.astype(bf16), bm1,
            wm2.astype(bf16), bm2,
            wm3.astype(bf16), bm3]


def _device_caps():
    """(vmem_limit_bytes, target rows per grid step), tuned per TPU generation."""
    try:
        kind = jax.devices()[0].device_kind.lower()
    except Exception:
        kind = ""
    if "v7" in kind:                                   # 64 MiB VMEM / TensorCore
        return 48 * 1024 * 1024, 2048
    if "v5 lite" in kind or "v5e" in kind or "v6" in kind:   # 128 MiB physical
        return 96 * 1024 * 1024, 4096
    return 64 * 1024 * 1024, 4096                      # unknown: stay safe


def _pick_bt(B, N, target_m):
    """Batch elements per grid step: M = Bt*N ~= target_m, Bt divides B, and the grid has
    >= 2 steps whenever B >= 2 (so "parallel" can shard across v7x's two TensorCores)."""
    max_bt = B // 2 if B >= 2 else B
    cap = max(1, min(max_bt, max(1, target_m // max(N, 1))))
    for bt in range(min(B, cap), 0, -1):
        if B % bt == 0:
            return bt
    return 1


@jax.jit
def skt_point_encoder(x, *weights):
    """x: (B, N, 2) float32 -> (B, N, 64) float32."""
    B, N, _ = x.shape
    x3 = im2col_1d(x, 3)                                     # (B, N, 6)
    x5 = im2col_1d(x, 5)                                     # (B, N, 10)
    # bf16 im2col slab: single input DMA, half the bytes, no in-kernel cast.
    x_cat = jnp.concatenate([x, x3, x5], axis=-1).astype(jnp.bfloat16)   # (B, N, 18)

    vmem_limit, target_m = _device_caps()
    Bt = _pick_bt(B, N, target_m)

    def wspec(shape):
        nd = len(shape)
        # Grid-invariant blocks: Pallas skips re-DMA on revisit. pl.Buffered(1) would also
        # drop the dead second buffer (~2 MB; only matters on v7x), but default buffering
        # is kept for lowering portability across jax/libtpu versions.
        return pl.BlockSpec(tuple(shape), lambda b, _nd=nd: (0,) * _nd)

    in_specs = ([pl.BlockSpec((Bt, N, 18), lambda b: (b, 0, 0))]
                + [wspec(w.shape) for w in weights])
    # Emit (B, N, 64) directly: last dim == full array dim -> legal block; the 64-lane
    # masked store hides under MXU time and the wrapper-side slice pass is eliminated.
    out_spec = pl.BlockSpec((Bt, N, 64), lambda b: (b, 0, 0))

    flops = 2 * B * N * (18 * 256 + 256 * 1024 + 128 * 512 + 512 * 256 + 256 * 64) \
            + 2 * B * 1024 * 512
    bytes_accessed = (int(x_cat.size) * 2 + B * N * 64 * 4
                      + sum(int(w.size) * w.dtype.itemsize for w in weights))

    return pl.pallas_call(
        skt_kernel,
        out_shape=jax.ShapeDtypeStruct((B, N, 64), jnp.float32),
        grid_spec=pltpu.PrefetchScalarGridSpec(
            num_scalar_prefetch=0, grid=(B // Bt,),
            in_specs=in_specs, out_specs=out_spec),
        compiler_params=pltpu.CompilerParams(
            dimension_semantics=("parallel",),               # megacore sharding on v7x
            vmem_limit_bytes=vmem_limit),
        cost_estimate=pl.CostEstimate(flops=flops, transcendentals=0,
                                      bytes_accessed=bytes_accessed),
    )(x_cat, *weights)


# ----------------------------------------------------------------------------
# Pure-JAX f32 reference (independent of folding/fusion path) for correctness.
# ----------------------------------------------------------------------------
def ref_forward(x, p, num_points):
    xc = jnp.transpose(x, (0, 2, 1))                         # (B, 2, N)

    def conv1d(x, wb, pad):
        w, b = wb
        y = jax.lax.conv_general_dilated(x, w, (1,), [(pad, pad)],
                                         dimension_numbers=("NCH", "OIH", "NCH"))
        return y + b[None, :, None]

    def bn(x, prm):
        gamma, beta, mean, var = prm
        return ((x - mean[None, :, None]) / jnp.sqrt(var[None, :, None] + BN_EPS)
                * gamma[None, :, None] + beta[None, :, None])

    relu = lambda v: jnp.maximum(v, 0.0)
    f1 = relu(bn(conv1d(xc, p["conv1"], 0), p["bn1"]))
    f3 = relu(bn(conv1d(xc, p["conv2"], 1), p["bn2"]))
    f5 = relu(bn(conv1d(xc, p["conv3"], 2), p["bn3"]))
    f_cat = jnp.concatenate([f1, f3, f5], axis=1)
    f_high = relu(bn(conv1d(f_cat, p["convc"], 0), p["bnc"]))
    g = jnp.max(f_high, axis=2, keepdims=True)
    g = jnp.broadcast_to(g, (g.shape[0], g.shape[1], num_points))
    fused = jnp.concatenate([f1, g], axis=1)
    z1 = relu(bn(conv1d(fused, p["mlp1"], 0), p["bnm1"]))
    z2 = relu(bn(conv1d(z1, p["mlp2"], 0), p["bnm2"]))
    out = conv1d(z2, p["mlp3"], 0)
    return jnp.transpose(out, (0, 2, 1))                     # (B, N, 64)


if __name__ == "__main__":
    key = jax.random.PRNGKey(0)
    B, NUM_POINTS = 2, 128
    kx, kp = jax.random.split(key)
    x = jax.random.normal(kx, (B, NUM_POINTS, 2), jnp.float32)   # (B, num_points, 2)

    params = make_params(kp)
    kernel_weights = prepare_kernel_weights(params)

    out = jax.block_until_ready(skt_point_encoder(x, *kernel_weights))
    ref = jax.block_until_ready(ref_forward(x, params, NUM_POINTS))

    assert out.shape == (B, NUM_POINTS, 64), out.shape
    # bf16 MXU operands (f32 accumulation) -> scale-relative tolerance.
    err = float(jnp.max(jnp.abs(out - ref)))
    scale = float(jnp.max(jnp.abs(ref)))
    assert err <= 3e-2 * scale + 3e-2, (err, scale)

    print("KERNEL_OK")
</pallas_src>

<mosaic_0001>
module attributes {stable_mosaic.version = 11 : i64} {
  func.func @skt_kernel(%arg0: i32, %arg1: memref<1x128x18xbf16, #tpu.memory_space<vmem>>, %arg2: memref<18x256xbf16, #tpu.memory_space<vmem>>, %arg3: memref<1x256xf32, #tpu.memory_space<vmem>>, %arg4: memref<256x1024xbf16, #tpu.memory_space<vmem>>, %arg5: memref<1x1024xf32, #tpu.memory_space<vmem>>, %arg6: memref<128x512xbf16, #tpu.memory_space<vmem>>, %arg7: memref<1024x512xbf16, #tpu.memory_space<vmem>>, %arg8: memref<1x512xf32, #tpu.memory_space<vmem>>, %arg9: memref<512x256xbf16, #tpu.memory_space<vmem>>, %arg10: memref<1x256xf32, #tpu.memory_space<vmem>>, %arg11: memref<256x64xbf16, #tpu.memory_space<vmem>>, %arg12: memref<1x64xf32, #tpu.memory_space<vmem>>, %arg13: memref<1x128x64xf32, #tpu.memory_space<vmem>>) attributes {dimension_semantics = [#tpu.dimension_semantics<parallel>], iteration_bounds = array<i64: 2>, scalar_prefetch = 0 : i64, scratch_operands = 0 : i64, tpu.core_type = #tpu.core_type<tc>, window_params = [{transform_indices = @transform_0, window_bounds = array<i64: 1, 128, 18>}, {pipeline_mode = #tpu.pipeline_mode<synchronous>, transform_indices = @transform_1, window_bounds = array<i64: 18, 256>}, {pipeline_mode = #tpu.pipeline_mode<synchronous>, transform_indices = @transform_2, window_bounds = array<i64: 1, 256>}, {pipeline_mode = #tpu.pipeline_mode<synchronous>, transform_indices = @transform_3, window_bounds = array<i64: 256, 1024>}, {pipeline_mode = #tpu.pipeline_mode<synchronous>, transform_indices = @transform_4, window_bounds = array<i64: 1, 1024>}, {pipeline_mode = #tpu.pipeline_mode<synchronous>, transform_indices = @transform_5, window_bounds = array<i64: 128, 512>}, {pipeline_mode = #tpu.pipeline_mode<synchronous>, transform_indices = @transform_6, window_bounds = array<i64: 1024, 512>}, {pipeline_mode = #tpu.pipeline_mode<synchronous>, transform_indices = @transform_7, window_bounds = array<i64: 1, 512>}, {pipeline_mode = #tpu.pipeline_mode<synchronous>, transform_indices = @transform_8, window_bounds = array<i64: 512, 256>}, {pipeline_mode = #tpu.pipeline_mode<synchronous>, transform_indices = @transform_9, window_bounds = array<i64: 1, 256>}, {pipeline_mode = #tpu.pipeline_mode<synchronous>, transform_indices = @transform_10, window_bounds = array<i64: 256, 64>}, {pipeline_mode = #tpu.pipeline_mode<synchronous>, transform_indices = @transform_11, window_bounds = array<i64: 1, 64>}, {transform_indices = @transform_12, window_bounds = array<i64: 1, 128, 64>}]} {
    %c0 = arith.constant 0 : index
    %c0_0 = arith.constant 0 : index
    %c0_1 = arith.constant 0 : index
    %0 = vector.load %arg1[%c0, %c0_0, %c0_1] : memref<1x128x18xbf16, #tpu.memory_space<vmem>>, vector<1x128x18xbf16>
    %1 = vector.shape_cast %0 : vector<1x128x18xbf16> to vector<128x18xbf16>
    %c0_2 = arith.constant 0 : index
    %c0_3 = arith.constant 0 : index
    %2 = vector.load %arg2[%c0_2, %c0_3] : memref<18x256xbf16, #tpu.memory_space<vmem>>, vector<18x256xbf16>
    %cst = arith.constant dense<0.000000e+00> : vector<128x256xf32>
    %3 = tpu.matmul %1, %2, %cst {dimension_numbers = #tpu.dot_dimension_numbers<[1], [0], [0], [1], [0, 0, 1, 1], [], []>} : vector<128x18xbf16>, vector<18x256xbf16>, vector<128x256xf32> -> vector<128x256xf32>
    %c0_4 = arith.constant 0 : index
    %c0_5 = arith.constant 0 : index
    %4 = vector.load %arg3[%c0_4, %c0_5] : memref<1x256xf32, #tpu.memory_space<vmem>>, vector<1x256xf32>
    %5 = vector.broadcast %4 : vector<1x256xf32> to vector<128x256xf32>
    %6 = arith.addf %3, %5 : vector<128x256xf32>
    %cst_6 = arith.constant 0.000000e+00 : f32
    %7 = vector.broadcast %cst_6 : f32 to vector<128x256xf32>
    %8 = arith.maximumf %6, %7 : vector<128x256xf32>
    %9 = arith.truncf %8 : vector<128x256xf32> to vector<128x256xbf16>
    %c0_7 = arith.constant 0 : index
    %c0_8 = arith.constant 0 : index
    %10 = vector.load %arg4[%c0_7, %c0_8] : memref<256x1024xbf16, #tpu.memory_space<vmem>>, vector<256x256xbf16>
    %cst_9 = arith.constant dense<0.000000e+00> : vector<128x256xf32>
    %11 = tpu.matmul %9, %10, %cst_9 {dimension_numbers = #tpu.dot_dimension_numbers<[1], [0], [0], [1], [0, 0, 1, 1], [], []>} : vector<128x256xbf16>, vector<256x256xbf16>, vector<128x256xf32> -> vector<128x256xf32>
    %c0_10 = arith.constant 0 : index
    %c0_11 = arith.constant 0 : index
    %12 = vector.load %arg5[%c0_10, %c0_11] : memref<1x1024xf32, #tpu.memory_space<vmem>>, vector<1x256xf32>
    %13 = vector.broadcast %12 : vector<1x256xf32> to vector<128x256xf32>
    %14 = arith.addf %11, %13 : vector<128x256xf32>
    %cst_12 = arith.constant 0.000000e+00 : f32
    %15 = vector.broadcast %cst_12 : f32 to vector<128x256xf32>
    %16 = arith.maximumf %14, %15 : vector<128x256xf32>
    %17 = vector.shape_cast %16 : vector<128x256xf32> to vector<1x128x256xf32>
    %cst_13 = arith.constant dense<0xFF800000> : vector<1x256xf32>
    %18 = vector.multi_reduction <maximumf>, %17, %cst_13 [1] : vector<1x128x256xf32> to vector<1x256xf32>
    %c0_14 = arith.constant 0 : index
    %c256 = arith.constant 256 : index
    %19 = vector.load %arg4[%c0_14, %c256] : memref<256x1024xbf16, #tpu.memory_space<vmem>>, vector<256x256xbf16>
    %cst_15 = arith.constant dense<0.000000e+00> : vector<128x256xf32>
    %20 = tpu.matmul %9, %19, %cst_15 {dimension_numbers = #tpu.dot_dimension_numbers<[1], [0], [0], [1], [0, 0, 1, 1], [], []>} : vector<128x256xbf16>, vector<256x256xbf16>, vector<128x256xf32> -> vector<128x256xf32>
    %c0_16 = arith.constant 0 : index
    %c256_17 = arith.constant 256 : index
    %21 = vector.load %arg5[%c0_16, %c256_17] : memref<1x1024xf32, #tpu.memory_space<vmem>>, vector<1x256xf32>
    %22 = vector.broadcast %21 : vector<1x256xf32> to vector<128x256xf32>
    %23 = arith.addf %20, %22 : vector<128x256xf32>
    %cst_18 = arith.constant 0.000000e+00 : f32
    %24 = vector.broadcast %cst_18 : f32 to vector<128x256xf32>
    %25 = arith.maximumf %23, %24 : vector<128x256xf32>
    %26 = vector.shape_cast %25 : vector<128x256xf32> to vector<1x128x256xf32>
    %cst_19 = arith.constant dense<0xFF800000> : vector<1x256xf32>
    %27 = vector.multi_reduction <maximumf>, %26, %cst_19 [1] : vector<1x128x256xf32> to vector<1x256xf32>
    %c0_20 = arith.constant 0 : index
    %c512 = arith.constant 512 : index
    %28 = vector.load %arg4[%c0_20, %c512] : memref<256x1024xbf16, #tpu.memory_space<vmem>>, vector<256x256xbf16>
    %cst_21 = arith.constant dense<0.000000e+00> : vector<128x256xf32>
    %29 = tpu.matmul %9, %28, %cst_21 {dimension_numbers = #tpu.dot_dimension_numbers<[1], [0], [0], [1], [0, 0, 1, 1], [], []>} : vector<128x256xbf16>, vector<256x256xbf16>, vector<128x256xf32> -> vector<128x256xf32>
    %c0_22 = arith.constant 0 : index
    %c512_23 = arith.constant 512 : index
    %30 = vector.load %arg5[%c0_22, %c512_23] : memref<1x1024xf32, #tpu.memory_space<vmem>>, vector<1x256xf32>
    %31 = vector.broadcast %30 : vector<1x256xf32> to vector<128x256xf32>
    %32 = arith.addf %29, %31 : vector<128x256xf32>
    %cst_24 = arith.constant 0.000000e+00 : f32
    %33 = vector.broadcast %cst_24 : f32 to vector<128x256xf32>
    %34 = arith.maximumf %32, %33 : vector<128x256xf32>
    %35 = vector.shape_cast %34 : vector<128x256xf32> to vector<1x128x256xf32>
    %cst_25 = arith.constant dense<0xFF800000> : vector<1x256xf32>
    %36 = vector.multi_reduction <maximumf>, %35, %cst_25 [1] : vector<1x128x256xf32> to vector<1x256xf32>
    %c0_26 = arith.constant 0 : index
    %c768 = arith.constant 768 : index
    %37 = vector.load %arg4[%c0_26, %c768] : memref<256x1024xbf16, #tpu.memory_space<vmem>>, vector<256x256xbf16>
    %cst_27 = arith.constant dense<0.000000e+00> : vector<128x256xf32>
    %38 = tpu.matmul %9, %37, %cst_27 {dimension_numbers = #tpu.dot_dimension_numbers<[1], [0], [0], [1], [0, 0, 1, 1], [], []>} : vector<128x256xbf16>, vector<256x256xbf16>, vector<128x256xf32> -> vector<128x256xf32>
    %c0_28 = arith.constant 0 : index
    %c768_29 = arith.constant 768 : index
    %39 = vector.load %arg5[%c0_28, %c768_29] : memref<1x1024xf32, #tpu.memory_space<vmem>>, vector<1x256xf32>
    %40 = vector.broadcast %39 : vector<1x256xf32> to vector<128x256xf32>
    %41 = arith.addf %38, %40 : vector<128x256xf32>
    %cst_30 = arith.constant 0.000000e+00 : f32
    %42 = vector.broadcast %cst_30 : f32 to vector<128x256xf32>
    %43 = arith.maximumf %41, %42 : vector<128x256xf32>
    %44 = vector.shape_cast %43 : vector<128x256xf32> to vector<1x128x256xf32>
    %cst_31 = arith.constant dense<0xFF800000> : vector<1x256xf32>
    %45 = vector.multi_reduction <maximumf>, %44, %cst_31 [1] : vector<1x128x256xf32> to vector<1x256xf32>
    %46 = tpu.concatenate %18, %27, %36, %45 in 1 : vector<1x256xf32>, vector<1x256xf32>, vector<1x256xf32>, vector<1x256xf32> -> vector<1x1024xf32>
    %47 = arith.truncf %46 : vector<1x1024xf32> to vector<1x1024xbf16>
    %c0_32 = arith.constant 0 : index
    %c0_33 = arith.constant 0 : index
    %48 = vector.load %arg7[%c0_32, %c0_33] : memref<1024x512xbf16, #tpu.memory_space<vmem>>, vector<1024x512xbf16>
    %cst_34 = arith.constant dense<0.000000e+00> : vector<1x512xf32>
    %49 = tpu.matmul %47, %48, %cst_34 {dimension_numbers = #tpu.dot_dimension_numbers<[1], [0], [0], [1], [0, 0, 1, 1], [], []>} : vector<1x1024xbf16>, vector<1024x512xbf16>, vector<1x512xf32> -> vector<1x512xf32>
    %50 = vector.extract_strided_slice %9 {offsets = [0, 0], sizes = [128, 128], strides = [1, 1]} : vector<128x256xbf16> to vector<128x128xbf16>
    %c0_35 = arith.constant 0 : index
    %c0_36 = arith.constant 0 : index
    %51 = vector.load %arg6[%c0_35, %c0_36] : memref<128x512xbf16, #tpu.memory_space<vmem>>, vector<128x512xbf16>
    %cst_37 = arith.constant dense<0.000000e+00> : vector<128x512xf32>
    %52 = tpu.matmul %50, %51, %cst_37 {dimension_numbers = #tpu.dot_dimension_numbers<[1], [0], [0], [1], [0, 0, 1, 1], [], []>} : vector<128x128xbf16>, vector<128x512xbf16>, vector<128x512xf32> -> vector<128x512xf32>
    %53 = vector.shape_cast %52 : vector<128x512xf32> to vector<1x128x512xf32>
    %54 = vector.shape_cast %49 : vector<1x512xf32> to vector<1x1x512xf32>
    %55 = vector.broadcast %54 : vector<1x1x512xf32> to vector<1x128x512xf32>
    %56 = arith.addf %53, %55 : vector<1x128x512xf32>
    %c0_38 = arith.constant 0 : index
    %c0_39 = arith.constant 0 : index
    %57 = vector.load %arg8[%c0_38, %c0_39] : memref<1x512xf32, #tpu.memory_space<vmem>>, vector<1x512xf32>
    %58 = vector.shape_cast %57 : vector<1x512xf32> to vector<1x1x512xf32>
    %59 = vector.broadcast %58 : vector<1x1x512xf32> to vector<1x128x512xf32>
    %60 = arith.addf %56, %59 : vector<1x128x512xf32>
    %cst_40 = arith.constant 0.000000e+00 : f32
    %61 = vector.broadcast %cst_40 : f32 to vector<1x128x512xf32>
    %62 = arith.maximumf %60, %61 : vector<1x128x512xf32>
    %63 = vector.shape_cast %62 : vector<1x128x512xf32> to vector<128x512xf32>
    %64 = arith.truncf %63 : vector<128x512xf32> to vector<128x512xbf16>
    %c0_41 = arith.constant 0 : index
    %c0_42 = arith.constant 0 : index
    %65 = vector.load %arg9[%c0_41, %c0_42] : memref<512x256xbf16, #tpu.memory_space<vmem>>, vector<512x256xbf16>
    %cst_43 = arith.constant dense<0.000000e+00> : vector<128x256xf32>
    %66 = tpu.matmul %64, %65, %cst_43 {dimension_numbers = #tpu.dot_dimension_numbers<[1], [0], [0], [1], [0, 0, 1, 1], [], []>} : vector<128x512xbf16>, vector<512x256xbf16>, vector<128x256xf32> -> vector<128x256xf32>
    %c0_44 = arith.constant 0 : index
    %c0_45 = arith.constant 0 : index
    %67 = vector.load %arg10[%c0_44, %c0_45] : memref<1x256xf32, #tpu.memory_space<vmem>>, vector<1x256xf32>
    %68 = vector.broadcast %67 : vector<1x256xf32> to vector<128x256xf32>
    %69 = arith.addf %66, %68 : vector<128x256xf32>
    %cst_46 = arith.constant 0.000000e+00 : f32
    %70 = vector.broadcast %cst_46 : f32 to vector<128x256xf32>
    %71 = arith.maximumf %69, %70 : vector<128x256xf32>
    %72 = arith.truncf %71 : vector<128x256xf32> to vector<128x256xbf16>
    %c0_47 = arith.constant 0 : index
    %c0_48 = arith.constant 0 : index
    %73 = vector.load %arg11[%c0_47, %c0_48] : memref<256x64xbf16, #tpu.memory_space<vmem>>, vector<256x64xbf16>
    %cst_49 = arith.constant dense<0.000000e+00> : vector<128x64xf32>
    %74 = tpu.matmul %72, %73, %cst_49 {dimension_numbers = #tpu.dot_dimension_numbers<[1], [0], [0], [1], [0, 0, 1, 1], [], []>} : vector<128x256xbf16>, vector<256x64xbf16>, vector<128x64xf32> -> vector<128x64xf32>
    %c0_50 = arith.constant 0 : index
    %c0_51 = arith.constant 0 : index
    %75 = vector.load %arg12[%c0_50, %c0_51] : memref<1x64xf32, #tpu.memory_space<vmem>>, vector<1x64xf32>
    %76 = vector.broadcast %75 : vector<1x64xf32> to vector<128x64xf32>
    %77 = arith.addf %74, %76 : vector<128x64xf32>
    %78 = vector.shape_cast %77 : vector<128x64xf32> to vector<1x128x64xf32>
    %c0_52 = arith.constant 0 : index
    %c0_53 = arith.constant 0 : index
    %c0_54 = arith.constant 0 : index
    %79 = vector.load %arg13[%c0_52, %c0_53, %c0_54] : memref<1x128x64xf32, #tpu.memory_space<vmem>>, vector<1x128x64xf32>
    tpu.vector_store %arg13[%c0_52, %c0_53, %c0_54], %78 {strides = array<i32>} : memref<1x128x64xf32, #tpu.memory_space<vmem>>, vector<1x128x64xf32>,
    return
  }
  func.func @transform_0(%arg0: i32) -> (i32, i32, i32) {
    %c0_i32 = arith.constant 0 : i32
    %c0_i32_0 = arith.constant 0 : i32
    %c0_i32_1 = arith.constant 0 : i32
    return %arg0, %c0_i32, %c0_i32_0 : i32, i32, i32
  }
  func.func @transform_1(%arg0: i32) -> (i32, i32) {
    %c0_i32 = arith.constant 0 : i32
    %c0_i32_0 = arith.constant 0 : i32
    %c0_i32_1 = arith.constant 0 : i32
    return %c0_i32, %c0_i32_0 : i32, i32
  }
  func.func @transform_2(%arg0: i32) -> (i32, i32) {
    %c0_i32 = arith.constant 0 : i32
    %c0_i32_0 = arith.constant 0 : i32
    %c0_i32_1 = arith.constant 0 : i32
    return %c0_i32, %c0_i32_0 : i32, i32
  }
  func.func @transform_3(%arg0: i32) -> (i32, i32) {
    %c0_i32 = arith.constant 0 : i32
    %c0_i32_0 = arith.constant 0 : i32
    %c0_i32_1 = arith.constant 0 : i32
    return %c0_i32, %c0_i32_0 : i32, i32
  }
  func.func @transform_4(%arg0: i32) -> (i32, i32) {
    %c0_i32 = arith.constant 0 : i32
    %c0_i32_0 = arith.constant 0 : i32
    %c0_i32_1 = arith.constant 0 : i32
    return %c0_i32, %c0_i32_0 : i32, i32
  }
  func.func @transform_5(%arg0: i32) -> (i32, i32) {
    %c0_i32 = arith.constant 0 : i32
    %c0_i32_0 = arith.constant 0 : i32
    %c0_i32_1 = arith.constant 0 : i32
    return %c0_i32, %c0_i32_0 : i32, i32
  }
  func.func @transform_6(%arg0: i32) -> (i32, i32) {
    %c0_i32 = arith.constant 0 : i32
    %c0_i32_0 = arith.constant 0 : i32
    %c0_i32_1 = arith.constant 0 : i32
    return %c0_i32, %c0_i32_0 : i32, i32
  }
  func.func @transform_7(%arg0: i32) -> (i32, i32) {
    %c0_i32 = arith.constant 0 : i32
    %c0_i32_0 = arith.constant 0 : i32
    %c0_i32_1 = arith.constant 0 : i32
    return %c0_i32, %c0_i32_0 : i32, i32
  }
  func.func @transform_8(%arg0: i32) -> (i32, i32) {
    %c0_i32 = arith.constant 0 : i32
    %c0_i32_0 = arith.constant 0 : i32
    %c0_i32_1 = arith.constant 0 : i32
    return %c0_i32, %c0_i32_0 : i32, i32
  }
  func.func @transform_9(%arg0: i32) -> (i32, i32) {
    %c0_i32 = arith.constant 0 : i32
    %c0_i32_0 = arith.constant 0 : i32
    %c0_i32_1 = arith.constant 0 : i32
    return %c0_i32, %c0_i32_0 : i32, i32
  }
  func.func @transform_10(%arg0: i32) -> (i32, i32) {
    %c0_i32 = arith.constant 0 : i32
    %c0_i32_0 = arith.constant 0 : i32
    %c0_i32_1 = arith.constant 0 : i32
    return %c0_i32, %c0_i32_0 : i32, i32
  }
  func.func @transform_11(%arg0: i32) -> (i32, i32) {
    %c0_i32 = arith.constant 0 : i32
    %c0_i32_0 = arith.constant 0 : i32
    %c0_i32_1 = arith.constant 0 : i32
    return %c0_i32, %c0_i32_0 : i32, i32
  }
  func.func @transform_12(%arg0: i32) -> (i32, i32, i32) {
    %c0_i32 = arith.constant 0 : i32
    %c0_i32_0 = arith.constant 0 : i32
    %c0_i32_1 = arith.constant 0 : i32
    return %arg0, %c0_i32, %c0_i32_0 : i32, i32, i32
  }
}

</mosaic_0001>

<bundles_post_ra>
// kernel: skt_point_encoder.1
= control target key start
LH: loop header
LB: loop body
LE: loop exit
PB: predicated region body
PF: predicated region fallthrough
CT: control target
= control target key end

     0   :  { %s9124_s0 = inlined_call_operand.hbm [shape: bf16[2,128,18], index: 0, kind: input, shape index: {}]   ;;  %s9125_s1 = inlined_call_operand.hbm [shape: bf16[18,256], index: 1, kind: input, shape index: {}]   ;;  %s9126_s2 = inlined_call_operand.hbm [shape: f32[1,256], index: 2, kind: input, shape index: {}]   ;;  %s9127_s3 = inlined_call_operand.hbm [shape: bf16[256,1024], index: 3, kind: input, shape index: {}]   ;;  %s9128_s4 = inlined_call_operand.hbm [shape: f32[1,1024], index: 4, kind: input, shape index: {}]   ;;  %s9129_s5 = inlined_call_operand.hbm [shape: bf16[128,512], index: 5, kind: input, shape index: {}]   ;;  %s9130_s6 = inlined_call_operand.hbm [shape: bf16[1024,512], index: 6, kind: input, shape index: {}]   ;;  %s9131_s7 = inlined_call_operand.hbm [shape: f32[1,512], index: 7, kind: input, shape index: {}]   ;;  %s9132_s8 = inlined_call_operand.hbm [shape: bf16[512,256], index: 8, kind: input, shape index: {}]   ;;  %s9133_s9 = inlined_call_operand.hbm [shape: f32[1,256], index: 9, kind: input, shape index: {}]   ;;  %s9134_s10 = inlined_call_operand.hbm [shape: bf16[256,64], index: 10, kind: input, shape index: {}]   ;;  %s9135_s11 = inlined_call_operand.hbm [shape: f32[1,64], index: 11, kind: input, shape index: {}]   ;;  %s9136_s12 = inlined_call_operand.hbm [shape: f32[2,128,64], index: 12, kind: output, shape index: {}]  }
   0x1   :  { %9149 = sst [smem:[#allocation33_spill]] %s9124_s0 }
   0x2   :  { %9150 = sst [smem:[#allocation34_spill]] %s9125_s1 }
   0x3   :  { %9151 = sst [smem:[#allocation35_spill]] %s9127_s3 }
   0x4   :  { %9152 = sst [smem:[#allocation36_spill]] %s9136_s12 }
   0x5   :  { %17 = vsyncpa [#allocation3], 0 }
   0x6   :  { %19 = vsyncpa [#allocation3 + $0x1], 0 }
   0x7   :  { %20 = vsyncpa [#allocation6], 0 }
   0x8   :  { %21 = vsyncpa [#allocation9], 0 }
   0x9   :  { %22 = vsyncpa [#allocation12], 0 }
   0xa   :  { %23 = vsyncpa [#allocation15], 0 }
   0xb   :  { %24 = vsyncpa [#allocation18], 0 }
   0xc   :  { %25 = vsyncpa [#allocation21], 0 }
   0xd   :  { %26 = vsyncpa [#allocation4], 0 }
   0xe   :  { %28 = vsyncpa [#allocation4 + $0x1], 0  ;;  %s8041_s21 = smov 0   ;;  %s8043_s22 = smov 0  }
   0xf   :  { %s8045_s23 = smov 0   ;;  %s8047_s24 = smov 0  }
  0x10 LB: > { %s7952_s25 = smov [#allocation5]   ;;  %s8062_s27 = sadd.s32 4294967295, %s7950_s24   ;;  %s7950_s24 = sphi %s8047_s24, %s9192_s24   ;;  %s7946_s23 = sphi %s8045_s23, %s9191_s23   ;;  %s7942_s22 = sphi %s8043_s22, %s9190_s22   ;;  %s7938_s21 = sphi %s8041_s21, %s9189_s21  }
  0x11   : > { %s334_s26 = sshll.u32 %s7952_s25, 4  ;;  %9153 = sst [smem:[#allocation31_spill]] %s8062_s27  ;;  %s8067_s26 = int_to_ptr.vmem [resolvable:$true] %s334_s26 }
  0x12   : > { %p6090_p0 = scmp.ge.s32.totalorder %s7950_s24, 1  ;;  %p9144_p1 = scmp.eq.s32.totalorder %s8062_s27, 0 }
  0x13   : > { %p322_p2 = scmp.lt.s32.totalorder %s7950_s24, 3  ;;  %s7953_s29 = smov [#allocation8]  }
  0x14   : > { %s358_s30 = sshll.u32 %s7953_s29, 4  ;;  %s7954_s14 = smov [#allocation11]   ;;  %s8082_s30 = int_to_ptr.vmem [resolvable:$true] %s358_s30 }
  0x15   : > { %p8069_p3 = pnand %p6090_p0, %p322_p2  ;;  %s8084_s15 = sshll.u32 %s7954_s14, 4  ;;  %s383_s15 = int_to_ptr.vmem [resolvable:$true] %s8084_s15 }
  0x16   : > { %s9157_s1 = sld [smem:[#allocation34_spill]] }
  0x17   : > { %s9154_s28 = scalar_select %p8069_p3, 1, 0 }
  0x18   : > { %p6845_p5 = pneg %p8069_p3 }
  0x19   : > { %9155 = sst [smem:[#allocation32_spill]] %s9154_s28 }
  0x1a   : > { %p8078_p6 = pnand %p6845_p5, %p9144_p1 }
  0x1c   : > { %s7522_s18 = scalar_lea.hbm %s9157_s1, 384  ;;  %p8094_p8 = pneg %p8078_p6 }
  0x1d   : > { %p7523_p7 = scmp.ne.s32.totalorder %s9157_s1, %s7522_s18  ;;  %p7529_p11 = scmp.lt.u32.totalorder %s7522_s18, %s9157_s1 }
  0x1f   : > { %p7525_p9 = pnand %p8094_p8, %p7523_p7 }
  0x21   : > { %p7526_p10 = pneg %p7525_p9 }
  0x23   : > { %p7531_p12 = pnand %p7529_p11, %p7526_p10 }
  0x25   : > { %7534 = shalt.err (!%p7531_p12)
}
  0x26   : > { %s7535_s16 = scalar_lea.vmem %s8067_s26, 384  ;;  %p7543_p5 = scmp.lt.s32.totalorder %s8067_s26, %s8067_s26 }
  0x27   : > { %p7536_p13 = scmp.ne.s32.totalorder %s8067_s26, %s7535_s16  ;;  %p7544_p4 = scmp.lt.s32.totalorder %s7535_s16, %s7535_s16 }
  0x29   : > { %p7538_p0 = pnand %p7536_p13, %p8094_p8  ;;  %p7545_p7 = por %p7544_p4, %p7543_p5 }
  0x2b   : > { %p7539_p2 = pneg %p7538_p0 }
  0x2d   : > { %p7546_p9 = pnand %p7545_p7, %p7539_p2 }
  0x2f   : > { %7549 = shalt.err (!%p7546_p9)
}
  0x30   : > { %s9143_s17 = smov 128   ;;  %s9146_s18 = smov 8  }
  0x31   : > { %6848 = dma.hbm_to_vmem [thread:$0]  (!%p8078_p6), %s9157_s1, 384, %s8067_s26, [#allocation6], %s9143_s17, %s9143_s17, %s9146_s18  }
  0x32   : > { %s9159_s3 = sld [smem:[#allocation35_spill]] }
  0x38   : > { %s7550_s16 = scalar_lea.hbm %s9159_s3, 16384 }
  0x39   : > { %p7551_p4 = scmp.ne.s32.totalorder %s9159_s3, %s7550_s16  ;;  %p7557_p12 = scmp.lt.u32.totalorder %s7550_s16, %s9159_s3 }
  0x3b   : > { %p7553_p10 = pnand %p7551_p4, %p8094_p8 }
  0x3d   : > { %p7554_p11 = pneg %p7553_p10 }
  0x3f   : > { %p7559_p13 = pnand %p7557_p12, %p7554_p11 }
  0x41   : > { %7562 = shalt.err (!%p7559_p13)
}
  0x42   : > { %s7563_s26 = scalar_lea.vmem %s8082_s30, 16384  ;;  %p7571_p7 = scmp.lt.s32.totalorder %s8082_s30, %s8082_s30 }
  0x43   : > { %p7564_p0 = scmp.ne.s32.totalorder %s8082_s30, %s7563_s26  ;;  %p7572_p9 = scmp.lt.s32.totalorder %s7563_s26, %s7563_s26 }
  0x45   : > { %p7566_p2 = pnand %p7564_p0, %p8094_p8  ;;  %p7573_p4 = por %p7572_p9, %p7571_p7 }
  0x47   : > { %p7567_p5 = pneg %p7566_p2 }
  0x49   : > { %p7574_p10 = pnand %p7573_p4, %p7567_p5 }
  0x4b   : > { %7577 = shalt.err (!%p7574_p10)
}
  0x4c   : > { %s7957_s12 = smov 512   ;;  %s7958_s0 = smov 32  }
  0x4d   : > { %6854 = dma.hbm_to_vmem [thread:$0]  (!%p8078_p6), %s9159_s3, 16384, %s8082_s30, [#allocation9], %s7957_s12, %s7957_s12, %s7958_s0  }
  0x4e   : > { %s7578_s29 = scalar_lea.hbm %s9129_s5, 4096 }
  0x4f   : > { %p7579_p11 = scmp.ne.s32.totalorder %s9129_s5, %s7578_s29  ;;  %p7585_p0 = scmp.lt.u32.totalorder %s7578_s29, %s9129_s5 }
  0x51   : > { %p7581_p12 = pnand %p7579_p11, %p8094_p8 }
  0x53   : > { %p7582_p13 = pneg %p7581_p12 }
  0x55   : > { %p7587_p2 = pnand %p7585_p0, %p7582_p13 }
  0x57   : > { %7590 = shalt.err (!%p7587_p2)
}
  0x58   : > { %s7591_s27 = scalar_lea.vmem %s383_s15, 4096  ;;  %p7599_p4 = scmp.lt.s32.totalorder %s383_s15, %s383_s15 }
  0x59   : > { %p7592_p5 = scmp.ne.s32.totalorder %s383_s15, %s7591_s27  ;;  %p7600_p10 = scmp.lt.s32.totalorder %s7591_s27, %s7591_s27 }
  0x5b   : > { %p7594_p7 = pnand %p7592_p5, %p8094_p8  ;;  %p7601_p1 = por %p7600_p10, %p7599_p4 }
  0x5d   : > { %p7595_p9 = pneg %p7594_p7 }
  0x5f   : > { %p7602_p3 = pnand %p7601_p1, %p7595_p9 }
  0x61   : > { %7605 = shalt.err (!%p7602_p3)
}
  0x62   : > { %s7959_s30 = smov 256   ;;  %s7960_s12 = smov 16  }
  0x63   : > { %6860 = dma.hbm_to_vmem [thread:$0]  (!%p8078_p6), %s9129_s5, 4096, %s383_s15, [#allocation12], %s7959_s30, %s7959_s30, %s7960_s12  }
  0x64   : > { %s7961_s28 = smov [#allocation14]   ;;  %s7962_s20 = smov [#allocation17]  }
  0x65   : > { %s409_s19 = sshll.u32 %s7961_s28, 4  ;;  %s433_s29 = sshll.u32 %s7962_s20, 4  ;;  %s410_s19 = int_to_ptr.vmem [resolvable:$true] %s409_s19  ;;  %s434_s29 = int_to_ptr.vmem [resolvable:$true] %s433_s29 }
  0x66   : > { %s7606_s26 = scalar_lea.hbm %s9131_s7, 64 }
  0x67   : > { %p7607_p1 = scmp.ne.s32.totalorder %s9131_s7, %s7606_s26  ;;  %p7613_p12 = scmp.lt.u32.totalorder %s7606_s26, %s9131_s7 }
  0x69   : > { %p7609_p3 = pnand %p7607_p1, %p8094_p8 }
  0x6b   : > { %p7610_p11 = pneg %p7609_p3 }
  0x6d   : > { %p7615_p13 = pnand %p7613_p12, %p7610_p11 }
  0x6f   : > { %7618 = shalt.err (!%p7615_p13)
}
  0x70   : > { %s7619_s15 = scalar_lea.vmem %s410_s19, 64  ;;  %p7627_p7 = scmp.lt.s32.totalorder %s410_s19, %s410_s19 }
  0x71   : > { %p7620_p0 = scmp.ne.s32.totalorder %s410_s19, %s7619_s15  ;;  %p7628_p9 = scmp.lt.s32.totalorder %s7619_s15, %s7619_s15 }
  0x73   : > { %p7622_p2 = pnand %p7620_p0, %p8094_p8  ;;  %p7629_p4 = por %p7628_p9, %p7627_p7 }
  0x75   : > { %p7623_p5 = pneg %p7622_p2 }
  0x77   : > { %p7630_p10 = pnand %p7629_p4, %p7623_p5 }
  0x79   : > { %7633 = shalt.err (!%p7630_p10)
}
  0x7a   : > { %6866 = dma.hbm_to_vmem [thread:$0]  (!%p8078_p6), %s9131_s7, 64, %s410_s19, [#allocation15]  }
  0x7b   : > { %s7634_s0 = scalar_lea.hbm %s9133_s9, 32 }
  0x7c   : > { %p7635_p1 = scmp.ne.s32.totalorder %s9133_s9, %s7634_s0  ;;  %p7641_p12 = scmp.lt.u32.totalorder %s7634_s0, %s9133_s9 }
  0x7e   : > { %p7637_p3 = pnand %p7635_p1, %p8094_p8 }
  0x80   : > { %p7638_p11 = pneg %p7637_p3 }
  0x82   : > { %p7643_p13 = pnand %p7641_p12, %p7638_p11 }
  0x84   : > { %7646 = shalt.err (!%p7643_p13)
}
  0x85   : > { %s7647_s26 = scalar_lea.vmem %s434_s29, 32  ;;  %p7655_p7 = scmp.lt.s32.totalorder %s434_s29, %s434_s29 }
  0x86   : > { %p7648_p0 = scmp.ne.s32.totalorder %s434_s29, %s7647_s26  ;;  %p7656_p9 = scmp.lt.s32.totalorder %s7647_s26, %s7647_s26 }
  0x88   : > { %p7650_p2 = pnand %p7648_p0, %p8094_p8  ;;  %p7657_p4 = por %p7656_p9, %p7655_p7 }
  0x8a   : > { %p7651_p5 = pneg %p7650_p2 }
  0x8c   : > { %p7658_p10 = pnand %p7657_p4, %p7651_p5 }
  0x8e   : > { %7661 = shalt.err (!%p7658_p10)
}
  0x8f   : > { %6872 = dma.hbm_to_vmem [thread:$0]  (!%p8078_p6), %s9133_s9, 32, %s434_s29, [#allocation18]  }
  0x90   : > { %s7963_s15 = smov [#allocation7]   ;;  %s7964_s17 = smov [#allocation10]  }
  0x91   : > { %s348_s18 = sshll.u32 %s7963_s15, 4  ;;  %s372_s1 = sshll.u32 %s7964_s17, 4  ;;  %s349_s18 = int_to_ptr.vmem [resolvable:$true] %s348_s18  ;;  %s373_s1 = int_to_ptr.vmem [resolvable:$true] %s372_s1 }
  0x92   : > { %s7662_s28 = scalar_lea.hbm %s9126_s2, 32 }
  0x93   : > { %p7663_p1 = scmp.ne.s32.totalorder %s9126_s2, %s7662_s28  ;;  %p7669_p12 = scmp.lt.u32.totalorder %s7662_s28, %s9126_s2 }
  0x95   : > { %p7665_p3 = pnand %p7663_p1, %p8094_p8 }
  0x97   : > { %p7666_p11 = pneg %p7665_p3 }
  0x99   : > { %p7671_p13 = pnand %p7669_p12, %p7666_p11 }
  0x9b   : > { %7674 = shalt.err (!%p7671_p13)
}
  0x9c   : > { %s7675_s29 = scalar_lea.vmem %s349_s18, 32  ;;  %p7683_p7 = scmp.lt.s32.totalorder %s349_s18, %s349_s18 }
  0x9d   : > { %p7676_p0 = scmp.ne.s32.totalorder %s349_s18, %s7675_s29  ;;  %p7684_p9 = scmp.lt.s32.totalorder %s7675_s29, %s7675_s29 }
  0x9f   : > { %p7678_p2 = pnand %p7676_p0, %p8094_p8  ;;  %p7685_p4 = por %p7684_p9, %p7683_p7 }
  0xa1   : > { %p7679_p5 = pneg %p7678_p2 }
  0xa3   : > { %p7686_p10 = pnand %p7685_p4, %p7679_p5 }
  0xa5   : > { %7689 = shalt.err (!%p7686_p10)
}
  0xa6   : > { %6851 = dma.hbm_to_vmem [thread:$0]  (!%p8078_p6), %s9126_s2, 32, %s349_s18, [#allocation6]  }
  0xa7   : > { %s7690_s3 = scalar_lea.hbm %s9128_s4, 128 }
  0xa8   : > { %p7691_p1 = scmp.ne.s32.totalorder %s9128_s4, %s7690_s3  ;;  %p7697_p12 = scmp.lt.u32.totalorder %s7690_s3, %s9128_s4 }
  0xaa   : > { %p7693_p3 = pnand %p7691_p1, %p8094_p8 }
  0xac   : > { %p7694_p11 = pneg %p7693_p3 }
  0xae   : > { %p7699_p13 = pnand %p7697_p12, %p7694_p11 }
  0xb0   : > { %7702 = shalt.err (!%p7699_p13)
}
  0xb1   : > { %s7703_s16 = scalar_lea.vmem %s373_s1, 128  ;;  %p7711_p7 = scmp.lt.s32.totalorder %s373_s1, %s373_s1 }
  0xb2   : > { %p7704_p0 = scmp.ne.s32.totalorder %s373_s1, %s7703_s16  ;;  %p7712_p9 = scmp.lt.s32.totalorder %s7703_s16, %s7703_s16 }
  0xb4   : > { %p7706_p2 = pnand %p7704_p0, %p8094_p8  ;;  %p7713_p4 = por %p7712_p9, %p7711_p7 }
  0xb6   : > { %p7707_p5 = pneg %p7706_p2 }
  0xb8   : > { %p7714_p10 = pnand %p7713_p4, %p7707_p5 }
  0xba   : > { %7717 = shalt.err (!%p7714_p10)
}
  0xbb   : > { %6857 = dma.hbm_to_vmem [thread:$0]  (!%p8078_p6), %s9128_s4, 128, %s373_s1, [#allocation9]  }
  0xbc   : > { %s7965_s29 = smov [#allocation13]   ;;  %s7966_s27 = smov [#allocation16]  }
  0xbd   : > { %s395_s19 = sshll.u32 %s7965_s29, 4  ;;  %s419_s15 = sshll.u32 %s7966_s27, 4  ;;  %s396_s19 = int_to_ptr.vmem [resolvable:$true] %s395_s19  ;;  %s420_s15 = int_to_ptr.vmem [resolvable:$true] %s419_s15 }
  0xbe   : > { %s7718_s0 = scalar_lea.hbm %s9130_s6, 32768 }
  0xbf   : > { %p7719_p1 = scmp.ne.s32.totalorder %s9130_s6, %s7718_s0  ;;  %p7725_p12 = scmp.lt.u32.totalorder %s7718_s0, %s9130_s6 }
  0xc1   : > { %p7721_p3 = pnand %p7719_p1, %p8094_p8 }
  0xc3   : > { %p7722_p11 = pneg %p7721_p3 }
  0xc5   : > { %p7727_p13 = pnand %p7725_p12, %p7722_p11 }
  0xc7   : > { %7730 = shalt.err (!%p7727_p13)
}
  0xc8   : > { %s7731_s1 = scalar_lea.vmem %s396_s19, 32768  ;;  %p7739_p7 = scmp.lt.s32.totalorder %s396_s19, %s396_s19 }
  0xc9   : > { %p7732_p0 = scmp.ne.s32.totalorder %s396_s19, %s7731_s1  ;;  %p7740_p9 = scmp.lt.s32.totalorder %s7731_s1, %s7731_s1 }
  0xcb   : > { %p7734_p2 = pnand %p7732_p0, %p8094_p8  ;;  %p7741_p4 = por %p7740_p9, %p7739_p7 }
  0xcd   : > { %p7735_p5 = pneg %p7734_p2 }
  0xcf   : > { %p7742_p10 = pnand %p7741_p4, %p7735_p5 }
  0xd1   : > { %7745 = shalt.err (!%p7742_p10)
}
  0xd2   : > { %6863 = dma.hbm_to_vmem [thread:$0]  (!%p8078_p6), %s9130_s6, 32768, %s396_s19, [#allocation12], %s7959_s30, %s7959_s30, %s7960_s12  }
  0xd3   : > { %s7746_s17 = scalar_lea.hbm %s9132_s8, 8192 }
  0xd4   : > { %p7747_p1 = scmp.ne.s32.totalorder %s9132_s8, %s7746_s17  ;;  %p7753_p12 = scmp.lt.u32.totalorder %s7746_s17, %s9132_s8 }
  0xd6   : > { %p7749_p3 = pnand %p7747_p1, %p8094_p8 }
  0xd8   : > { %p7750_p11 = pneg %p7749_p3 }
  0xda   : > { %p7755_p13 = pnand %p7753_p12, %p7750_p11 }
  0xdc   : > { %7758 = shalt.err (!%p7755_p13)
}
  0xdd   : > { %s7759_s14 = scalar_lea.vmem %s420_s15, 8192  ;;  %p7767_p7 = scmp.lt.s32.totalorder %s420_s15, %s420_s15 }
  0xde   : > { %p7760_p0 = scmp.ne.s32.totalorder %s420_s15, %s7759_s14  ;;  %p7768_p9 = scmp.lt.s32.totalorder %s7759_s14, %s7759_s14 }
  0xe0   : > { %p7762_p2 = pnand %p7760_p0, %p8094_p8  ;;  %p7769_p4 = por %p7768_p9, %p7767_p7 }
  0xe2   : > { %p7763_p5 = pneg %p7762_p2 }
  0xe4   : > { %p7770_p10 = pnand %p7769_p4, %p7763_p5 }
  0xe6   : > { %7773 = shalt.err (!%p7770_p10)
}
  0xe7   : > { %s9160_s30 = smov 8   ;;  %s9161_s12 = smov 128  }
  0xe8   : > { %6869 = dma.hbm_to_vmem [thread:$0]  (!%p8078_p6), %s9132_s8, 8192, %s420_s15, [#allocation15], %s9161_s12, %s9161_s12, %s9160_s30  }
  0xe9   : > { %s7967_s1 = smov [#allocation19]   ;;  %s7774_s27 = scalar_lea.hbm %s9134_s10, 2048 }
  0xea   : > { %s443_s18 = sshll.u32 %s7967_s1, 4  ;;  %p7775_p1 = scmp.ne.s32.totalorder %s9134_s10, %s7774_s27  ;;  %s444_s18 = int_to_ptr.vmem [resolvable:$true] %s443_s18 }
  0xeb   : > { %p7781_p12 = scmp.lt.u32.totalorder %s7774_s27, %s9134_s10 }
  0xec   : > { %p7777_p3 = pnand %p7775_p1, %p8094_p8 }
  0xee   : > { %p7778_p11 = pneg %p7777_p3 }
  0xf0   : > { %p7783_p13 = pnand %p7781_p12, %p7778_p11 }
  0xf2   : > { %7786 = shalt.err (!%p7783_p13)
}
  0xf3   : > { %s7787_s15 = scalar_lea.vmem %s444_s18, 2048  ;;  %p7795_p7 = scmp.lt.s32.totalorder %s444_s18, %s444_s18 }
  0xf4   : > { %p7788_p0 = scmp.ne.s32.totalorder %s444_s18, %s7787_s15  ;;  %p7796_p9 = scmp.lt.s32.totalorder %s7787_s15, %s7787_s15 }
  0xf6   : > { %p7790_p2 = pnand %p7788_p0, %p8094_p8  ;;  %p7797_p4 = por %p7796_p9, %p7795_p7 }
  0xf8   : > { %p7791_p5 = pneg %p7790_p2 }
  0xfa   : > { %p7798_p10 = pnand %p7797_p4, %p7791_p5 }
  0xfc   : > { %7801 = shalt.err (!%p7798_p10)
}
  0xfd   : > { %s9147_s20 = smov 64   ;;  %s7969_s14 = smov 4  }
  0xfe   : > { %6875 = dma.hbm_to_vmem [thread:$0]  (!%p8078_p6), %s9134_s10, 2048, %s444_s18, [#allocation18], %s9147_s20, %s9147_s20, %s7969_s14  }
  0xff   : > { %s7970_s19 = smov [#allocation20]   ;;  %s7802_s29 = scalar_lea.hbm %s9135_s11, 16 }
 0x100   : > { %s457_s16 = sshll.u32 %s7970_s19, 4  ;;  %p7803_p1 = scmp.ne.s32.totalorder %s9135_s11, %s7802_s29  ;;  %s458_s16 = int_to_ptr.vmem [resolvable:$true] %s457_s16 }
 0x101   : > { %p7809_p12 = scmp.lt.u32.totalorder %s7802_s29, %s9135_s11 }
 0x102   : > { %p7805_p3 = pnand %p7803_p1, %p8094_p8 }
 0x104   : > { %p7806_p11 = pneg %p7805_p3 }
 0x106   : > { %p7811_p13 = pnand %p7809_p12, %p7806_p11 }
 0x108   : > { %7814 = shalt.err (!%p7811_p13)
}
 0x109   : > { %s7815_s18 = scalar_lea.vmem %s458_s16, 16  ;;  %s7822_s28 = scalar_lea.vmem %s458_s16, 32 }
 0x10a   : > { %p7816_p0 = scmp.ne.s32.totalorder %s458_s16, %s7815_s18  ;;  %p7823_p7 = scmp.lt.s32.totalorder %s458_s16, %s458_s16 }
 0x10b   : > { %p7824_p9 = scmp.lt.s32.totalorder %s7822_s28, %s7815_s18 }
 0x10c   : > { %p7818_p2 = pnand %p7816_p0, %p8094_p8 }
 0x10d   : > { %p7825_p4 = por %p7824_p9, %p7823_p7 }
 0x10e   : > { %p7819_p5 = pneg %p7818_p2 }
 0x110   : > { %p7826_p10 = pnand %p7825_p4, %p7819_p5 }
 0x112   : > { %7829 = shalt.err (!%p7826_p10)
}
 0x113   : > { %s9162_s25 = sld [smem:[#allocation31_spill]]  ;;  %s6089_s12 = sadd.s32 4294967294, %s7950_s24  }
 0x114   : > { %6878 = dma.hbm_to_vmem [thread:$0]  (!%p8078_p6), %s9135_s11, 16, %s458_s16, [#allocation21]  }
 0x115   : > { %s8318_s13 = sadd.s32 1, %s7950_s24   ;;  %s41_s19 = sadd.s32 1, %s7946_s23 }
 0x116   : > { %s38_s1 = ssub.s32 %s7950_s24, %s8318_s13  ;;  %p48_p8 = scmp.ne.s32.totalorder %s7946_s23, %s7942_s22 }
 0x117   : > { %p39_p1 = scmp.eq.s32.totalorder %s38_s1, 0  ;;  %p49_p3 = scmp.eq.s32.totalorder %s7950_s24, 0 }
 0x118   : > { %p54_p11 = scmp.ne.s32.totalorder %s7942_s22, %s7938_s21  ;;  %p315_p5 = scmp.eq.s32.totalorder %s6089_s12, 1 }
 0x119   : > { %p309_p12 = scmp.eq.s32.totalorder %s9162_s25, 1  ;;  %p50_p13 = por %p49_p3, %p48_p8 }
 0x11a   : > { %s8330_s26 = scalar_select %p39_p1, %s7946_s23, %s41_s19  }
 0x11b   : > { %p9163_p0 = scmp.eq.s32.totalorder %s9162_s25, 0  ;;  %p8338_p6 = por %p309_p12, %p48_p8 }
 0x11c   : > { %p6898_p7 = scmp.lt.s32.totalorder %s7950_s24, 2  ;;  %s468_s27 = sand.u32 1, %s7946_s23  }
 0x11d   : > { %p8334_p2 = por %p9163_p0, %p54_p11  ;;  %p8344_p9 = por %p315_p5, %p54_p11 }
 0x11e   : > { %s9165_s16 = scalar_select %p8338_p6, 1, 0 }
 0x11f   : > { %s9166_s17 = scalar_select %p8344_p9, 1, 0 }
 0x120   : > { %s6103_s3 = sshll.u32 %s468_s27, 6  ;;  %s6643_s0 = sshll.u32 %s7950_s24, 10 }
 0x121   : > { %s9167_s15 = sld [smem:[#allocation33_spill]]  ;;  %s472_s25 = scalar_lea.vmem [#allocation2], %s6103_s3 }
 0x122   : > { %s479_s19 = sshll.u32 %s472_s25, 4  ;;  %p8354_p4 = pnand %p6898_p7, %p50_p13  ;;  %s8358_s19 = int_to_ptr.vmem [resolvable:$true] %s479_s19 }
 0x123   : > { %s8360_s1 = scalar_lea.sflag [#allocation3], %s468_s27 }
 0x124   : > { %p7832_p8 = pneg %p8354_p4 }
 0x127   : > { %s8352_s30 = scalar_lea.hbm %s9167_s15, %s6643_s0  ;;  %s7835_s18 = scalar_lea.hbm %s9167_s15, 2048 }
 0x128   : > { %s7830_s20 = scalar_lea.hbm %s8352_s30, 1024  ;;  %p7836_p11 = scmp.lt.u32.totalorder %s8352_s30, %s9167_s15 }
 0x129   : > { %p7831_p10 = scmp.ne.s32.totalorder %s8352_s30, %s7830_s20  ;;  %p7837_p12 = scmp.lt.u32.totalorder %s7835_s18, %s7830_s20 }
 0x12a   : > { %p7839_p0 = scmp.lt.u32.totalorder %s7830_s20, %s8352_s30 }
 0x12b   : > { %p7833_p1 = pnand %p7832_p8, %p7831_p10  ;;  %p7838_p13 = por %p7837_p12, %p7836_p11 }
 0x12d   : > { %p7834_p3 = pneg %p7833_p1  ;;  %p7840_p5 = por %p7839_p0, %p7838_p13 }
 0x12f   : > { %p7841_p7 = pnand %p7840_p5, %p7834_p3 }
 0x131   : > { %7844 = shalt.err (!%p7841_p7)
}
 0x132   : > { %s7845_s27 = scalar_lea.vmem %s8358_s19, 1024  ;;  %s7971_s3 = smov [#allocation2]  }
 0x133   : > { %p7846_p10 = scmp.ne.s32.totalorder %s8358_s19, %s7845_s27  ;;  %s7850_s0 = sshll.u32 %s7971_s3, 4  ;;  %s7851_s0 = int_to_ptr.vmem [resolvable:$false] %s7850_s0 }
 0x134   : > { %s7852_s28 = scalar_lea.vmem %s7851_s0, 2048  ;;  %p7853_p6 = scmp.lt.s32.totalorder %s8358_s19, %s7851_s0 }
 0x135   : > { %p7848_p1 = pnand %p7846_p10, %p7832_p8  ;;  %p7854_p11 = scmp.lt.s32.totalorder %s7852_s28, %s7845_s27 }
 0x137   : > { %p7849_p9 = pneg %p7848_p1  ;;  %p7855_p12 = por %p7854_p11, %p7853_p6 }
 0x139   : > { %p7856_p13 = pnand %p7855_p12, %p7849_p9 }
 0x13b   : > { %7859 = shalt.err (!%p7856_p13)
}
 0x13c   : > { %s9169_s20 = smov 64   ;;  %s9170_s18 = sld [smem:[#allocation32_spill]] }
 0x13d   : > { %6882 = dma.hbm_to_vmem [thread:$0]  (!%p8354_p4), %s8352_s30, 1024, %s8358_s19, %s8360_s1, %s9169_s20, %s9169_s20, %s7969_s14  }
 0x142   : > { %p9171_p8 = scmp.ne.s32.totalorder %s9170_s18, 0 }
 0x143   : > { %s8394_s25 = sand.u32 (!%p9171_p8), 1, %s7942_s22  }
 0x144   : > { %491 = sbr.rel (%p9171_p8) target bundleno = 1910 (0x776), region = 68  ;;  %s6107_s27 = sshll.u32 (!%p9171_p8), %s8394_s25, 6 }
 0x145   : > { %s494_s3 = scalar_lea.sflag (!%p9171_p8), [#allocation3], %s8394_s25  ;;  %s8398_s0 = scalar_lea.vmem (!%p9171_p8), [#allocation2], %s6107_s27 }
 0x14b   : > { %7905 = dma.done.wait (%p8334_p2), %s494_s3, 1024  }
 0x14c   : > { %7907 = vsyncadd (%p8334_p2), %s494_s3, 4294966272  ;;  %s9172_s12 = sld [smem:[#allocation31_spill]] }
 0x152   : > { %p9173_p6 = scmp.eq.s32.totalorder %s9172_s12, 0 }
 0x154   : > { %7909 = dma.done.wait (%p9173_p6), [#allocation6], 416   ;;  %p9174_p9 = pmov %p9173_p6 }
 0x155   : > { %p9175_p4 = pmov %p9173_p6 }
 0x156   : > { %7911 = vsyncadd (%p9174_p9), [#allocation6], 4294966880 }
 0x157   : > { %7913 = dma.done.wait (%p9175_p4), [#allocation9], 16512   ;;  %p9176_p3 = pmov %p9175_p4 }
 0x159   : > { %7915 = vsyncadd (%p9176_p3), [#allocation9], 4294950784  ;;  %p9177_p0 = pmov %p9176_p3 }
 0x15b   : > { %7917 = dma.done.wait (%p9177_p0), [#allocation12], 36864   ;;  %p9178_p5 = pmov %p9177_p0 }
 0x15c   : > { %p9179_p2 = pmov %p9177_p0 }
 0x15d   : > { %7919 = vsyncadd (%p9178_p5), [#allocation12], 4294930432 }
 0x15e   : > { %7921 = dma.done.wait (%p9179_p2), [#allocation15], 8256   ;;  %p9180_p7 = pmov %p9177_p0 }
 0x15f   : > { %p9181_p10 = pmov %p9177_p0 }
 0x160   : > { %7923 = vsyncadd (%p9180_p7), [#allocation15], 4294959040 }
 0x161   : > { %7925 = dma.done.wait (%p9181_p10), [#allocation18], 2080   ;;  %p9182_p1 = pmov %p9177_p0 }
 0x162   : > { %p9183_p11 = pmov %p9177_p0 }
 0x163   : > { %7927 = vsyncadd (%p9182_p1), [#allocation18], 4294965216 }
 0x164   : > { %7929 = dma.done.wait (%p9183_p11), [#allocation21], 16   ;;  %p9184_p12 = pmov %p9177_p0 }
 0x165   : > { %v7972_v0 = vmov 0   ;;  %v6965_v1 = vld [vmem:[#allocation5 + $0x4] ss:$8 sps:$4 sm:$0xff]   ;;  %vm694_vm0 = vcmask 1040384   ;;  %v6967_v2 = vld [vmem:[#allocation5] ss:$8 sps:$4 sm:$0xff]  }
 0x166   : > { %7931 = vsyncadd (%p9184_p12), [#allocation21], 4294967280  ;;  %733 = vmatprep.mubr.bf16.mxu0 %v7972_v0  ;;  %v601_v3 = vld [vmem:[#allocation5 + $0x10] sm:$0x11]  ;;  %701 = vmatprep.subr.bf16.mxu0 %v6965_v1  ;;  %v6970_v7 = vld [vmem:[%s8398_s0] sm:$0xff]   ;;  %vm669_vm1 = vcmask 146432  }
 0x167   : > { %v6131_v4 = vcombine.high %v601_v3, %v601_v3  ;;  %v6130_v5 = vcombine.low %v601_v3, %v601_v3  ;;  %702 = vmatpush1.bf16.msra.mxu0 %v6967_v2  ;;  %v862_v8 = vld [vmem:[#allocation8] sm:$0xff]  ;;  %v1253_v10 = vld [vmem:[#allocation8 + $0x8] sm:$0xff]  ;;  %v6972_v43 = vld [vmem:[%s8398_s0 + $0x10] sm:$0xff]   ;;  %s6119_s14 = sshll.u32 %s8394_s25, 7  ;;  %vm5880_vm2 = vcmask 523264   ;;  %s6644_s30 = sshll.u32 %s9172_s12, 11 }
 0x168   : > { %v863_v9 = vld [vmem:[#allocation8 + $0x20] sm:$0xff]  ;;  %v1254_v11 = vld [vmem:[#allocation8 + $0x28] sm:$0xff]  ;;  %s9024_s29 = scalar_lea.vmem [#allocation22], %s6119_s14  ;;  %s9185_s20 = sld [smem:[#allocation36_spill]] }
 0x169   : > { %6132 = vmatprep.subr.msk.bf16.mxu0 %vm694_vm0, %v6131_v4  ;;  %v696_v6 = vsel %vm694_vm0, %v6130_v5, 0  ;;  %v6142_v12 = vcombine.high %v862_v8, %v863_v9  ;;  %v6173_v13 = vcombine.low %v1253_v10, %v1254_v11  ;;  %v6174_v14 = vcombine.high %v1253_v10, %v1254_v11  ;;  %v864_v16 = vld [vmem:[#allocation8 + $0x40] sm:$0xff]  ;;  %v1255_v18 = vld [vmem:[#allocation8 + $0x48] sm:$0xff]  ;;  %s5911_s19 = sshll.u32 %s9024_s29, 4  ;;  %s5898_s27 = scalar_lea.sflag [#allocation4], %s8394_s25  ;;  %s9075_s19 = int_to_ptr.vmem [resolvable:$true] %s5911_s19 }
 0x16a   : > { %v6141_v15 = vcombine.low %v862_v8, %v863_v9  ;;  %v865_v17 = vld [vmem:[#allocation8 + $0x60] sm:$0xff]  ;;  %v1256_v20 = vld [vmem:[#allocation8 + $0x68] sm:$0xff]  ;;  %s7860_s3 = scalar_lea.vmem %s9075_s19, 2048  ;;  %p9186_p8 = scmp.ne.s32.totalorder %s9165_s16, 0 }
 0x16b   : > { %704 = vmatpush1.bf16.msra.mxu0 %v696_v6  ;;  %v6144_v19 = vcombine.high %v864_v16, %v865_v17  ;;  %v866_v21 = vld [vmem:[#allocation8 + $0x80] sm:$0xff]  ;;  %1066 = vmatprep.subr.bf16.mxu1 %v6142_v12  ;;  %v6176_v22 = vcombine.high %v1255_v18, %v1256_v20  ;;  %v1257_v24 = vld [vmem:[#allocation8 + $0x88] sm:$0xff]  ;;  %v6143_v27 = vcombine.low %v864_v16, %v865_v17  ;;  %p7861_p13 = scmp.ne.s32.totalorder %s9075_s19, %s7860_s3 }
 0x16c   : > { %1457 = vmatprep.subr.bf16.mxu0 %v6174_v14  ;;  %v867_v23 = vld [vmem:[#allocation8 + $0xa0] sm:$0xff]  ;;  %v1258_v25 = vld [vmem:[#allocation8 + $0xa8] sm:$0xff]  ;;  %1067 = vmatpush1.bf16.msra.mxu1 %v6141_v15  ;;  %v6175_v28 = vcombine.low %v1255_v18, %v1256_v20 }
 0x16d   : > { %v6971_v26 = vld [vmem:[%s8398_s0 + $0x8] sm:$0xff]   ;;  %1068 = vmatprep.subr.bf16.mxu1 %v6144_v19  ;;  %v6146_v29 = vcombine.high %v866_v21, %v867_v23  ;;  %v6178_v30 = vcombine.high %v1257_v24, %v1258_v25  ;;  %v868_v31 = vld [vmem:[#allocation8 + $0xc0] sm:$0xff]  ;;  %v6145_v35 = vcombine.low %v866_v21, %v867_v23  ;;  %v6177_v36 = vcombine.low %v1257_v24, %v1258_v25  ;;  %p7862_p6 = pnand %p7861_p13, %p9186_p8 }
 0x16e   : > { %6133 = vmatmul.mubr.msk.bf16.vlgmr.msra.gmra.mrb[0].mxu0 %vm669_vm1, %v6970_v7  ;;  %v869_v32 = vld [vmem:[#allocation8 + $0xe0] sm:$0xff]  ;;  %v1259_v33 = vld [vmem:[#allocation8 + $0xc8] sm:$0xff]  ;;  %s9073_s18 = scalar_lea.hbm %s9185_s20, %s6644_s30 }
 0x16f   : > { %743 = vmatprep.mubr.bf16.mxu0 %v7972_v0  ;;  %1458 = vmatpush1.bf16.msra.mxu0 %v6173_v13  ;;  %v1260_v34 = vld [vmem:[#allocation8 + $0xe8] sm:$0xff]  ;;  %v6148_v37 = vcombine.high %v868_v31, %v869_v32  ;;  %v870_v39 = vld [vmem:[#allocation8 + $0x100] sm:$0xff]  ;;  %v6147_v44 = vcombine.low %v868_v31, %v869_v32  ;;  %p7863_p9 = pneg %p7862_p6 }
 0x170   : > { %1459 = vmatprep.subr.bf16.mxu0 %v6176_v22  ;;  %1069 = vmatpush1.bf16.msra.mxu1 %v6143_v27  ;;  %v6180_v38 = vcombine.high %v1259_v33, %v1260_v34  ;;  %v871_v40 = vld [vmem:[#allocation8 + $0x120] sm:$0xff]  ;;  %v1261_v41 = vld [vmem:[#allocation8 + $0x108] sm:$0xff]  ;;  %v6179_v45 = vcombine.low %v1259_v33, %v1260_v34 }
 0x171   : > { %1070 = vmatprep.subr.bf16.mxu1 %v6146_v29  ;;  %v1262_v42 = vld [vmem:[#allocation8 + $0x128] sm:$0xff]  ;;  %v6150_v46 = vcombine.high %v870_v39, %v871_v40  ;;  %v872_v48 = vld [vmem:[#allocation8 + $0x140] sm:$0xff]  ;;  %v6149_v52 = vcombine.low %v870_v39, %v871_v40 }
 0x172   : > { %v6182_v47 = vcombine.high %v1261_v41, %v1262_v42  ;;  %v873_v49 = vld [vmem:[#allocation8 + $0x160] sm:$0xff]  ;;  %v1263_v50 = vld [vmem:[#allocation8 + $0x148] sm:$0xff]  ;;  %v6181_v53 = vcombine.low %v1261_v41, %v1262_v42 }
 0x173   : > { %1460 = vmatpush1.bf16.msra.mxu0 %v6175_v28  ;;  %v1264_v51 = vld [vmem:[#allocation8 + $0x168] sm:$0xff]  ;;  %v6152_v54 = vcombine.high %v872_v48, %v873_v49  ;;  %v874_v55 = vld [vmem:[#allocation8 + $0x180] sm:$0xff]  ;;  %v6151_v61 = vcombine.low %v872_v48, %v873_v49 }
 0x174   : > { %1461 = vmatprep.subr.bf16.mxu0 %v6178_v30  ;;  %1071 = vmatpush1.bf16.msra.mxu1 %v6145_v35  ;;  %v875_v56 = vld [vmem:[#allocation8 + $0x1a0] sm:$0xff]  ;;  %v6184_v58 = vcombine.high %v1263_v50, %v1264_v51  ;;  %v1265_v59 = vld [vmem:[#allocation8 + $0x188] sm:$0xff]  ;;  %v6183_v1 = vcombine.low %v1263_v50, %v1264_v51 }
 0x175   : > { %1072 = vmatprep.subr.bf16.mxu1 %v6148_v37  ;;  %v6973_v57 = vld [vmem:[%s8398_s0 + $0x18] sm:$0xff]   ;;  %v1266_v60 = vld [vmem:[#allocation8 + $0x1a8] sm:$0xff]  ;;  %v6154_v4 = vcombine.high %v874_v55, %v875_v56  ;;  %v6153_v6 = vcombine.low %v874_v55, %v875_v56 }
 0x176   : > { %6134 = vmatmul.mubr.msk.bf16.gmra.mrb[4].mxu0 %vm669_vm1, %v6971_v26  ;;  %v876_v62 = vld [vmem:[#allocation8 + $0x1c0] sm:$0xff]  ;;  %v1267_v2 = vld [vmem:[#allocation8 + $0x1c8] sm:$0xff]  ;;  %v6186_v5 = vcombine.high %v1265_v59, %v1266_v60  ;;  %v6185_v7 = vcombine.low %v1265_v59, %v1266_v60 }
 0x177   : > { %753 = vmatprep.mubr.bf16.mxu0 %v7972_v0  ;;  %1462 = vmatpush1.bf16.msra.mxu0 %v6177_v36  ;;  %v877_v63 = vld [vmem:[#allocation8 + $0x1e0] sm:$0xff]  ;;  %v1268_v3 = vld [vmem:[#allocation8 + $0x1e8] sm:$0xff] }
 0x178   : > { %1463 = vmatprep.subr.bf16.mxu0 %v6180_v38  ;;  %1073 = vmatpush1.bf16.msra.mxu1 %v6147_v44  ;;  %v6156_v8 = vcombine.high %v876_v62, %v877_v63  ;;  %v878_v9 = vld [vmem:[#allocation8 + $0x200] sm:$0xff]  ;;  %v1269_v11 = vld [vmem:[#allocation8 + $0x208] sm:$0xff]  ;;  %v6188_v14 = vcombine.high %v1267_v2, %v1268_v3  ;;  %v6155_v15 = vcombine.low %v876_v62, %v877_v63 }
 0x179   : > { %1074 = vmatprep.subr.bf16.mxu1 %v6150_v46  ;;  %v879_v10 = vld [vmem:[#allocation8 + $0x220] sm:$0xff]  ;;  %v1270_v12 = vld [vmem:[#allocation8 + $0x228] sm:$0xff]  ;;  %v6187_v18 = vcombine.low %v1267_v2, %v1268_v3 }
 0x17a   : > { %v6974_v13 = vld [vmem:[%s8398_s0 + $0x20] sm:$0xff]   ;;  %v6158_v21 = vcombine.high %v878_v9, %v879_v10  ;;  %v6190_v22 = vcombine.high %v1269_v11, %v1270_v12  ;;  %v6157_v23 = vcombine.low %v878_v9, %v879_v10  ;;  %v6189_v24 = vcombine.low %v1269_v11, %v1270_v12  ;;  %v6975_v30 = vld [vmem:[%s8398_s0 + $0x28] sm:$0xff]   ;;  %v6977_v60 = vld [vmem:[%s8398_s0 + $0x38] sm:$0xff]  }
 0x17b   : > { %1464 = vmatpush1.bf16.msra.mxu0 %v6179_v45  ;;  %v880_v16 = vld [vmem:[#allocation8 + $0x240] sm:$0xff]  ;;  %v1271_v19 = vld [vmem:[#allocation8 + $0x248] sm:$0xff] }
 0x17c   : > { %1465 = vmatprep.subr.bf16.mxu0 %v6182_v47  ;;  %1075 = vmatpush1.bf16.msra.mxu1 %v6149_v52  ;;  %v881_v17 = vld [vmem:[#allocation8 + $0x260] sm:$0xff]  ;;  %v1272_v20 = vld [vmem:[#allocation8 + $0x268] sm:$0xff]  ;;  %v6976_v47 = vld [vmem:[%s8398_s0 + $0x30] sm:$0xff]   ;;  %s7973_s0 = smov [#allocation22]  }
 0x17d   : > { %1076 = vmatprep.subr.bf16.mxu1 %v6152_v54  ;;  %v6160_v25 = vcombine.high %v880_v16, %v881_v17  ;;  %v882_v26 = vld [vmem:[#allocation8 + $0x280] sm:$0xff]  ;;  %v1273_v28 = vld [vmem:[#allocation8 + $0x288] sm:$0xff]  ;;  %v6192_v31 = vcombine.high %v1271_v19, %v1272_v20  ;;  %v6159_v32 = vcombine.low %v880_v16, %v881_v17  ;;  %v6191_v35 = vcombine.low %v1271_v19, %v1272_v20  ;;  %v1644_v17 = vld [vmem:[#allocation8 + $0x10] sm:$0xff]  ;;  %s7864_s12 = sshll.u32 %s7973_s0, 4  ;;  %s7865_s12 = int_to_ptr.vmem [resolvable:$false] %s7864_s12 }
 0x17e   : > { %6135 = vmatmul.mubr.msk.bf16.gmra.mrb[8].mxu0 %vm669_vm1, %v6972_v43  ;;  %v883_v27 = vld [vmem:[#allocation8 + $0x2a0] sm:$0xff]  ;;  %v1274_v29 = vld [vmem:[#allocation8 + $0x2a8] sm:$0xff]  ;;  %v2035_v19 = vld [vmem:[#allocation8 + $0x18] sm:$0xff]  ;;  %s7866_s14 = scalar_lea.vmem %s7865_s12, 4096  ;;  %p7867_p4 = scmp.lt.s32.totalorder %s9075_s19, %s7865_s12 }
 0x17f   : > { %763 = vmatprep.mubr.bf16.mxu0 %v7972_v0  ;;  %1466 = vmatpush1.bf16.msra.mxu0 %v6181_v53  ;;  %v884_v33 = vld [vmem:[#allocation8 + $0x2c0] sm:$0xff]  ;;  %v1275_v36 = vld [vmem:[#allocation8 + $0x2c8] sm:$0xff]  ;;  %v6162_v38 = vcombine.high %v882_v26, %v883_v27  ;;  %v6194_v39 = vcombine.high %v1273_v28, %v1274_v29  ;;  %v6161_v40 = vcombine.low %v882_v26, %v883_v27  ;;  %p7868_p3 = scmp.lt.s32.totalorder %s7866_s14, %s7860_s3 }
 0x180   : > { %1467 = vmatprep.subr.bf16.mxu0 %v6184_v58  ;;  %1077 = vmatpush1.bf16.msra.mxu1 %v6151_v61  ;;  %v885_v34 = vld [vmem:[#allocation8 + $0x2e0] sm:$0xff]  ;;  %v1276_v37 = vld [vmem:[#allocation8 + $0x2e8] sm:$0xff]  ;;  %v6193_v41 = vcombine.low %v1273_v28, %v1274_v29  ;;  %v602_v28 = vld [vmem:[#allocation7] sm:$0x3] }
 0x181   : > { %1078 = vmatprep.subr.bf16.mxu1 %v6154_v4  ;;  %v6164_v42 = vcombine.high %v884_v33, %v885_v34  ;;  %v886_v43 = vld [vmem:[#allocation8 + $0x300] sm:$0xff]  ;;  %v1277_v45 = vld [vmem:[#allocation8 + $0x308] sm:$0xff]  ;;  %v6196_v48 = vcombine.high %v1275_v36, %v1276_v37  ;;  %v6163_v49 = vcombine.low %v884_v33, %v885_v34  ;;  %v6195_v52 = vcombine.low %v1275_v36, %v1276_v37  ;;  %p7869_p0 = por %p7868_p3, %p7867_p4 }
 0x182   : > { %v887_v44 = vld [vmem:[#allocation8 + $0x320] sm:$0xff]  ;;  %v1278_v46 = vld [vmem:[#allocation8 + $0x328] sm:$0xff] }
 0x183   : > { %1468 = vmatpush1.bf16.msra.mxu0 %v6183_v1  ;;  %v888_v50 = vld [vmem:[#allocation8 + $0x340] sm:$0xff]  ;;  %v1279_v53 = vld [vmem:[#allocation8 + $0x348] sm:$0xff]  ;;  %v6166_v55 = vcombine.high %v886_v43, %v887_v44  ;;  %v6198_v56 = vcombine.high %v1277_v45, %v1278_v46  ;;  %v6197_v58 = vcombine.low %v1277_v45, %v1278_v46  ;;  %v1647_v45 = vld [vmem:[#allocation8 + $0x70] sm:$0xff]  ;;  %p7870_p5 = pnand %p7869_p0, %p7863_p9 }
 0x184   : > { %1469 = vmatprep.subr.bf16.mxu0 %v6186_v5  ;;  %1079 = vmatpush1.bf16.msra.mxu1 %v6153_v6  ;;  %v889_v51 = vld [vmem:[#allocation8 + $0x360] sm:$0xff]  ;;  %v1280_v54 = vld [vmem:[#allocation8 + $0x368] sm:$0xff]  ;;  %v2037_v46 = vld [vmem:[#allocation8 + $0x58] sm:$0xff] }
 0x185   : > { %1080 = vmatprep.subr.bf16.mxu1 %v6156_v8  ;;  %v6168_v59 = vcombine.high %v888_v50, %v889_v51  ;;  %v6200_v61 = vcombine.high %v1279_v53, %v1280_v54  ;;  %v6199_v62 = vcombine.low %v1279_v53, %v1280_v54  ;;  %v6167_v63 = vcombine.low %v888_v50, %v889_v51  ;;  %v890_v1 = vld [vmem:[#allocation8 + $0x380] sm:$0xff]  ;;  %v1281_v3 = vld [vmem:[#allocation8 + $0x388] sm:$0xff] }
 0x186   : > { %6136 = vmatmul.mubr.msk.bf16.gmra.mrb[12].mxu0 %vm669_vm1, %v6973_v57  ;;  %v6165_v57 = vcombine.low %v886_v43, %v887_v44  ;;  %v891_v2 = vld [vmem:[#allocation8 + $0x3a0] sm:$0xff]  ;;  %v1282_v5 = vld [vmem:[#allocation8 + $0x3a8] sm:$0xff] }
 0x187   : > { %773 = vmatprep.mubr.bf16.mxu0 %v7972_v0  ;;  %1470 = vmatpush1.bf16.msra.mxu0 %v6185_v7  ;;  %v6170_v4 = vcombine.high %v890_v1, %v891_v2  ;;  %v6201_v6 = vcombine.low %v1281_v3, %v1282_v5  ;;  %v6202_v7 = vcombine.high %v1281_v3, %v1282_v5  ;;  %v892_v9 = vld [vmem:[#allocation8 + $0x3c0] sm:$0xff]  ;;  %v1283_v11 = vld [vmem:[#allocation8 + $0x3c8] sm:$0xff] }
 0x188   : > { %1471 = vmatprep.subr.bf16.mxu0 %v6188_v14  ;;  %1081 = vmatpush1.bf16.msra.mxu1 %v6155_v15  ;;  %v6169_v8 = vcombine.low %v890_v1, %v891_v2  ;;  %v893_v10 = vld [vmem:[#allocation8 + $0x3e0] sm:$0xff] }
 0x189   : > { %1082 = vmatprep.subr.bf16.mxu1 %v6158_v21  ;;  %v6172_v12 = vcombine.high %v892_v9, %v893_v10  ;;  %v6171_v16 = vcombine.low %v892_v9, %v893_v10  ;;  %v2036_v21 = vld [vmem:[#allocation8 + $0x38] sm:$0xff]  ;;  %v1651_v10 = vld [vmem:[#allocation8 + $0xf0] sm:$0xff] }
 0x18b   : > { %1472 = vmatpush1.bf16.msra.mxu0 %v6187_v18  ;;  %v1645_v18 = vld [vmem:[#allocation8 + $0x30] sm:$0xff] }
 0x18c   : > { %1473 = vmatprep.subr.bf16.mxu0 %v6190_v22  ;;  %1083 = vmatpush1.bf16.msra.mxu1 %v6157_v23  ;;  %v6206_v20 = vcombine.high %v1644_v17, %v1645_v18  ;;  %v6205_v22 = vcombine.low %v1644_v17, %v1645_v18  ;;  %v6237_v23 = vcombine.low %v2035_v19, %v2036_v21 }
 0x18d   : > { %1084 = vmatprep.subr.bf16.mxu1 %v6160_v25  ;;  %v604_v25 = vlaneseq }
 0x18e   : > { %6137 = vmatmul.mubr.msk.bf16.gmra.mrb[16].mxu0 %vm669_vm1, %v6974_v13  ;;  %v1284_v13 = vld [vmem:[#allocation8 + $0x3e8] sm:$0xff] }
 0x18f   : > { %783 = vmatprep.mubr.bf16.mxu0 %v7972_v0  ;;  %1474 = vmatpush1.bf16.msra.mxu0 %v6189_v24  ;;  %v6203_v14 = vcombine.low %v1283_v11, %v1284_v13  ;;  %v6204_v15 = vcombine.high %v1283_v11, %v1284_v13  ;;  %v6238_v24 = vcombine.high %v2035_v19, %v2036_v21  ;;  %v8452_v26 = vshrl.u32 %v604_v25, 7  ;;  %v2041_v11 = vld [vmem:[#allocation8 + $0xd8] sm:$0xff]  ;;  %v1653_v25 = vld [vmem:[#allocation8 + $0x130] sm:$0xff] }
 0x190   : > { %1475 = vmatprep.subr.bf16.mxu0 %v6192_v31  ;;  %1085 = vmatpush1.bf16.msra.mxu1 %v6159_v32 }
 0x191   : > { %1086 = vmatprep.subr.bf16.mxu1 %v6162_v38  ;;  %v8455_v27 = vsub.s32 0, %v8452_v26  ;;  %v8458_v29 = vsub.s32 1, %v8452_v26 }
 0x193   : > { %1476 = vmatpush1.bf16.msra.mxu0 %v6191_v35  ;;  %v8464_v31 = vrot.slane %v602_v28, %v8458_v29 }
 0x194   : > { %1477 = vmatprep.subr.bf16.mxu0 %v6194_v39  ;;  %1087 = vmatpush1.bf16.msra.mxu1 %v6161_v40 }
 0x195   : > { %1088 = vmatprep.subr.bf16.mxu1 %v6164_v42  ;;  %v1646_v42 = vld [vmem:[#allocation8 + $0x50] sm:$0xff] }
 0x196   : > { %6138 = vmatmul.mubr.msk.bf16.gmra.mrb[20].mxu0 %vm669_vm1, %v6975_v30  ;;  %v8461_v30 = vrot.slane %v602_v28, %v8455_v27  ;;  %v6208_v53 = vcombine.high %v1646_v42, %v1647_v45  ;;  %v6207_v1 = vcombine.low %v1646_v42, %v1647_v45  ;;  %v2043_v28 = vld [vmem:[#allocation8 + $0x118] sm:$0xff]  ;;  %v1654_v42 = vld [vmem:[#allocation8 + $0x150] sm:$0xff] }
 0x197   : > { %793 = vmatprep.mubr.bf16.mxu0 %v7972_v0  ;;  %1478 = vmatpush1.bf16.msra.mxu0 %v6193_v41  ;;  %v1655_v45 = vld [vmem:[#allocation8 + $0x170] sm:$0xff] }
 0x198   : > { %1479 = vmatprep.subr.bf16.mxu0 %v6196_v48  ;;  %1089 = vmatpush1.bf16.msra.mxu1 %v6163_v49 }
 0x199   : > { %1090 = vmatprep.subr.bf16.mxu1 %v6166_v55  ;;  %v1648_v55 = vld [vmem:[#allocation8 + $0x90] sm:$0xff] }
 0x19b   : > { %1480 = vmatpush1.bf16.msra.mxu0 %v6195_v52 }
 0x19c   : > { %1481 = vmatprep.subr.bf16.mxu0 %v6198_v56  ;;  %1091 = vmatpush1.bf16.msra.mxu1 %v6165_v57 }
 0x19d   : > { %1092 = vmatprep.subr.bf16.mxu1 %v6168_v59  ;;  %v2039_v59 = vld [vmem:[#allocation8 + $0x98] sm:$0xff] }
 0x19e   : > { %6139 = vmatmul.mubr.msk.bf16.gmra.mrb[24].mxu0 %vm669_vm1, %v6976_v47  ;;  %v2038_v47 = vld [vmem:[#allocation8 + $0x78] sm:$0xff] }
 0x19f   : > { %803 = vmatprep.mubr.bf16.mxu0 %v7972_v0  ;;  %1482 = vmatpush1.bf16.msra.mxu0 %v6197_v58  ;;  %v6240_v54 = vcombine.high %v2037_v46, %v2038_v47  ;;  %v1649_v58 = vld [vmem:[#allocation8 + $0xb0] sm:$0xff]  ;;  %v6239_v2 = vcombine.low %v2037_v46, %v2038_v47  ;;  %v2045_v46 = vld [vmem:[#allocation8 + $0x158] sm:$0xff] }
 0x1a0   : > { %1483 = vmatprep.subr.bf16.mxu0 %v6200_v61  ;;  %1093 = vmatpush1.bf16.msra.mxu1 %v6167_v63  ;;  %v6210_v5 = vcombine.high %v1648_v55, %v1649_v58  ;;  %v2046_v47 = vld [vmem:[#allocation8 + $0x178] sm:$0xff] }
 0x1a1   : > { %1094 = vmatprep.subr.bf16.mxu1 %v6170_v4 }
 0x1a3   : > { %1484 = vmatpush1.bf16.msra.mxu0 %v6199_v62 }
 0x1a4   : > { %1485 = vmatprep.subr.bf16.mxu0 %v6202_v7  ;;  %1095 = vmatpush1.bf16.msra.mxu1 %v6169_v8  ;;  %v1650_v7 = vld [vmem:[#allocation8 + $0xd0] sm:$0xff] }
 0x1a5   : > { %1096 = vmatprep.subr.bf16.mxu1 %v6172_v12  ;;  %v2042_v12 = vld [vmem:[#allocation8 + $0xf8] sm:$0xff] }
 0x1a6   : > { %6140 = vmatmul.mubr.msk.bf16.gmra.mrb[28].mxu0 %vm669_vm1, %v6977_v60  ;;  %v2040_v60 = vld [vmem:[#allocation8 + $0xb8] sm:$0xff]  ;;  %v6244_v21 = vcombine.high %v2041_v11, %v2042_v12 }
 0x1a7   : > { %1486 = vmatpush1.bf16.msra.mxu0 %v6201_v6  ;;  %v6242_v6 = vcombine.high %v2039_v59, %v2040_v60  ;;  %v6241_v17 = vcombine.low %v2039_v59, %v2040_v60  ;;  %v1656_v59 = vld [vmem:[#allocation8 + $0x190] sm:$0xff] }
 0x1a8   : > { %1487 = vmatprep.subr.bf16.mxu0 %v6204_v15  ;;  %1097 = vmatpush1.bf16.msra.mxu1 %v6171_v16  ;;  %v6209_v16 = vcombine.low %v1648_v55, %v1649_v58  ;;  %v6248_v58 = vcombine.high %v2045_v46, %v2046_v47 }
 0x1a9   : > { %1848 = vmatprep.subr.bf16.mxu1 %v6206_v20  ;;  %v6212_v20 = vcombine.high %v1650_v7, %v1651_v10 }
 0x1ab   : > { %1488 = vmatpush1.bf16.msra.mxu0 %v6203_v14 }
 0x1ac   : > { %2239 = vmatprep.subr.bf16.mxu0 %v6238_v24 }
 0x241   : > { %v735_v32 = vpop.f32.mrb[0].mxu0 }
 0x242   : > { %v736_v33 = vadd.f32 %v735_v32, %v8461_v30  ;;  %v737_v34 = vpop.f32.mrb[1].mxu0  ;;  %v2044_v32 = vld [vmem:[#allocation8 + $0x138] sm:$0xff] }
 0x243   : > { %v738_v35 = vadd.f32 %v737_v34, %v8464_v31  ;;  %v739_v36 = vpop.f32.mrb[2].mxu0 }
 0x244   : > { %v740_v37 = vadd.f32 %v739_v36, %v8461_v30  ;;  %v741_v38 = vpop.f32.mrb[3].mxu0  ;;  %v814_v40 = vmax.f32 %v736_v33, 0.0  ;;  %v6211_v36 = vcombine.low %v1650_v7, %v1651_v10 }
 0x245   : > { %v742_v39 = vadd.f32 %v741_v38, %v8464_v31  ;;  %v815_v43 = vmax.f32 %v738_v35, 0.0 }
 0x246   : > { %v816_v41 = vmax.f32 %v740_v37, 0.0  ;;  %v6243_v37 = vcombine.low %v2041_v11, %v2042_v12  ;;  %v1658_v11 = vld [vmem:[#allocation8 + $0x1d0] sm:$0xff] }
 0x247   : > { %v817_v44 = vmax.f32 %v742_v39, 0.0 }
 0x248   : > { %v8470_v48 = vpack.c.bf16 %v816_v41, %v814_v40  ;;  %v6246_v41 = vcombine.high %v2043_v28, %v2044_v32 }
 0x249   : > { %v8472_v49 = vpack.c.bf16 %v817_v44, %v815_v43  ;;  %v745_v50 = vpop.f32.mrb[4].mxu0 }
 0x24a   : > { %v746_v51 = vadd.f32 %v745_v50, %v8461_v30  ;;  %v747_v52 = vpop.f32.mrb[5].mxu0 }
 0x24b   : > { %v748_v56 = vadd.f32 %v747_v52, %v8464_v31  ;;  %v749_v57 = vpop.f32.mrb[6].mxu0  ;;  %1098 = vmatprep.mubr.bf16.mxu1 %v8472_v49  ;;  %1489 = vmatprep.mubr.bf16.mxu0 %v8472_v49 }
 0x24c   : > { %v750_v61 = vadd.f32 %v749_v57, %v8461_v30  ;;  %v751_v62 = vpop.f32.mrb[7].mxu0  ;;  %1099 = vmatmul.mubr.bf16.vlgmr.msra.gmra.mrb[0].mxu1 %v8470_v48  ;;  %1490 = vmatmul.mubr.bf16.vlgmr.msra.gmra.mrb[32].mxu0 %v8470_v48  ;;  %v818_v3 = vmax.f32 %v746_v51, 0.0  ;;  %v6216_v57 = vcombine.high %v1654_v42, %v1655_v45 }
 0x24d   : > { %v752_v63 = vadd.f32 %v751_v62, %v8464_v31  ;;  %1849 = vmatpush1.bf16.msra.mxu1 %v6205_v22  ;;  %2240 = vmatpush1.bf16.msra.mxu0 %v6237_v23  ;;  %v819_v8 = vmax.f32 %v748_v56, 0.0  ;;  %v1652_v22 = vld [vmem:[#allocation8 + $0x110] sm:$0xff] }
 0x24e   : > { %v820_v4 = vmax.f32 %v750_v61, 0.0  ;;  %1850 = vmatprep.subr.bf16.mxu1 %v6208_v53  ;;  %2241 = vmatprep.subr.bf16.mxu0 %v6240_v54  ;;  %v6214_v40 = vcombine.high %v1652_v22, %v1653_v25  ;;  %v6213_v53 = vcombine.low %v1652_v22, %v1653_v25  ;;  %v6245_v54 = vcombine.low %v2043_v28, %v2044_v32  ;;  %v1657_v62 = vld [vmem:[#allocation8 + $0x1b0] sm:$0xff] }
 0x24f   : > { %v821_v9 = vmax.f32 %v752_v63, 0.0  ;;  %v2047_v63 = vld [vmem:[#allocation8 + $0x198] sm:$0xff]  ;;  %v6217_v22 = vcombine.low %v1656_v59, %v1657_v62 }
 0x250   : > { %v8482_v13 = vpack.c.bf16 %v820_v4, %v818_v3 }
 0x251   : > { %v8484_v14 = vpack.c.bf16 %v821_v9, %v819_v8  ;;  %v755_v15 = vpop.f32.mrb[8].mxu0  ;;  %1851 = vmatpush1.bf16.msra.mxu1 %v6207_v1  ;;  %2242 = vmatpush1.bf16.msra.mxu0 %v6239_v2  ;;  %v2048_v1 = vld [vmem:[#allocation8 + $0x1b8] sm:$0xff]  ;;  %v6218_v9 = vcombine.high %v1656_v59, %v1657_v62 }
 0x252   : > { %v756_v18 = vadd.f32 %v755_v15, %v8461_v30  ;;  %v757_v19 = vpop.f32.mrb[9].mxu0  ;;  %1852 = vmatprep.subr.bf16.mxu1 %v6210_v5  ;;  %2243 = vmatprep.subr.bf16.mxu0 %v6242_v6  ;;  %v6215_v5 = vcombine.low %v1654_v42, %v1655_v45  ;;  %v6247_v6 = vcombine.low %v2045_v46, %v2046_v47 }
 0x253   : > { %v758_v23 = vadd.f32 %v757_v19, %v8464_v31  ;;  %v759_v24 = vpop.f32.mrb[10].mxu0  ;;  %1108 = vmatprep.mubr.bf16.mxu1 %v8484_v14  ;;  %1499 = vmatprep.mubr.bf16.mxu0 %v8484_v14  ;;  %v6250_v10 = vcombine.high %v2047_v63, %v2048_v1 }
 0x254   : > { %v760_v33 = vadd.f32 %v759_v24, %v8461_v30  ;;  %v761_v34 = vpop.f32.mrb[11].mxu0  ;;  %1109 = vmatmul.mubr.bf16.gmra.mrb[4].mxu1 %v8482_v13  ;;  %1500 = vmatmul.mubr.bf16.gmra.mrb[36].mxu0 %v8482_v13  ;;  %v822_v38 = vmax.f32 %v756_v18, 0.0  ;;  %v2050_v18 = vld [vmem:[#allocation8 + $0x1f8] sm:$0xff] }
 0x255   : > { %v762_v35 = vadd.f32 %v761_v34, %v8464_v31  ;;  %1853 = vmatpush1.bf16.msra.mxu1 %v6209_v16  ;;  %2244 = vmatpush1.bf16.msra.mxu0 %v6241_v17  ;;  %v823_v43 = vmax.f32 %v758_v23, 0.0  ;;  %v1659_v16 = vld [vmem:[#allocation8 + $0x1f0] sm:$0xff]  ;;  %v2049_v17 = vld [vmem:[#allocation8 + $0x1d8] sm:$0xff]  ;;  %v6249_v23 = vcombine.low %v2047_v63, %v2048_v1 }
 0x256   : > { %v824_v39 = vmax.f32 %v760_v33, 0.0  ;;  %1854 = vmatprep.subr.bf16.mxu1 %v6212_v20  ;;  %2245 = vmatprep.subr.bf16.mxu0 %v6244_v21  ;;  %v6220_v28 = vcombine.high %v1658_v11, %v1659_v16  ;;  %v6252_v32 = vcombine.high %v2049_v17, %v2050_v18  ;;  %v1660_v33 = vld [vmem:[#allocation8 + $0x210] sm:$0xff]  ;;  %v6219_v42 = vcombine.low %v1658_v11, %v1659_v16 }
 0x257   : > { %v825_v44 = vmax.f32 %v762_v35, 0.0 }
 0x258   : > { %v8494_v50 = vpack.c.bf16 %v824_v39, %v822_v38  ;;  %v2052_v38 = vld [vmem:[#allocation8 + $0x238] sm:$0xff] }
 0x259   : > { %v8496_v51 = vpack.c.bf16 %v825_v44, %v823_v43  ;;  %v765_v52 = vpop.f32.mrb[12].mxu0  ;;  %1855 = vmatpush1.bf16.msra.mxu1 %v6211_v36  ;;  %2246 = vmatpush1.bf16.msra.mxu0 %v6243_v37  ;;  %v1661_v36 = vld [vmem:[#allocation8 + $0x230] sm:$0xff]  ;;  %v2051_v37 = vld [vmem:[#allocation8 + $0x218] sm:$0xff]  ;;  %v6251_v43 = vcombine.low %v2049_v17, %v2050_v18 }
 0x25a   : > { %v766_v55 = vadd.f32 %v765_v52, %v8461_v30  ;;  %v767_v56 = vpop.f32.mrb[13].mxu0  ;;  %1856 = vmatprep.subr.bf16.mxu1 %v6214_v40  ;;  %2247 = vmatprep.subr.bf16.mxu0 %v6246_v41  ;;  %v6222_v46 = vcombine.high %v1660_v33, %v1661_v36  ;;  %v6254_v47 = vcombine.high %v2051_v37, %v2052_v38  ;;  %v1662_v52 = vld [vmem:[#allocation8 + $0x250] sm:$0xff] }
 0x25b   : > { %v768_v60 = vadd.f32 %v767_v56, %v8464_v31  ;;  %v769_v61 = vpop.f32.mrb[14].mxu0  ;;  %1118 = vmatprep.mubr.bf16.mxu1 %v8496_v51  ;;  %1509 = vmatprep.mubr.bf16.mxu0 %v8496_v51  ;;  %v2053_v56 = vld [vmem:[#allocation8 + $0x258] sm:$0xff]  ;;  %v6253_v62 = vcombine.low %v2051_v37, %v2052_v38 }
 0x25c   : > { %v770_v2 = vadd.f32 %v769_v61, %v8461_v30  ;;  %v771_v3 = vpop.f32.mrb[15].mxu0  ;;  %1119 = vmatmul.mubr.bf16.gmra.mrb[8].mxu1 %v8494_v50  ;;  %1510 = vmatmul.mubr.bf16.gmra.mrb[40].mxu0 %v8494_v50  ;;  %v826_v7 = vmax.f32 %v766_v55, 0.0  ;;  %v1663_v55 = vld [vmem:[#allocation8 + $0x270] sm:$0xff]  ;;  %v6221_v61 = vcombine.low %v1660_v33, %v1661_v36  ;;  %v2058_v33 = vld [vmem:[#allocation8 + $0x2f8] sm:$0xff] }
 0x25d   : > { %v772_v4 = vadd.f32 %v771_v3, %v8464_v31  ;;  %1857 = vmatpush1.bf16.msra.mxu1 %v6213_v53  ;;  %2248 = vmatpush1.bf16.msra.mxu0 %v6245_v54  ;;  %v827_v12 = vmax.f32 %v768_v60, 0.0 }
 0x25e   : > { %v828_v8 = vmax.f32 %v770_v2, 0.0  ;;  %1858 = vmatprep.subr.bf16.mxu1 %v6216_v57  ;;  %2249 = vmatprep.subr.bf16.mxu0 %v6248_v58  ;;  %v2054_v57 = vld [vmem:[#allocation8 + $0x278] sm:$0xff]  ;;  %v6224_v2 = vcombine.high %v1662_v52, %v1663_v55 }
 0x25f   : > { %v829_v15 = vmax.f32 %v772_v4, 0.0  ;;  %v6256_v3 = vcombine.high %v2053_v56, %v2054_v57  ;;  %v1664_v4 = vld [vmem:[#allocation8 + $0x290] sm:$0xff]  ;;  %v6255_v16 = vcombine.low %v2053_v56, %v2054_v57 }
 0x260   : > { %v8506_v19 = vpack.c.bf16 %v828_v8, %v826_v7  ;;  %v1665_v7 = vld [vmem:[#allocation8 + $0x2b0] sm:$0xff]  ;;  %v2055_v8 = vld [vmem:[#allocation8 + $0x298] sm:$0xff] }
 0x261   : > { %v8508_v20 = vpack.c.bf16 %v829_v15, %v827_v12  ;;  %v775_v21 = vpop.f32.mrb[16].mxu0  ;;  %1859 = vmatpush1.bf16.msra.mxu1 %v6215_v5  ;;  %2250 = vmatpush1.bf16.msra.mxu0 %v6247_v6  ;;  %v6223_v15 = vcombine.low %v1662_v52, %v1663_v55  ;;  %v6225_v37 = vcombine.low %v1664_v4, %v1665_v7  ;;  %v2060_v52 = vld [vmem:[#allocation8 + $0x338] sm:$0xff] }
 0x262   : > { %v776_v24 = vadd.f32 %v775_v21, %v8461_v30  ;;  %v777_v25 = vpop.f32.mrb[17].mxu0  ;;  %1860 = vmatprep.subr.bf16.mxu1 %v6218_v9  ;;  %2251 = vmatprep.subr.bf16.mxu0 %v6250_v10  ;;  %v2056_v9 = vld [vmem:[#allocation8 + $0x2b8] sm:$0xff]  ;;  %v6226_v21 = vcombine.high %v1664_v4, %v1665_v7  ;;  %v1671_v4 = vld [vmem:[#allocation8 + $0x370] sm:$0xff] }
 0x263   : > { %v778_v34 = vadd.f32 %v777_v25, %v8464_v31  ;;  %v779_v35 = vpop.f32.mrb[18].mxu0  ;;  %1128 = vmatprep.mubr.bf16.mxu1 %v8508_v20  ;;  %1519 = vmatprep.mubr.bf16.mxu0 %v8508_v20  ;;  %v6257_v38 = vcombine.low %v2055_v8, %v2056_v9 }
 0x264   : > { %v780_v39 = vadd.f32 %v779_v35, %v8461_v30  ;;  %v781_v40 = vpop.f32.mrb[19].mxu0  ;;  %1129 = vmatmul.mubr.bf16.gmra.mrb[12].mxu1 %v8506_v19  ;;  %1520 = vmatmul.mubr.bf16.gmra.mrb[44].mxu0 %v8506_v19  ;;  %v830_v44 = vmax.f32 %v776_v24, 0.0 }
 0x265   : > { %v782_v41 = vadd.f32 %v781_v40, %v8464_v31  ;;  %1861 = vmatpush1.bf16.msra.mxu1 %v6217_v22  ;;  %2252 = vmatpush1.bf16.msra.mxu0 %v6249_v23  ;;  %v831_v53 = vmax.f32 %v778_v34, 0.0  ;;  %v6258_v22 = vcombine.high %v2055_v8, %v2056_v9  ;;  %v1666_v23 = vld [vmem:[#allocation8 + $0x2d0] sm:$0xff] }
 0x266   : > { %v832_v45 = vmax.f32 %v780_v39, 0.0  ;;  %1862 = vmatprep.subr.bf16.mxu1 %v6220_v28  ;;  %2253 = vmatprep.subr.bf16.mxu0 %v6252_v32  ;;  %v1667_v28 = vld [vmem:[#allocation8 + $0x2f0] sm:$0xff]  ;;  %v2057_v32 = vld [vmem:[#allocation8 + $0x2d8] sm:$0xff] }
 0x267   : > { %v833_v54 = vmax.f32 %v782_v41, 0.0  ;;  %v6228_v41 = vcombine.high %v1666_v23, %v1667_v28  ;;  %v6227_v56 = vcombine.low %v1666_v23, %v1667_v28  ;;  %v6259_v57 = vcombine.low %v2057_v32, %v2058_v33  ;;  %v1673_v23 = vld [vmem:[#allocation8 + $0x3b0] sm:$0xff] }
 0x268   : > { %v8518_v58 = vpack.c.bf16 %v832_v45, %v830_v44 }
 0x269   : > { %v8520_v59 = vpack.c.bf16 %v833_v54, %v831_v53  ;;  %v785_v60 = vpop.f32.mrb[20].mxu0  ;;  %1863 = vmatpush1.bf16.msra.mxu1 %v6219_v42  ;;  %2254 = vmatpush1.bf16.msra.mxu0 %v6251_v43  ;;  %v6260_v42 = vcombine.high %v2057_v32, %v2058_v33  ;;  %v1668_v43 = vld [vmem:[#allocation8 + $0x310] sm:$0xff] }
 0x26a   : > { %v786_v63 = vadd.f32 %v785_v60, %v8461_v30  ;;  %v787_v1 = vpop.f32.mrb[21].mxu0  ;;  %1864 = vmatprep.subr.bf16.mxu1 %v6222_v46  ;;  %2255 = vmatprep.subr.bf16.mxu0 %v6254_v47  ;;  %v1669_v46 = vld [vmem:[#allocation8 + $0x330] sm:$0xff]  ;;  %v2059_v47 = vld [vmem:[#allocation8 + $0x318] sm:$0xff] }
 0x26b   : > { %v788_v5 = vadd.f32 %v787_v1, %v8464_v31  ;;  %v789_v6 = vpop.f32.mrb[22].mxu0  ;;  %1138 = vmatprep.mubr.bf16.mxu1 %v8520_v59  ;;  %1529 = vmatprep.mubr.bf16.mxu0 %v8520_v59  ;;  %v1670_v1 = vld [vmem:[#allocation8 + $0x350] sm:$0xff] }
 0x26c   : > { %v790_v10 = vadd.f32 %v789_v6, %v8461_v30  ;;  %v791_v11 = vpop.f32.mrb[23].mxu0  ;;  %1139 = vmatmul.mubr.bf16.gmra.mrb[16].mxu1 %v8518_v58  ;;  %1530 = vmatmul.mubr.bf16.gmra.mrb[48].mxu0 %v8518_v58  ;;  %v834_v17 = vmax.f32 %v786_v63, 0.0  ;;  %v6262_v63 = vcombine.high %v2059_v47, %v2060_v52  ;;  %v2062_v6 = vld [vmem:[#allocation8 + $0x378] sm:$0xff] }
 0x26d   : > { %v792_v12 = vadd.f32 %v791_v11, %v8464_v31  ;;  %1865 = vmatpush1.bf16.msra.mxu1 %v6221_v61  ;;  %2256 = vmatpush1.bf16.msra.mxu0 %v6253_v62  ;;  %v835_v24 = vmax.f32 %v788_v5, 0.0  ;;  %v6230_v62 = vcombine.high %v1668_v43, %v1669_v46  ;;  %v2061_v5 = vld [vmem:[#allocation8 + $0x358] sm:$0xff]  ;;  %v6261_v11 = vcombine.low %v2059_v47, %v2060_v52 }
 0x26e   : > { %v836_v18 = vmax.f32 %v790_v10, 0.0  ;;  %1866 = vmatprep.subr.bf16.mxu1 %v6224_v2  ;;  %2257 = vmatprep.subr.bf16.mxu0 %v6256_v3  ;;  %v6229_v10 = vcombine.low %v1668_v43, %v1669_v46  ;;  %v2065_v46 = vld [vmem:[#allocation8 + $0x3d8] sm:$0xff] }
 0x26f   : > { %v837_v25 = vmax.f32 %v792_v12, 0.0  ;;  %v2066_v47 = vld [vmem:[#allocation8 + $0x3f8] sm:$0xff] }
 0x270   : > { %v8530_v34 = vpack.c.bf16 %v836_v18, %v834_v17  ;;  %v6264_v17 = vcombine.high %v2061_v5, %v2062_v6  ;;  %v1672_v18 = vld [vmem:[#allocation8 + $0x390] sm:$0xff] }
 0x271   : > { %v8532_v35 = vpack.c.bf16 %v837_v25, %v835_v24  ;;  %v795_v36 = vpop.f32.mrb[24].mxu0  ;;  %1867 = vmatpush1.bf16.msra.mxu1 %v6223_v15  ;;  %2258 = vmatpush1.bf16.msra.mxu0 %v6255_v16  ;;  %v6232_v16 = vcombine.high %v1670_v1, %v1671_v4  ;;  %v2063_v24 = vld [vmem:[#allocation8 + $0x398] sm:$0xff] }
 0x272   : > { %v796_v39 = vadd.f32 %v795_v36, %v8461_v30  ;;  %v797_v40 = vpop.f32.mrb[25].mxu0  ;;  %1868 = vmatprep.subr.bf16.mxu1 %v6226_v21  ;;  %2259 = vmatprep.subr.bf16.mxu0 %v6258_v22  ;;  %v2064_v25 = vld [vmem:[#allocation8 + $0x3b8] sm:$0xff]  ;;  %v6231_v36 = vcombine.low %v1670_v1, %v1671_v4  ;;  %v7001_v4 = vld [vmem:[#allocation13 + $0x6c] ss:$16 sps:$4 sm:$0xff]  }
 0x273   : > { %v798_v44 = vadd.f32 %v797_v40, %v8464_v31  ;;  %v799_v45 = vpop.f32.mrb[26].mxu0  ;;  %1148 = vmatprep.mubr.bf16.mxu1 %v8532_v35  ;;  %1539 = vmatprep.mubr.bf16.mxu0 %v8532_v35  ;;  %v6234_v40 = vcombine.high %v1672_v18, %v1673_v23  ;;  %v6990_v1 = vld [vmem:[#allocation13 + $0x40] ss:$16 sps:$4 sm:$0xff]  }
 0x274   : > { %v800_v53 = vadd.f32 %v799_v45, %v8461_v30  ;;  %v801_v54 = vpop.f32.mrb[27].mxu0  ;;  %1149 = vmatmul.mubr.bf16.gmra.mrb[20].mxu1 %v8530_v34  ;;  %1540 = vmatmul.mubr.bf16.gmra.mrb[52].mxu0 %v8530_v34  ;;  %v838_v60 = vmax.f32 %v796_v39, 0.0  ;;  %v1675_v45 = vld [vmem:[#allocation8 + $0x3f0] sm:$0xff] }
 0x275   : > { %v802_v55 = vadd.f32 %v801_v54, %v8464_v31  ;;  %1869 = vmatpush1.bf16.msra.mxu1 %v6225_v37  ;;  %2260 = vmatpush1.bf16.msra.mxu0 %v6257_v38  ;;  %v839_v2 = vmax.f32 %v798_v44, 0.0  ;;  %v6263_v37 = vcombine.low %v2061_v5, %v2062_v6  ;;  %v6996_v5 = vld [vmem:[#allocation13 + $0x60] ss:$16 sps:$4 sm:$0xff]   ;;  %v6999_v6 = vld [vmem:[#allocation13 + $0x68] ss:$16 sps:$4 sm:$0xff]  }
 0x276   : > { %v840_v61 = vmax.f32 %v800_v53, 0.0  ;;  %1870 = vmatprep.subr.bf16.mxu1 %v6228_v41  ;;  %2261 = vmatprep.subr.bf16.mxu0 %v6260_v42  ;;  %v6266_v41 = vcombine.high %v2063_v24, %v2064_v25  ;;  %v6265_v53 = vcombine.low %v2063_v24, %v2064_v25  ;;  %v7022_v24 = vld [vmem:[#allocation13 + $0xe4] ss:$16 sps:$4 sm:$0xff]   ;;  %v7025_v25 = vld [vmem:[#allocation13 + $0xec] ss:$16 sps:$4 sm:$0xff]  }
 0x277   : > { %v841_v3 = vmax.f32 %v802_v55, 0.0  ;;  %v6268_v55 = vcombine.high %v2065_v46, %v2066_v47 }
 0x278   : > { %v8542_v7 = vpack.c.bf16 %v840_v61, %v838_v60  ;;  %v6986_v60 = vld [vmem:[#allocation13 + $0x24] ss:$16 sps:$4 sm:$0xff]   ;;  %v6984_v61 = vld [vmem:[#allocation13 + $0x20] ss:$16 sps:$4 sm:$0xff]  }
 0x279   : > { %v8544_v8 = vpack.c.bf16 %v841_v3, %v839_v2  ;;  %v805_v9 = vpop.f32.mrb[28].mxu0  ;;  %1871 = vmatpush1.bf16.msra.mxu1 %v6227_v56  ;;  %2262 = vmatpush1.bf16.msra.mxu0 %v6259_v57  ;;  %v6267_v57 = vcombine.low %v2065_v46, %v2066_v47  ;;  %v6993_v2 = vld [vmem:[#allocation13 + $0x48] ss:$16 sps:$4 sm:$0xff]   ;;  %v6998_v3 = vld [vmem:[#allocation13 + $0x64] ss:$16 sps:$4 sm:$0xff]  }
 0x27a   : > { %v806_v12 = vadd.f32 %v805_v9, %v8461_v30  ;;  %v807_v15 = vpop.f32.mrb[29].mxu0  ;;  %1872 = vmatprep.subr.bf16.mxu1 %v6230_v62  ;;  %2263 = vmatprep.subr.bf16.mxu0 %v6262_v63  ;;  %v6987_v62 = vld [vmem:[#allocation13 + $0x28] ss:$16 sps:$4 sm:$0xff]   ;;  %v6995_v63 = vld [vmem:[#allocation13 + $0x4c] ss:$16 sps:$4 sm:$0xff]  }
 0x27b   : > { %v808_v21 = vadd.f32 %v807_v15, %v8464_v31  ;;  %v809_v22 = vpop.f32.mrb[30].mxu0  ;;  %1158 = vmatprep.mubr.bf16.mxu1 %v8544_v8  ;;  %1549 = vmatprep.mubr.bf16.mxu0 %v8544_v8  ;;  %v7007_v9 = vld [vmem:[#allocation13 + $0x8c] ss:$16 sps:$4 sm:$0xff]   ;;  %v7041_v46 = vld [vmem:[#allocation13 + $0x148] ss:$16 sps:$4 sm:$0xff]  }
 0x27c   : > { %v810_v28 = vadd.f32 %v809_v22, %v8461_v30  ;;  %v811_v32 = vpop.f32.mrb[31].mxu0  ;;  %1159 = vmatmul.mubr.bf16.gmra.mrb[24].mxu1 %v8542_v7  ;;  %1550 = vmatmul.mubr.bf16.gmra.mrb[56].mxu0 %v8542_v7  ;;  %v842_v38 = vmax.f32 %v806_v12, 0.0  ;;  %v1674_v30 = vld [vmem:[#allocation8 + $0x3d0] sm:$0xff]  ;;  %v7010_v12 = vld [vmem:[#allocation13 + $0xa4] ss:$16 sps:$4 sm:$0xff]  }
 0x27d   : > { %v812_v33 = vadd.f32 %v811_v32, %v8464_v31  ;;  %1873 = vmatpush1.bf16.msra.mxu1 %v6229_v10  ;;  %2264 = vmatpush1.bf16.msra.mxu0 %v6261_v11  ;;  %v843_v42 = vmax.f32 %v808_v21, 0.0  ;;  %v6233_v31 = vcombine.low %v1672_v18, %v1673_v23  ;;  %v6236_v54 = vcombine.high %v1674_v30, %v1675_v45  ;;  %v7002_v10 = vld [vmem:[#allocation13 + $0x80] ss:$16 sps:$4 sm:$0xff]   ;;  %v7005_v11 = vld [vmem:[#allocation13 + $0x88] ss:$16 sps:$4 sm:$0xff]  }
 0x27e   : > { %v844_v39 = vmax.f32 %v810_v28, 0.0  ;;  %1874 = vmatprep.subr.bf16.mxu1 %v6232_v16  ;;  %2265 = vmatprep.subr.bf16.mxu0 %v6264_v17  ;;  %v6235_v56 = vcombine.low %v1674_v30, %v1675_v45  ;;  %v7013_v15 = vld [vmem:[#allocation13 + $0xac] ss:$16 sps:$4 sm:$0xff]   ;;  %v7008_v16 = vld [vmem:[#allocation13 + $0xa0] ss:$16 sps:$4 sm:$0xff]  }
 0x27f   : > { %v845_v43 = vmax.f32 %v812_v33, 0.0  ;;  %v7011_v17 = vld [vmem:[#allocation13 + $0xa8] ss:$16 sps:$4 sm:$0xff]   ;;  %v7016_v18 = vld [vmem:[#allocation13 + $0xc4] ss:$16 sps:$4 sm:$0xff]  }
 0x280   : > { %v8554_v44 = vpack.c.bf16 %v844_v39, %v842_v38  ;;  %v7019_v21 = vld [vmem:[#allocation13 + $0xcc] ss:$16 sps:$4 sm:$0xff]   ;;  %v7014_v22 = vld [vmem:[#allocation13 + $0xc0] ss:$16 sps:$4 sm:$0xff]   ;;  %v7017_v23 = vld [vmem:[#allocation13 + $0xc8] ss:$16 sps:$4 sm:$0xff]  }
 0x281   : > { %v8556_v52 = vpack.c.bf16 %v845_v43, %v843_v42  ;;  %1875 = vmatpush1.bf16.msra.mxu1 %v6231_v36  ;;  %2266 = vmatpush1.bf16.msra.mxu0 %v6263_v37  ;;  %v7020_v28 = vld [vmem:[#allocation13 + $0xe0] ss:$16 sps:$4 sm:$0xff]   ;;  %v7023_v32 = vld [vmem:[#allocation13 + $0xe8] ss:$16 sps:$4 sm:$0xff]   ;;  %v7028_v33 = vld [vmem:[#allocation13 + $0x104] ss:$16 sps:$4 sm:$0xff]  }
 0x282   : > { %1876 = vmatprep.subr.bf16.mxu1 %v6234_v40  ;;  %2267 = vmatprep.subr.bf16.mxu0 %v6266_v41  ;;  %v7031_v36 = vld [vmem:[#allocation13 + $0x10c] ss:$16 sps:$4 sm:$0xff]   ;;  %v7026_v37 = vld [vmem:[#allocation13 + $0x100] ss:$16 sps:$4 sm:$0xff]   ;;  %v7029_v38 = vld [vmem:[#allocation13 + $0x108] ss:$16 sps:$4 sm:$0xff]  }
 0x283   : > { %1168 = vmatprep.mubr.bf16.mxu1 %v8556_v52  ;;  %1559 = vmatprep.mubr.bf16.mxu0 %v8556_v52  ;;  %v7034_v39 = vld [vmem:[#allocation13 + $0x124] ss:$16 sps:$4 sm:$0xff]   ;;  %v7037_v40 = vld [vmem:[#allocation13 + $0x12c] ss:$16 sps:$4 sm:$0xff]   ;;  %v7032_v41 = vld [vmem:[#allocation13 + $0x120] ss:$16 sps:$4 sm:$0xff]  }
 0x284   : > { %1169 = vmatmul.mubr.bf16.gmra.mrb[28].mxu1 %v8554_v44  ;;  %1560 = vmatmul.mubr.bf16.gmra.mrb[60].mxu0 %v8554_v44  ;;  %v7035_v42 = vld [vmem:[#allocation13 + $0x128] ss:$16 sps:$4 sm:$0xff]   ;;  %v7040_v43 = vld [vmem:[#allocation13 + $0x144] ss:$16 sps:$4 sm:$0xff]   ;;  %v7043_v30 = vld [vmem:[#allocation13 + $0x14c] ss:$16 sps:$4 sm:$0xff]  }
 0x285   : > { %1877 = vmatpush1.bf16.msra.mxu1 %v6233_v31  ;;  %1880 = vmatprep.mubr.bf16.mxu1 %v8472_v49  ;;  %v7038_v45 = vld [vmem:[#allocation13 + $0x140] ss:$16 sps:$4 sm:$0xff]   ;;  %v7046_v47 = vld [vmem:[#allocation13 + $0x164] ss:$16 sps:$4 sm:$0xff]  }
 0x286   : > { %2268 = vmatpush1.bf16.msra.mxu0 %v6265_v53  ;;  %2271 = vmatprep.mubr.bf16.mxu0 %v8472_v49  ;;  %v6980_v49 = vld [vmem:[#allocation13 + $0x4] ss:$16 sps:$4 sm:$0xff]   ;;  %v7044_v31 = vld [vmem:[#allocation13 + $0x160] ss:$16 sps:$4 sm:$0xff]   ;;  %v7047_v53 = vld [vmem:[#allocation13 + $0x168] ss:$16 sps:$4 sm:$0xff]  }
 0x287   : > { %1878 = vmatprep.subr.bf16.mxu1 %v6236_v54  ;;  %2269 = vmatprep.subr.bf16.mxu0 %v6268_v55  ;;  %v7052_v54 = vld [vmem:[#allocation13 + $0x184] ss:$16 sps:$4 sm:$0xff]   ;;  %v7055_v55 = vld [vmem:[#allocation13 + $0x18c] ss:$16 sps:$4 sm:$0xff]  }
 0x289   : > { %1879 = vmatpush1.bf16.msra.mxu1 %v6235_v56  ;;  %v7050_v56 = vld [vmem:[#allocation13 + $0x180] ss:$16 sps:$4 sm:$0xff]  }
 0x28a   : > { %2270 = vmatpush1.bf16.msra.mxu0 %v6267_v57  ;;  %3970 = vmatprep.subr.bf16.mxu1 %v6980_v49  ;;  %v7053_v57 = vld [vmem:[#allocation13 + $0x188] ss:$16 sps:$4 sm:$0xff]   ;;  %v7058_v49 = vld [vmem:[#allocation13 + $0x1a4] ss:$16 sps:$4 sm:$0xff]  }
 0x28c   : > { %1881 = vmatmul.mubr.bf16.vlgmr.msra.gmra.mrb[32].mxu1 %v8470_v48 }
 0x28d   : > { %2272 = vmatmul.mubr.bf16.vlgmr.msra.gmra.mrb[64].mxu0 %v8470_v48  ;;  %1890 = vmatprep.mubr.bf16.mxu1 %v8484_v14 }
 0x28e   : > { %2281 = vmatprep.mubr.bf16.mxu0 %v8484_v14  ;;  %v6983_v14 = vld [vmem:[#allocation13 + $0xc] ss:$16 sps:$4 sm:$0xff]  }
 0x28f   : > { %4134 = vmatprep.subr.bf16.mxu0 %v6983_v14  ;;  %v7061_v14 = vld [vmem:[#allocation13 + $0x1ac] ss:$16 sps:$4 sm:$0xff]  }
 0x294   : > { %1891 = vmatmul.mubr.bf16.gmra.mrb[36].mxu1 %v8482_v13 }
 0x295   : > { %2282 = vmatmul.mubr.bf16.gmra.mrb[68].mxu0 %v8482_v13  ;;  %1900 = vmatprep.mubr.bf16.mxu1 %v8496_v51 }
 0x296   : > { %2291 = vmatprep.mubr.bf16.mxu0 %v8496_v51  ;;  %v6978_v51 = vld [vmem:[#allocation13] ss:$16 sps:$4 sm:$0xff]  }
 0x297   : > { %3971 = vmatpush1.bf16.msra.mxu1 %v6978_v51  ;;  %v7056_v51 = vld [vmem:[#allocation13 + $0x1a0] ss:$16 sps:$4 sm:$0xff]  }
 0x298   : > { %3972 = vmatprep.subr.bf16.mxu1 %v6986_v60  ;;  %v7064_v60 = vld [vmem:[#allocation13 + $0x1c4] ss:$16 sps:$4 sm:$0xff]  }
 0x29b   : > { %3973 = vmatpush1.bf16.msra.mxu1 %v6984_v61  ;;  %v7062_v61 = vld [vmem:[#allocation13 + $0x1c0] ss:$16 sps:$4 sm:$0xff]  }
 0x29c   : > { %1901 = vmatmul.mubr.bf16.gmra.mrb[40].mxu1 %v8494_v50 }
 0x29d   : > { %2292 = vmatmul.mubr.bf16.gmra.mrb[72].mxu0 %v8494_v50  ;;  %1910 = vmatprep.mubr.bf16.mxu1 %v8508_v20 }
 0x29e   : > { %2301 = vmatprep.mubr.bf16.mxu0 %v8508_v20  ;;  %v6981_v20 = vld [vmem:[#allocation13 + $0x8] ss:$16 sps:$4 sm:$0xff]  }
 0x29f   : > { %4135 = vmatpush1.bf16.msra.mxu0 %v6981_v20  ;;  %v7059_v20 = vld [vmem:[#allocation13 + $0x1a8] ss:$16 sps:$4 sm:$0xff]  }
 0x2a4   : > { %1911 = vmatmul.mubr.bf16.gmra.mrb[44].mxu1 %v8506_v19 }
 0x2a5   : > { %2302 = vmatmul.mubr.bf16.gmra.mrb[76].mxu0 %v8506_v19  ;;  %1920 = vmatprep.mubr.bf16.mxu1 %v8520_v59 }
 0x2a6   : > { %2311 = vmatprep.mubr.bf16.mxu0 %v8520_v59  ;;  %v6989_v59 = vld [vmem:[#allocation13 + $0x2c] ss:$16 sps:$4 sm:$0xff]  }
 0x2a7   : > { %4136 = vmatprep.subr.bf16.mxu0 %v6989_v59  ;;  %v7067_v59 = vld [vmem:[#allocation13 + $0x1cc] ss:$16 sps:$4 sm:$0xff]  }
 0x2a8   : > { %4137 = vmatpush1.bf16.msra.mxu0 %v6987_v62  ;;  %v7065_v62 = vld [vmem:[#allocation13 + $0x1c8] ss:$16 sps:$4 sm:$0xff]  }
 0x2a9   : > { %4138 = vmatprep.subr.bf16.mxu0 %v6995_v63  ;;  %v7073_v63 = vld [vmem:[#allocation13 + $0x1ec] ss:$16 sps:$4 sm:$0xff]  }
 0x2ac   : > { %1921 = vmatmul.mubr.bf16.gmra.mrb[48].mxu1 %v8518_v58  ;;  %4139 = vmatpush1.bf16.msra.mxu0 %v6993_v2  ;;  %v7071_v2 = vld [vmem:[#allocation13 + $0x1e8] ss:$16 sps:$4 sm:$0xff]  }
 0x2ad   : > { %2312 = vmatmul.mubr.bf16.gmra.mrb[80].mxu0 %v8518_v58  ;;  %1930 = vmatprep.mubr.bf16.mxu1 %v8532_v35 }
 0x2ae   : > { %2321 = vmatprep.mubr.bf16.mxu0 %v8532_v35  ;;  %v6992_v35 = vld [vmem:[#allocation13 + $0x44] ss:$16 sps:$4 sm:$0xff]   ;;  %4140 = vmatprep.subr.bf16.mxu0 %v7001_v4  ;;  %v7079_v4 = vld [vmem:[#allocation13 + $0x20c] ss:$16 sps:$4 sm:$0xff]  }
 0x2af   : > { %3974 = vmatprep.subr.bf16.mxu1 %v6992_v35  ;;  %v7070_v35 = vld [vmem:[#allocation13 + $0x1e4] ss:$16 sps:$4 sm:$0xff]  }
 0x2b0   : > { %3975 = vmatpush1.bf16.msra.mxu1 %v6990_v1  ;;  %4141 = vmatpush1.bf16.msra.mxu0 %v6999_v6  ;;  %v7068_v1 = vld [vmem:[#allocation13 + $0x1e0] ss:$16 sps:$4 sm:$0xff]   ;;  %v1285_v6 = vld [vmem:[#allocation10 + $0x2] sm:$0x3] }
 0x2b1   : > { %3976 = vmatprep.subr.bf16.mxu1 %v6998_v3  ;;  %4142 = vmatprep.subr.bf16.mxu0 %v7007_v9  ;;  %v7076_v3 = vld [vmem:[#allocation13 + $0x204] ss:$16 sps:$4 sm:$0xff]  }
 0x2b4   : > { %1931 = vmatmul.mubr.bf16.gmra.mrb[52].mxu1 %v8530_v34  ;;  %4143 = vmatpush1.bf16.msra.mxu0 %v7005_v11 }
 0x2b5   : > { %2322 = vmatmul.mubr.bf16.gmra.mrb[84].mxu0 %v8530_v34  ;;  %1940 = vmatprep.mubr.bf16.mxu1 %v8544_v8 }
 0x2b6   : > { %2331 = vmatprep.mubr.bf16.mxu0 %v8544_v8  ;;  %3977 = vmatpush1.bf16.msra.mxu1 %v6996_v5  ;;  %v7004_v8 = vld [vmem:[#allocation13 + $0x84] ss:$16 sps:$4 sm:$0xff]   ;;  %v894_v5 = vld [vmem:[#allocation10] sm:$0x3] }
 0x2b7   : > { %3978 = vmatprep.subr.bf16.mxu1 %v7004_v8  ;;  %4144 = vmatprep.subr.bf16.mxu0 %v7013_v15  ;;  %v8595_v8 = vrot.slane %v894_v5, %v8455_v27  ;;  %v8604_v15 = vrot.slane %v1285_v6, %v8458_v29 }
 0x2b8   : > { %4145 = vmatpush1.bf16.msra.mxu0 %v7011_v17 }
 0x2b9   : > { %4146 = vmatprep.subr.bf16.mxu0 %v7019_v21 }
 0x2ba   : > { %3979 = vmatpush1.bf16.msra.mxu1 %v7002_v10  ;;  %v8598_v10 = vrot.slane %v1285_v6, %v8455_v27 }
 0x2bb   : > { %3980 = vmatprep.subr.bf16.mxu1 %v7010_v12  ;;  %v8601_v12 = vrot.slane %v894_v5, %v8458_v29 }
 0x2bc   : > { %1941 = vmatmul.mubr.bf16.gmra.mrb[56].mxu1 %v8542_v7  ;;  %4147 = vmatpush1.bf16.msra.mxu0 %v7017_v23 }
 0x2bd   : > { %2332 = vmatmul.mubr.bf16.gmra.mrb[88].mxu0 %v8542_v7  ;;  %1950 = vmatprep.mubr.bf16.mxu1 %v8556_v52 }
 0x2be   : > { %2341 = vmatprep.mubr.bf16.mxu0 %v8556_v52  ;;  %3981 = vmatpush1.bf16.msra.mxu1 %v7008_v16  ;;  %v7049_v52 = vld [vmem:[#allocation13 + $0x16c] ss:$16 sps:$4 sm:$0xff]  }
 0x2bf   : > { %3982 = vmatprep.subr.bf16.mxu1 %v7016_v18  ;;  %4148 = vmatprep.subr.bf16.mxu0 %v7025_v25 }
 0x2c0   : > { %4149 = vmatpush1.bf16.msra.mxu0 %v7023_v32 }
 0x2c1   : > { %4150 = vmatprep.subr.bf16.mxu0 %v7031_v36 }
 0x2c2   : > { %3983 = vmatpush1.bf16.msra.mxu1 %v7014_v22 }
 0x2c3   : > { %3984 = vmatprep.subr.bf16.mxu1 %v7022_v24 }
 0x2c4   : > { %1951 = vmatmul.mubr.bf16.gmra.mrb[60].mxu1 %v8554_v44  ;;  %4151 = vmatpush1.bf16.msra.mxu0 %v7029_v38 }
 0x2c5   : > { %2342 = vmatmul.mubr.bf16.gmra.mrb[92].mxu0 %v8554_v44  ;;  %4152 = vmatprep.subr.bf16.mxu0 %v7037_v40 }
 0x2c6   : > { %3985 = vmatpush1.bf16.msra.mxu1 %v7020_v28 }
 0x2c7   : > { %3986 = vmatprep.subr.bf16.mxu1 %v7028_v33 }
 0x2c8   : > { %4153 = vmatpush1.bf16.msra.mxu0 %v7035_v42 }
 0x2c9   : > { %4154 = vmatprep.subr.bf16.mxu0 %v7043_v30 }
 0x2ca   : > { %3987 = vmatpush1.bf16.msra.mxu1 %v7026_v37 }
 0x2cb   : > { %3988 = vmatprep.subr.bf16.mxu1 %v7034_v39 }
 0x2cc   : > { %4155 = vmatpush1.bf16.msra.mxu0 %v7041_v46 }
 0x2cd   : > { %4156 = vmatprep.subr.bf16.mxu0 %v7049_v52 }
 0x2ce   : > { %3989 = vmatpush1.bf16.msra.mxu1 %v7032_v41 }
 0x2cf   : > { %3990 = vmatprep.subr.bf16.mxu1 %v7040_v43 }
 0x2d0   : > { %4157 = vmatpush1.bf16.msra.mxu0 %v7047_v53 }
 0x2d1   : > { %4158 = vmatprep.subr.bf16.mxu0 %v7055_v55 }
 0x2d2   : > { %3991 = vmatpush1.bf16.msra.mxu1 %v7038_v45 }
 0x2d3   : > { %3992 = vmatprep.subr.bf16.mxu1 %v7046_v47 }
 0x2d4   : > { %4159 = vmatpush1.bf16.msra.mxu0 %v7053_v57 }
 0x2d5   : > { %4160 = vmatprep.subr.bf16.mxu0 %v7061_v14 }
 0x2d6   : > { %3993 = vmatpush1.bf16.msra.mxu1 %v7044_v31 }
 0x2d7   : > { %3994 = vmatprep.subr.bf16.mxu1 %v7052_v54 }
 0x2d8   : > { %4161 = vmatpush1.bf16.msra.mxu0 %v7059_v20 }
 0x2d9   : > { %4162 = vmatprep.subr.bf16.mxu0 %v7067_v59 }
 0x2da   : > { %3995 = vmatpush1.bf16.msra.mxu1 %v7050_v56 }
 0x2db   : > { %3996 = vmatprep.subr.bf16.mxu1 %v7058_v49 }
 0x2dc   : > { %4163 = vmatpush1.bf16.msra.mxu0 %v7065_v62 }
 0x2dd   : > { %4164 = vmatprep.subr.bf16.mxu0 %v7073_v63 }
 0x2de   : > { %3997 = vmatpush1.bf16.msra.mxu1 %v7056_v51 }
 0x2df   : > { %3998 = vmatprep.subr.bf16.mxu1 %v7064_v60 }
 0x2e0   : > { %4165 = vmatpush1.bf16.msra.mxu0 %v7071_v2 }
 0x2e1   : > { %4175 = vmatprep.subr.bf16.mxu0 %v7079_v4 }
 0x2e2   : > { %3999 = vmatpush1.bf16.msra.mxu1 %v7062_v61 }
 0x2e3   : > { %4000 = vmatprep.subr.bf16.mxu1 %v7070_v35 }
 0x2e6   : > { %4001 = vmatpush1.bf16.msra.mxu1 %v7068_v1 }
 0x2e7   : > { %4011 = vmatprep.subr.bf16.mxu1 %v7076_v3 }
 0x31f   : > { %v1100_v9 = vpop.f32.mrb[0].mxu1  ;;  %v1491_v11 = vpop.f32.mrb[32].mxu0 }
 0x320   : > { %v1102_v16 = vpop.f32.mrb[1].mxu1  ;;  %v1493_v17 = vpop.f32.mrb[33].mxu0  ;;  %v1101_v24 = vadd.f32 %v1100_v9, %v8595_v8  ;;  %v1492_v25 = vadd.f32 %v1491_v11, %v8598_v10 }
 0x321   : > { %v1104_v18 = vpop.f32.mrb[2].mxu1  ;;  %v1495_v21 = vpop.f32.mrb[34].mxu0  ;;  %v1103_v28 = vadd.f32 %v1102_v16, %v8601_v12  ;;  %v1494_v32 = vadd.f32 %v1493_v17, %v8604_v15 }
 0x322   : > { %v1106_v22 = vpop.f32.mrb[3].mxu1  ;;  %v1497_v23 = vpop.f32.mrb[35].mxu0  ;;  %v1105_v33 = vadd.f32 %v1104_v18, %v8595_v8  ;;  %v1496_v36 = vadd.f32 %v1495_v21, %v8598_v10  ;;  %v1179_v39 = vmax.f32 %v1101_v24, 0.0  ;;  %v1570_v40 = vmax.f32 %v1492_v25, 0.0 }
 0x323   : > { %v1107_v37 = vadd.f32 %v1106_v22, %v8601_v12  ;;  %v1498_v38 = vadd.f32 %v1497_v23, %v8604_v15  ;;  %v1180_v41 = vmax.f32 %v1103_v28, 0.0  ;;  %v1571_v42 = vmax.f32 %v1494_v32, 0.0 }
 0x324   : > { %v1181_v45 = vmax.f32 %v1105_v33, 0.0  ;;  %v1572_v46 = vmax.f32 %v1496_v36, 0.0 }
 0x325   : > { %v1182_v54 = vmax.f32 %v1107_v37, 0.0  ;;  %v1573_v55 = vmax.f32 %v1498_v38, 0.0 }
 0x327   : > { %v1110_v43 = vpop.f32.mrb[4].mxu1  ;;  %v1501_v30 = vpop.f32.mrb[36].mxu0 }
 0x328   : > { %v1111_v47 = vadd.f32 %v1110_v43, %v8595_v8  ;;  %v1502_v52 = vadd.f32 %v1501_v30, %v8598_v10  ;;  %v1112_v31 = vpop.f32.mrb[5].mxu1  ;;  %v1503_v53 = vpop.f32.mrb[37].mxu0 }
 0x329   : > { %v1113_v56 = vadd.f32 %v1112_v31, %v8601_v12  ;;  %v1504_v57 = vadd.f32 %v1503_v53, %v8604_v15  ;;  %v1114_v49 = vpop.f32.mrb[6].mxu1  ;;  %v1505_v14 = vpop.f32.mrb[38].mxu0 }
 0x32a   : > { %v1183_v51 = vmax.f32 %v1111_v47, 0.0  ;;  %v1574_v20 = vmax.f32 %v1502_v52, 0.0  ;;  %v1115_v60 = vadd.f32 %v1114_v49, %v8595_v8  ;;  %v1506_v59 = vadd.f32 %v1505_v14, %v8598_v10  ;;  %v1116_v61 = vpop.f32.mrb[7].mxu1  ;;  %v1507_v62 = vpop.f32.mrb[39].mxu0 }
 0x32b   : > { %v1184_v35 = vmax.f32 %v1113_v56, 0.0  ;;  %v1575_v63 = vmax.f32 %v1504_v57, 0.0  ;;  %v1117_v1 = vadd.f32 %v1116_v61, %v8601_v12  ;;  %v1508_v2 = vadd.f32 %v1507_v62, %v8604_v15 }
 0x32c   : > { %v1211_v3 = vmax.f32 %v1179_v39, %v1183_v51  ;;  %v1602_v4 = vmax.f32 %v1570_v40, %v1574_v20  ;;  %v1185_v5 = vmax.f32 %v1115_v60, 0.0  ;;  %v1576_v6 = vmax.f32 %v1506_v59, 0.0 }
 0x32d   : > { %v1232_v9 = vmax.f32 %v1180_v41, %v1184_v35  ;;  %v1623_v11 = vmax.f32 %v1571_v42, %v1575_v63  ;;  %v1186_v16 = vmax.f32 %v1117_v1, 0.0  ;;  %v1577_v17 = vmax.f32 %v1508_v2, 0.0 }
 0x32e   : > { %v1212_v18 = vmax.f32 %v1181_v45, %v1185_v5  ;;  %v1603_v21 = vmax.f32 %v1572_v46, %v1576_v6 }
 0x32f   : > { %v1233_v22 = vmax.f32 %v1182_v54, %v1186_v16  ;;  %v1624_v23 = vmax.f32 %v1573_v55, %v1577_v17  ;;  %v1120_v24 = vpop.f32.mrb[8].mxu1  ;;  %v1511_v25 = vpop.f32.mrb[40].mxu0 }
 0x330   : > { %v1121_v28 = vadd.f32 %v1120_v24, %v8595_v8  ;;  %v1512_v32 = vadd.f32 %v1511_v25, %v8598_v10  ;;  %v1122_v33 = vpop.f32.mrb[9].mxu1  ;;  %v1513_v36 = vpop.f32.mrb[41].mxu0 }
 0x331   : > { %v1123_v37 = vadd.f32 %v1122_v33, %v8601_v12  ;;  %v1514_v38 = vadd.f32 %v1513_v36, %v8604_v15  ;;  %v1124_v39 = vpop.f32.mrb[10].mxu1  ;;  %v1515_v40 = vpop.f32.mrb[42].mxu0 }
 0x332   : > { %v1187_v41 = vmax.f32 %v1121_v28, 0.0  ;;  %v1578_v42 = vmax.f32 %v1512_v32, 0.0  ;;  %v1125_v43 = vadd.f32 %v1124_v39, %v8595_v8  ;;  %v1516_v30 = vadd.f32 %v1515_v40, %v8598_v10  ;;  %v1126_v45 = vpop.f32.mrb[11].mxu1  ;;  %v1517_v46 = vpop.f32.mrb[43].mxu0 }
 0x333   : > { %v1188_v47 = vmax.f32 %v1123_v37, 0.0  ;;  %v1579_v52 = vmax.f32 %v1514_v38, 0.0  ;;  %v1127_v31 = vadd.f32 %v1126_v45, %v8601_v12  ;;  %v1518_v53 = vadd.f32 %v1517_v46, %v8604_v15 }
 0x334   : > { %v1213_v54 = vmax.f32 %v1211_v3, %v1187_v41  ;;  %v1604_v55 = vmax.f32 %v1602_v4, %v1578_v42  ;;  %v1189_v56 = vmax.f32 %v1125_v43, 0.0  ;;  %v1580_v57 = vmax.f32 %v1516_v30, 0.0 }
 0x335   : > { %v1234_v49 = vmax.f32 %v1232_v9, %v1188_v47  ;;  %v1625_v14 = vmax.f32 %v1623_v11, %v1579_v52  ;;  %v1190_v51 = vmax.f32 %v1127_v31, 0.0  ;;  %v1581_v20 = vmax.f32 %v1518_v53, 0.0 }
 0x336   : > { %v1214_v60 = vmax.f32 %v1212_v18, %v1189_v56  ;;  %v1605_v59 = vmax.f32 %v1603_v21, %v1580_v57 }
 0x337   : > { %v1235_v61 = vmax.f32 %v1233_v22, %v1190_v51  ;;  %v1626_v62 = vmax.f32 %v1624_v23, %v1581_v20  ;;  %v1130_v35 = vpop.f32.mrb[12].mxu1  ;;  %v1521_v63 = vpop.f32.mrb[44].mxu0 }
 0x338   : > { %v1131_v1 = vadd.f32 %v1130_v35, %v8595_v8  ;;  %v1522_v2 = vadd.f32 %v1521_v63, %v8598_v10  ;;  %v1132_v5 = vpop.f32.mrb[13].mxu1  ;;  %v1523_v6 = vpop.f32.mrb[45].mxu0 }
 0x339   : > { %v1133_v3 = vadd.f32 %v1132_v5, %v8601_v12  ;;  %v1524_v4 = vadd.f32 %v1523_v6, %v8604_v15  ;;  %v1134_v9 = vpop.f32.mrb[14].mxu1  ;;  %v1525_v11 = vpop.f32.mrb[46].mxu0 }
 0x33a   : > { %v1191_v16 = vmax.f32 %v1131_v1, 0.0  ;;  %v1582_v17 = vmax.f32 %v1522_v2, 0.0  ;;  %v1135_v18 = vadd.f32 %v1134_v9, %v8595_v8  ;;  %v1526_v21 = vadd.f32 %v1525_v11, %v8598_v10  ;;  %v1136_v22 = vpop.f32.mrb[15].mxu1  ;;  %v1527_v23 = vpop.f32.mrb[47].mxu0 }
 0x33b   : > { %v1192_v24 = vmax.f32 %v1133_v3, 0.0  ;;  %v1583_v25 = vmax.f32 %v1524_v4, 0.0  ;;  %v1137_v28 = vadd.f32 %v1136_v22, %v8601_v12  ;;  %v1528_v32 = vadd.f32 %v1527_v23, %v8604_v15 }
 0x33c   : > { %v1215_v33 = vmax.f32 %v1213_v54, %v1191_v16  ;;  %v1606_v36 = vmax.f32 %v1604_v55, %v1582_v17  ;;  %v1193_v37 = vmax.f32 %v1135_v18, 0.0  ;;  %v1584_v38 = vmax.f32 %v1526_v21, 0.0 }
 0x33d   : > { %v1236_v39 = vmax.f32 %v1234_v49, %v1192_v24  ;;  %v1627_v40 = vmax.f32 %v1625_v14, %v1583_v25  ;;  %v1194_v41 = vmax.f32 %v1137_v28, 0.0  ;;  %v1585_v42 = vmax.f32 %v1528_v32, 0.0 }
 0x33e   : > { %v1216_v43 = vmax.f32 %v1214_v60, %v1193_v37  ;;  %v1607_v30 = vmax.f32 %v1605_v59, %v1584_v38 }
 0x33f   : > { %v1237_v45 = vmax.f32 %v1235_v61, %v1194_v41  ;;  %v1628_v46 = vmax.f32 %v1626_v62, %v1585_v42  ;;  %v1140_v47 = vpop.f32.mrb[16].mxu1  ;;  %v1531_v52 = vpop.f32.mrb[48].mxu0 }
 0x340   : > { %v1141_v31 = vadd.f32 %v1140_v47, %v8595_v8  ;;  %v1532_v53 = vadd.f32 %v1531_v52, %v8598_v10  ;;  %v1142_v56 = vpop.f32.mrb[17].mxu1  ;;  %v1533_v57 = vpop.f32.mrb[49].mxu0 }
 0x341   : > { %v1143_v54 = vadd.f32 %v1142_v56, %v8601_v12  ;;  %v1534_v55 = vadd.f32 %v1533_v57, %v8604_v15  ;;  %v1144_v49 = vpop.f32.mrb[18].mxu1  ;;  %v1535_v14 = vpop.f32.mrb[50].mxu0 }
 0x342   : > { %v1195_v51 = vmax.f32 %v1141_v31, 0.0  ;;  %v1586_v20 = vmax.f32 %v1532_v53, 0.0  ;;  %v1145_v60 = vadd.f32 %v1144_v49, %v8595_v8  ;;  %v1536_v59 = vadd.f32 %v1535_v14, %v8598_v10  ;;  %v1146_v61 = vpop.f32.mrb[19].mxu1  ;;  %v1537_v62 = vpop.f32.mrb[51].mxu0 }
 0x343   : > { %v1196_v35 = vmax.f32 %v1143_v54, 0.0  ;;  %v1587_v63 = vmax.f32 %v1534_v55, 0.0  ;;  %v1147_v1 = vadd.f32 %v1146_v61, %v8601_v12  ;;  %v1538_v2 = vadd.f32 %v1537_v62, %v8604_v15 }
 0x344   : > { %v1217_v5 = vmax.f32 %v1215_v33, %v1195_v51  ;;  %v1608_v6 = vmax.f32 %v1606_v36, %v1586_v20  ;;  %v1197_v3 = vmax.f32 %v1145_v60, 0.0  ;;  %v1588_v4 = vmax.f32 %v1536_v59, 0.0 }
 0x345   : > { %v1238_v9 = vmax.f32 %v1236_v39, %v1196_v35  ;;  %v1629_v11 = vmax.f32 %v1627_v40, %v1587_v63  ;;  %v1198_v16 = vmax.f32 %v1147_v1, 0.0  ;;  %v1589_v17 = vmax.f32 %v1538_v2, 0.0 }
 0x346   : > { %v1218_v18 = vmax.f32 %v1216_v43, %v1197_v3  ;;  %v1609_v21 = vmax.f32 %v1607_v30, %v1588_v4 }
 0x347   : > { %v1239_v22 = vmax.f32 %v1237_v45, %v1198_v16  ;;  %v1630_v23 = vmax.f32 %v1628_v46, %v1589_v17  ;;  %v1150_v24 = vpop.f32.mrb[20].mxu1  ;;  %v1541_v25 = vpop.f32.mrb[52].mxu0 }
 0x348   : > { %v1151_v28 = vadd.f32 %v1150_v24, %v8595_v8  ;;  %v1542_v32 = vadd.f32 %v1541_v25, %v8598_v10  ;;  %v1152_v37 = vpop.f32.mrb[21].mxu1  ;;  %v1543_v38 = vpop.f32.mrb[53].mxu0 }
 0x349   : > { %v1153_v33 = vadd.f32 %v1152_v37, %v8601_v12  ;;  %v1544_v36 = vadd.f32 %v1543_v38, %v8604_v15  ;;  %v1154_v39 = vpop.f32.mrb[22].mxu1  ;;  %v1545_v40 = vpop.f32.mrb[54].mxu0 }
 0x34a   : > { %v1199_v41 = vmax.f32 %v1151_v28, 0.0  ;;  %v1590_v42 = vmax.f32 %v1542_v32, 0.0  ;;  %v1155_v43 = vadd.f32 %v1154_v39, %v8595_v8  ;;  %v1546_v30 = vadd.f32 %v1545_v40, %v8598_v10  ;;  %v1156_v45 = vpop.f32.mrb[23].mxu1  ;;  %v1547_v46 = vpop.f32.mrb[55].mxu0 }
 0x34b   : > { %v1200_v47 = vmax.f32 %v1153_v33, 0.0  ;;  %v1591_v52 = vmax.f32 %v1544_v36, 0.0  ;;  %v1157_v31 = vadd.f32 %v1156_v45, %v8601_v12  ;;  %v1548_v53 = vadd.f32 %v1547_v46, %v8604_v15  ;;  %v1676_v45 = vld [vmem:[#allocation10 + $0x4] sm:$0x3]  ;;  %v2067_v46 = vld [vmem:[#allocation10 + $0x6] sm:$0x3] }
 0x34c   : > { %v1219_v56 = vmax.f32 %v1217_v5, %v1199_v41  ;;  %v1610_v57 = vmax.f32 %v1608_v6, %v1590_v42  ;;  %v1201_v54 = vmax.f32 %v1155_v43, 0.0  ;;  %v1592_v55 = vmax.f32 %v1546_v30, 0.0 }
 0x34d   : > { %v1240_v49 = vmax.f32 %v1238_v9, %v1200_v47  ;;  %v1631_v14 = vmax.f32 %v1629_v11, %v1591_v52  ;;  %v1202_v51 = vmax.f32 %v1157_v31, 0.0  ;;  %v1593_v20 = vmax.f32 %v1548_v53, 0.0 }
 0x34e   : > { %v1220_v60 = vmax.f32 %v1218_v18, %v1201_v54  ;;  %v1611_v59 = vmax.f32 %v1609_v21, %v1592_v55 }
 0x34f   : > { %v1241_v61 = vmax.f32 %v1239_v22, %v1202_v51  ;;  %v1632_v62 = vmax.f32 %v1630_v23, %v1593_v20  ;;  %v1160_v35 = vpop.f32.mrb[24].mxu1  ;;  %v1551_v63 = vpop.f32.mrb[56].mxu0 }
 0x350   : > { %v1161_v1 = vadd.f32 %v1160_v35, %v8595_v8  ;;  %v1552_v2 = vadd.f32 %v1551_v63, %v8598_v10  ;;  %v1162_v3 = vpop.f32.mrb[25].mxu1  ;;  %v1553_v4 = vpop.f32.mrb[57].mxu0 }
 0x351   : > { %v1163_v5 = vadd.f32 %v1162_v3, %v8601_v12  ;;  %v1554_v6 = vadd.f32 %v1553_v4, %v8604_v15  ;;  %v1164_v9 = vpop.f32.mrb[26].mxu1  ;;  %v1555_v11 = vpop.f32.mrb[58].mxu0 }
 0x352   : > { %v1203_v16 = vmax.f32 %v1161_v1, 0.0  ;;  %v1594_v17 = vmax.f32 %v1552_v2, 0.0  ;;  %v1165_v18 = vadd.f32 %v1164_v9, %v8595_v8  ;;  %v1556_v21 = vadd.f32 %v1555_v11, %v8598_v10  ;;  %v1166_v22 = vpop.f32.mrb[27].mxu1  ;;  %v1557_v23 = vpop.f32.mrb[59].mxu0 }
 0x353   : > { %v1204_v24 = vmax.f32 %v1163_v5, 0.0  ;;  %v1595_v25 = vmax.f32 %v1554_v6, 0.0  ;;  %v1167_v28 = vadd.f32 %v1166_v22, %v8601_v12  ;;  %v1558_v32 = vadd.f32 %v1557_v23, %v8604_v15 }
 0x354   : > { %v1221_v37 = vmax.f32 %v1219_v56, %v1203_v16  ;;  %v1612_v38 = vmax.f32 %v1610_v57, %v1594_v17  ;;  %v1205_v33 = vmax.f32 %v1165_v18, 0.0  ;;  %v1596_v36 = vmax.f32 %v1556_v21, 0.0 }
 0x355   : > { %v1242_v39 = vmax.f32 %v1240_v49, %v1204_v24  ;;  %v1633_v40 = vmax.f32 %v1631_v14, %v1595_v25  ;;  %v1206_v41 = vmax.f32 %v1167_v28, 0.0  ;;  %v1597_v42 = vmax.f32 %v1558_v32, 0.0 }
 0x356   : > { %v1222_v43 = vmax.f32 %v1220_v60, %v1205_v33  ;;  %v1613_v30 = vmax.f32 %v1611_v59, %v1596_v36  ;;  %v8667_v60 = vrot.slane %v1676_v45, %v8455_v27  ;;  %v8670_v59 = vrot.slane %v2067_v46, %v8455_v27 }
 0x357   : > { %v1243_v47 = vmax.f32 %v1241_v61, %v1206_v41  ;;  %v1634_v52 = vmax.f32 %v1632_v62, %v1597_v42  ;;  %v1170_v31 = vpop.f32.mrb[28].mxu1  ;;  %v1561_v53 = vpop.f32.mrb[60].mxu0  ;;  %v8680_v25 = vrot.slane %v2067_v46, %v8458_v29 }
 0x358   : > { %v1171_v54 = vadd.f32 %v1170_v31, %v8595_v8  ;;  %v1562_v55 = vadd.f32 %v1561_v53, %v8598_v10  ;;  %v1172_v56 = vpop.f32.mrb[29].mxu1  ;;  %v1563_v57 = vpop.f32.mrb[61].mxu0 }
 0x359   : > { %v1173_v51 = vadd.f32 %v1172_v56, %v8601_v12  ;;  %v1564_v49 = vadd.f32 %v1563_v57, %v8604_v15  ;;  %v1174_v14 = vpop.f32.mrb[30].mxu1  ;;  %v1565_v20 = vpop.f32.mrb[62].mxu0 }
 0x35a   : > { %v1207_v61 = vmax.f32 %v1171_v54, 0.0  ;;  %v1598_v62 = vmax.f32 %v1562_v55, 0.0  ;;  %v1175_v35 = vadd.f32 %v1174_v14, %v8595_v8  ;;  %v1566_v63 = vadd.f32 %v1565_v20, %v8598_v10  ;;  %v1176_v1 = vpop.f32.mrb[31].mxu1  ;;  %v1567_v2 = vpop.f32.mrb[63].mxu0 }
 0x35b   : > { %v1208_v3 = vmax.f32 %v1173_v51, 0.0  ;;  %v1599_v4 = vmax.f32 %v1564_v49, 0.0  ;;  %v1177_v5 = vadd.f32 %v1176_v1, %v8601_v12  ;;  %v1568_v6 = vadd.f32 %v1567_v2, %v8604_v15 }
 0x35c   : > { %v1223_v9 = vmax.f32 %v1221_v37, %v1207_v61  ;;  %v1614_v11 = vmax.f32 %v1612_v38, %v1598_v62  ;;  %v1209_v16 = vmax.f32 %v1175_v35, 0.0  ;;  %v1600_v17 = vmax.f32 %v1566_v63, 0.0 }
 0x35d   : > { %v1244_v18 = vmax.f32 %v1242_v39, %v1208_v3  ;;  %v1635_v21 = vmax.f32 %v1633_v40, %v1599_v4  ;;  %v1210_v22 = vmax.f32 %v1177_v5, 0.0  ;;  %v1601_v23 = vmax.f32 %v1568_v6, 0.0 }
 0x35e   : > { %v1224_v24 = vmax.f32 %v1222_v43, %v1209_v16  ;;  %v1615_v8 = vmax.f32 %v1613_v30, %v1600_v17  ;;  %v8677_v10 = vrot.slane %v1676_v45, %v8458_v29 }
 0x35f   : > { %v1245_v28 = vmax.f32 %v1243_v47, %v1210_v22  ;;  %v1636_v12 = vmax.f32 %v1634_v52, %v1601_v23  ;;  %v1882_v32 = vpop.f32.mrb[32].mxu1 }
 0x360   : > { %v1225_v15 = vmax.f32 %v1223_v9, %v1224_v24  ;;  %v8682_v37 = vmax.f32 %v1614_v11, %v1615_v8  ;;  %v1883_v38 = vadd.f32 %v1882_v32, %v8667_v60  ;;  %v2273_v33 = vpop.f32.mrb[64].mxu0  ;;  %v1884_v36 = vpop.f32.mrb[33].mxu1 }
 0x361   : > { %v1246_v39 = vmax.f32 %v1244_v18, %v1245_v28  ;;  %v1637_v40 = vmax.f32 %v1635_v21, %v1636_v12  ;;  %v2275_v41 = vpop.f32.mrb[65].mxu0  ;;  %v1886_v42 = vpop.f32.mrb[34].mxu1  ;;  %v2274_v30 = vadd.f32 %v2273_v33, %v8670_v59  ;;  %v1885_v45 = vadd.f32 %v1884_v36, %v8677_v10 }
 0x362   : > { %v1226_v43 = vrot.slane %v1225_v15, 4  ;;  %v2276_v46 = vadd.f32 %v2275_v41, %v8680_v25  ;;  %v2277_v47 = vpop.f32.mrb[66].mxu0  ;;  %v1888_v52 = vpop.f32.mrb[35].mxu1  ;;  %v1961_v56 = vmax.f32 %v1883_v38, 0.0  ;;  %v1887_v57 = vadd.f32 %v1886_v42, %v8667_v60 }
 0x363   : > { %v1247_v31 = vrot.slane %v1246_v39, 4  ;;  %v1638_v53 = vrot.slane %v1637_v40, 4  ;;  %v2279_v54 = vpop.f32.mrb[67].mxu0  ;;  %v2278_v14 = vadd.f32 %v2277_v47, %v8670_v59  ;;  %v1889_v20 = vadd.f32 %v1888_v52, %v8677_v10 }
 0x364   : > { %v1227_v55 = vmax.f32 %v1225_v15, %v1226_v43  ;;  %v2352_v62 = vmax.f32 %v2274_v30, 0.0  ;;  %v1962_v35 = vmax.f32 %v1885_v45, 0.0  ;;  %v2353_v63 = vmax.f32 %v2276_v46, 0.0 }
 0x365   : > { %v1248_v51 = vmax.f32 %v1246_v39, %v1247_v31  ;;  %v1639_v49 = vmax.f32 %v1637_v40, %v1638_v53  ;;  %v1963_v1 = vmax.f32 %v1887_v57, 0.0  ;;  %v2280_v2 = vadd.f32 %v2279_v54, %v8680_v25 }
 0x366   : > { %v1228_v61 = vrot.slane %v1227_v55, 2  ;;  %v2354_v9 = vmax.f32 %v2278_v14, 0.0  ;;  %v1964_v11 = vmax.f32 %v1889_v20, 0.0 }
 0x367   : > { %v1892_v3 = vpop.f32.mrb[36].mxu1  ;;  %v1249_v4 = vrot.slane %v1248_v51, 2  ;;  %v1640_v5 = vrot.slane %v1639_v49, 2 }
 0x368   : > { %v1229_v6 = vmax.f32 %v1227_v55, %v1228_v61  ;;  %v1893_v16 = vadd.f32 %v1892_v3, %v8667_v60  ;;  %v2283_v17 = vpop.f32.mrb[68].mxu0  ;;  %v1894_v18 = vpop.f32.mrb[37].mxu1 }
 0x369   : > { %v2284_v21 = vadd.f32 %v2283_v17, %v8670_v59  ;;  %v1895_v22 = vadd.f32 %v1894_v18, %v8677_v10  ;;  %v2285_v23 = vpop.f32.mrb[69].mxu0  ;;  %v1896_v24 = vpop.f32.mrb[38].mxu1  ;;  %v1250_v8 = vmax.f32 %v1248_v51, %v1249_v4  ;;  %v1641_v28 = vmax.f32 %v1639_v49, %v1640_v5 }
 0x36a   : > { %v1230_v12 = vrot.slane %v1229_v6, 1  ;;  %v1965_v32 = vmax.f32 %v1893_v16, 0.0  ;;  %v2286_v15 = vadd.f32 %v2285_v23, %v8680_v25  ;;  %v1897_v38 = vadd.f32 %v1896_v24, %v8667_v60  ;;  %v2287_v33 = vpop.f32.mrb[70].mxu0  ;;  %v1898_v36 = vpop.f32.mrb[39].mxu1  ;;  %v7074_v24 = vld [vmem:[#allocation13 + $0x200] ss:$16 sps:$4 sm:$0xff]  }
 0x36b   : > { %v2356_v39 = vmax.f32 %v2284_v21, 0.0  ;;  %v1966_v40 = vmax.f32 %v1895_v22, 0.0  ;;  %v2288_v41 = vadd.f32 %v2287_v33, %v8670_v59  ;;  %v1899_v42 = vadd.f32 %v1898_v36, %v8677_v10  ;;  %v2289_v43 = vpop.f32.mrb[71].mxu0  ;;  %v7077_v36 = vld [vmem:[#allocation13 + $0x208] ss:$16 sps:$4 sm:$0xff]  }
 0x36c   : > { %v1231_v30 = vmax.f32 %v1229_v6, %v1230_v12  ;;  %v1993_v45 = vmax.f32 %v1961_v56, %v1965_v32  ;;  %v2357_v46 = vmax.f32 %v2286_v15, 0.0  ;;  %v1967_v47 = vmax.f32 %v1897_v38, 0.0 }
 0x36d   : > { %v2384_v52 = vmax.f32 %v2352_v62, %v2356_v39  ;;  %v2014_v31 = vmax.f32 %v1962_v35, %v1966_v40  ;;  %v2358_v53 = vmax.f32 %v2288_v41, 0.0  ;;  %v1968_v54 = vmax.f32 %v1899_v42, 0.0 }
 0x36e   : > { %v2405_v55 = vmax.f32 %v2353_v63, %v2357_v46  ;;  %v1994_v57 = vmax.f32 %v1963_v1, %v1967_v47  ;;  %v2290_v51 = vadd.f32 %v2289_v43, %v8680_v25  ;;  %v1251_v61 = vrot.slane %v1250_v8, 1  ;;  %v7082_v47 = vld [vmem:[#allocation13 + $0x224] ss:$16 sps:$4 sm:$0xff]  }
 0x36f   : > { %v2385_v49 = vmax.f32 %v2354_v9, %v2358_v53  ;;  %v2015_v14 = vmax.f32 %v1964_v11, %v1968_v54  ;;  %v1902_v20 = vpop.f32.mrb[40].mxu1  ;;  %v1642_v3 = vrot.slane %v1641_v28, 1  ;;  %v2426_v4 = vpack.c.bf16 %v1231_v30, %v1231_v30  ;;  %v7085_v53 = vld [vmem:[#allocation13 + $0x22c] ss:$16 sps:$4 sm:$0xff]  }
 0x370   : > { %v2355_v5 = vmax.f32 %v2280_v2, 0.0  ;;  %v2359_v16 = vmax.f32 %v2290_v51, 0.0  ;;  %v1903_v56 = vadd.f32 %v1902_v20, %v8667_v60  ;;  %v2293_v6 = vpop.f32.mrb[72].mxu0  ;;  %v1904_v17 = vpop.f32.mrb[41].mxu1  ;;  %v1252_v18 = vmax.f32 %v1250_v8, %v1251_v61 }
 0x371   : > { %v2294_v62 = vadd.f32 %v2293_v6, %v8670_v59  ;;  %v1905_v35 = vadd.f32 %v1904_v17, %v8677_v10  ;;  %v2295_v63 = vpop.f32.mrb[73].mxu0  ;;  %v1906_v1 = vpop.f32.mrb[42].mxu1  ;;  %v1643_v21 = vmax.f32 %v1641_v28, %v1642_v3 }
 0x372   : > { %v2406_v9 = vmax.f32 %v2355_v5, %v2359_v16  ;;  %v1969_v11 = vmax.f32 %v1903_v56, 0.0  ;;  %v2296_v22 = vadd.f32 %v2295_v63, %v8680_v25  ;;  %v1907_v23 = vadd.f32 %v1906_v1, %v8667_v60  ;;  %v2297_v2 = vpop.f32.mrb[74].mxu0  ;;  %v1908_v12 = vpop.f32.mrb[43].mxu1  ;;  %v7080_v5 = vld [vmem:[#allocation13 + $0x220] ss:$16 sps:$4 sm:$0xff]  }
 0x373   : > { %v2360_v32 = vmax.f32 %v2294_v62, 0.0  ;;  %v1970_v15 = vmax.f32 %v1905_v35, 0.0  ;;  %v2298_v38 = vadd.f32 %v2297_v2, %v8670_v59  ;;  %v2427_v33 = vpack.c.bf16 %v1252_v18, %v1252_v18  ;;  %v2299_v39 = vpop.f32.mrb[75].mxu0 }
 0x374   : > { %v1995_v40 = vmax.f32 %v1993_v45, %v1969_v11  ;;  %v2361_v41 = vmax.f32 %v2296_v22, 0.0  ;;  %v1971_v8 = vmax.f32 %v1907_v23, 0.0  ;;  %v1909_v28 = vadd.f32 %v1908_v12, %v8677_v10  ;;  %v7086_v11 = vld [vmem:[#allocation13 + $0x240] ss:$16 sps:$4 sm:$0xff]  }
 0x375   : > { %v2386_v42 = vmax.f32 %v2384_v52, %v2360_v32  ;;  %v2016_v43 = vmax.f32 %v2014_v31, %v1970_v15  ;;  %v2362_v30 = vmax.f32 %v2298_v38, 0.0  ;;  %4002 = vmatprep.mubr.bf16.mxu1 %v2427_v33  ;;  %4166 = vmatprep.mubr.bf16.mxu0 %v2427_v33  ;;  %v2300_v46 = vadd.f32 %v2299_v39, %v8680_v25  ;;  %v7083_v52 = vld [vmem:[#allocation13 + $0x228] ss:$16 sps:$4 sm:$0xff]   ;;  %v7094_v39 = vld [vmem:[#allocation13 + $0x264] ss:$16 sps:$4 sm:$0xff]  }
 0x376   : > { %v2407_v54 = vmax.f32 %v2405_v55, %v2361_v41  ;;  %v1996_v51 = vmax.f32 %v1994_v57, %v1971_v8  ;;  %v1972_v20 = vmax.f32 %v1909_v28, 0.0  ;;  %4003 = vmatmul.mubr.bf16.vlgmr.msra.gmra.mrb[64].mxu1 %v2426_v4  ;;  %4167 = vmatmul.mubr.bf16.vlgmr.msra.gmra.mrb[96].mxu0 %v2426_v4  ;;  %v2429_v61 = vpack.c.bf16 %v1643_v21, %v1643_v21  ;;  %v7088_v55 = vld [vmem:[#allocation13 + $0x244] ss:$16 sps:$4 sm:$0xff]   ;;  %v7091_v57 = vld [vmem:[#allocation13 + $0x24c] ss:$16 sps:$4 sm:$0xff]  }
 0x377   : > { %v2387_v45 = vmax.f32 %v2385_v49, %v2362_v30  ;;  %v2363_v3 = vmax.f32 %v2300_v46, 0.0  ;;  %4012 = vmatpush1.bf16.msra.mxu1 %v7074_v24  ;;  %4176 = vmatpush1.bf16.msra.mxu0 %v7077_v36  ;;  %v1912_v31 = vpop.f32.mrb[44].mxu1  ;;  %v7089_v24 = vld [vmem:[#allocation13 + $0x248] ss:$16 sps:$4 sm:$0xff]   ;;  %v7097_v41 = vld [vmem:[#allocation13 + $0x26c] ss:$16 sps:$4 sm:$0xff]  }
 0x378   : > { %v2017_v16 = vmax.f32 %v2015_v14, %v1972_v20  ;;  %4043 = vmatprep.mubr.bf16.mxu1 %v2429_v61  ;;  %4207 = vmatprep.mubr.bf16.mxu0 %v2429_v61  ;;  %v1913_v56 = vadd.f32 %v1912_v31, %v8667_v60  ;;  %v2303_v6 = vpop.f32.mrb[76].mxu0  ;;  %v1914_v17 = vpop.f32.mrb[45].mxu1 }
 0x379   : > { %v2408_v62 = vmax.f32 %v2406_v9, %v2363_v3  ;;  %4013 = vmatprep.subr.bf16.mxu1 %v7082_v47  ;;  %4177 = vmatprep.subr.bf16.mxu0 %v7085_v53  ;;  %v2304_v49 = vadd.f32 %v2303_v6, %v8670_v59  ;;  %v1915_v4 = vadd.f32 %v1914_v17, %v8677_v10  ;;  %v2305_v35 = vpop.f32.mrb[77].mxu0  ;;  %v1916_v63 = vpop.f32.mrb[46].mxu1  ;;  %v7103_v17 = vld [vmem:[#allocation13 + $0x28c] ss:$16 sps:$4 sm:$0xff]  }
 0x37a   : > { %v1973_v1 = vmax.f32 %v1913_v56, 0.0  ;;  %v2306_v14 = vadd.f32 %v2305_v35, %v8680_v25  ;;  %v1917_v18 = vadd.f32 %v1916_v63, %v8667_v60  ;;  %v2307_v21 = vpop.f32.mrb[78].mxu0  ;;  %v1918_v22 = vpop.f32.mrb[47].mxu1 }
 0x37b   : > { %4014 = vmatpush1.bf16.msra.mxu1 %v7080_v5  ;;  %4178 = vmatpush1.bf16.msra.mxu0 %v7083_v52  ;;  %v2364_v23 = vmax.f32 %v2304_v49, 0.0  ;;  %v1974_v9 = vmax.f32 %v1915_v4, 0.0  ;;  %v2308_v2 = vadd.f32 %v2307_v21, %v8670_v59  ;;  %v1919_v12 = vadd.f32 %v1918_v22, %v8677_v10  ;;  %v2309_v32 = vpop.f32.mrb[79].mxu0  ;;  %v7095_v5 = vld [vmem:[#allocation13 + $0x268] ss:$16 sps:$4 sm:$0xff]  }
 0x37c   : > { %v1997_v15 = vmax.f32 %v1995_v40, %v1973_v1  ;;  %v2365_v38 = vmax.f32 %v2306_v14, 0.0  ;;  %v1975_v33 = vmax.f32 %v1917_v18, 0.0  ;;  %4015 = vmatprep.subr.bf16.mxu1 %v7088_v55  ;;  %4179 = vmatprep.subr.bf16.mxu0 %v7091_v57  ;;  %v2310_v36 = vadd.f32 %v2309_v32, %v8680_v25  ;;  %v7092_v40 = vld [vmem:[#allocation13 + $0x260] ss:$16 sps:$4 sm:$0xff]   ;;  %v7101_v18 = vld [vmem:[#allocation13 + $0x288] ss:$16 sps:$4 sm:$0xff]  }
 0x37d   : > { %v2388_v8 = vmax.f32 %v2386_v42, %v2364_v23  ;;  %v2018_v28 = vmax.f32 %v2016_v43, %v1974_v9  ;;  %v2366_v30 = vmax.f32 %v2308_v2, 0.0  ;;  %v1976_v46 = vmax.f32 %v1919_v12, 0.0  ;;  %v7100_v43 = vld [vmem:[#allocation13 + $0x284] ss:$16 sps:$4 sm:$0xff]   ;;  %v7098_v4 = vld [vmem:[#allocation13 + $0x280] ss:$16 sps:$4 sm:$0xff]  }
 0x37e   : > { %v2409_v47 = vmax.f32 %v2407_v54, %v2365_v38  ;;  %v1998_v53 = vmax.f32 %v1996_v51, %v1975_v33  ;;  %v2367_v20 = vmax.f32 %v2310_v36, 0.0  ;;  %v7109_v12 = vld [vmem:[#allocation13 + $0x2ac] ss:$16 sps:$4 sm:$0xff]  }
 0x37f   : > { %v2389_v61 = vmax.f32 %v2387_v45, %v2366_v30  ;;  %v2019_v3 = vmax.f32 %v2017_v16, %v1976_v46  ;;  %4016 = vmatpush1.bf16.msra.mxu1 %v7086_v11  ;;  %4180 = vmatpush1.bf16.msra.mxu0 %v7089_v24  ;;  %v1922_v52 = vpop.f32.mrb[48].mxu1  ;;  %v7106_v24 = vld [vmem:[#allocation13 + $0x2a4] ss:$16 sps:$4 sm:$0xff]  }
 0x380   : > { %v2410_v31 = vmax.f32 %v2408_v62, %v2367_v20  ;;  %4017 = vmatprep.subr.bf16.mxu1 %v7094_v39  ;;  %4181 = vmatprep.subr.bf16.mxu0 %v7097_v41  ;;  %v1923_v56 = vadd.f32 %v1922_v52, %v8667_v60  ;;  %v2313_v6 = vpop.f32.mrb[80].mxu0  ;;  %v1924_v42 = vpop.f32.mrb[49].mxu1 }
 0x381   : > { %v2314_v54 = vadd.f32 %v2313_v6, %v8670_v59  ;;  %v1925_v51 = vadd.f32 %v1924_v42, %v8677_v10  ;;  %v2315_v45 = vpop.f32.mrb[81].mxu0  ;;  %v1926_v16 = vpop.f32.mrb[50].mxu1  ;;  %v7115_v42 = vld [vmem:[#allocation13 + $0x2cc] ss:$16 sps:$4 sm:$0xff]  }
 0x382   : > { %v1977_v55 = vmax.f32 %v1923_v56, 0.0  ;;  %v2316_v57 = vadd.f32 %v2315_v45, %v8680_v25  ;;  %v1927_v49 = vadd.f32 %v1926_v16, %v8667_v60  ;;  %v2317_v62 = vpop.f32.mrb[82].mxu0  ;;  %v1928_v35 = vpop.f32.mrb[51].mxu1 }
 0x383   : > { %4018 = vmatpush1.bf16.msra.mxu1 %v7092_v40  ;;  %4182 = vmatpush1.bf16.msra.mxu0 %v7095_v5  ;;  %v2368_v63 = vmax.f32 %v2314_v54, 0.0  ;;  %v1978_v1 = vmax.f32 %v1925_v51, 0.0  ;;  %v2318_v14 = vadd.f32 %v2317_v62, %v8670_v59  ;;  %v1929_v21 = vadd.f32 %v1928_v35, %v8677_v10  ;;  %v2319_v11 = vpop.f32.mrb[83].mxu0  ;;  %v7107_v40 = vld [vmem:[#allocation13 + $0x2a8] ss:$16 sps:$4 sm:$0xff]  }
 0x384   : > { %v1999_v22 = vmax.f32 %v1997_v15, %v1977_v55  ;;  %v2369_v23 = vmax.f32 %v2316_v57, 0.0  ;;  %v1979_v9 = vmax.f32 %v1927_v49, 0.0  ;;  %4019 = vmatprep.subr.bf16.mxu1 %v7100_v43  ;;  %4183 = vmatprep.subr.bf16.mxu0 %v7103_v17  ;;  %v2320_v2 = vadd.f32 %v2319_v11, %v8680_v25  ;;  %v7104_v15 = vld [vmem:[#allocation13 + $0x2a0] ss:$16 sps:$4 sm:$0xff]   ;;  %v7113_v49 = vld [vmem:[#allocation13 + $0x2c8] ss:$16 sps:$4 sm:$0xff]  }
 0x385   : > { %v2390_v32 = vmax.f32 %v2388_v8, %v2368_v63  ;;  %v2020_v38 = vmax.f32 %v2018_v28, %v1978_v1  ;;  %v2370_v33 = vmax.f32 %v2318_v14, 0.0  ;;  %v1980_v36 = vmax.f32 %v1929_v21, 0.0  ;;  %v7112_v28 = vld [vmem:[#allocation13 + $0x2c4] ss:$16 sps:$4 sm:$0xff]   ;;  %v7110_v51 = vld [vmem:[#allocation13 + $0x2c0] ss:$16 sps:$4 sm:$0xff]  }
 0x386   : > { %v2411_v39 = vmax.f32 %v2409_v47, %v2369_v23  ;;  %v2000_v41 = vmax.f32 %v1998_v53, %v1979_v9  ;;  %v2371_v30 = vmax.f32 %v2320_v2, 0.0  ;;  %v7121_v21 = vld [vmem:[#allocation13 + $0x2ec] ss:$16 sps:$4 sm:$0xff]  }
 0x387   : > { %v2391_v46 = vmax.f32 %v2389_v61, %v2370_v33  ;;  %v2021_v20 = vmax.f32 %v2019_v3, %v1980_v36  ;;  %4020 = vmatpush1.bf16.msra.mxu1 %v7098_v4  ;;  %4184 = vmatpush1.bf16.msra.mxu0 %v7101_v18  ;;  %v1932_v5 = vpop.f32.mrb[52].mxu1  ;;  %v7118_v18 = vld [vmem:[#allocation13 + $0x2e4] ss:$16 sps:$4 sm:$0xff]  }
 0x388   : > { %v2412_v52 = vmax.f32 %v2410_v31, %v2371_v30  ;;  %4021 = vmatprep.subr.bf16.mxu1 %v7106_v24  ;;  %4185 = vmatprep.subr.bf16.mxu0 %v7109_v12  ;;  %v1933_v56 = vadd.f32 %v1932_v5, %v8667_v60  ;;  %v2323_v6 = vpop.f32.mrb[84].mxu0  ;;  %v1934_v8 = vpop.f32.mrb[53].mxu1 }
 0x389   : > { %v2324_v47 = vadd.f32 %v2323_v6, %v8670_v59  ;;  %v1935_v53 = vadd.f32 %v1934_v8, %v8677_v10  ;;  %v2325_v61 = vpop.f32.mrb[85].mxu0  ;;  %v1936_v3 = vpop.f32.mrb[54].mxu1  ;;  %v7127_v8 = vld [vmem:[#allocation13 + $0x30c] ss:$16 sps:$4 sm:$0xff]  }
 0x38a   : > { %v1981_v43 = vmax.f32 %v1933_v56, 0.0  ;;  %v2326_v17 = vadd.f32 %v2325_v61, %v8680_v25  ;;  %v1937_v54 = vadd.f32 %v1936_v3, %v8667_v60  ;;  %v2327_v31 = vpop.f32.mrb[86].mxu0  ;;  %v1938_v45 = vpop.f32.mrb[55].mxu1 }
 0x38b   : > { %4022 = vmatpush1.bf16.msra.mxu1 %v7104_v15  ;;  %4186 = vmatpush1.bf16.msra.mxu0 %v7107_v40  ;;  %v2372_v16 = vmax.f32 %v2324_v47, 0.0  ;;  %v1982_v55 = vmax.f32 %v1935_v53, 0.0  ;;  %v2328_v57 = vadd.f32 %v2327_v31, %v8670_v59  ;;  %v1939_v62 = vadd.f32 %v1938_v45, %v8677_v10  ;;  %v2329_v4 = vpop.f32.mrb[87].mxu0  ;;  %v7119_v15 = vld [vmem:[#allocation13 + $0x2e8] ss:$16 sps:$4 sm:$0xff]  }
 0x38c   : > { %v2001_v35 = vmax.f32 %v1999_v22, %v1981_v43  ;;  %v2373_v63 = vmax.f32 %v2326_v17, 0.0  ;;  %v1983_v1 = vmax.f32 %v1937_v54, 0.0  ;;  %4023 = vmatprep.subr.bf16.mxu1 %v7112_v28  ;;  %4187 = vmatprep.subr.bf16.mxu0 %v7115_v42  ;;  %v2330_v14 = vadd.f32 %v2329_v4, %v8680_v25  ;;  %v7116_v22 = vld [vmem:[#allocation13 + $0x2e0] ss:$16 sps:$4 sm:$0xff]   ;;  %v7125_v54 = vld [vmem:[#allocation13 + $0x308] ss:$16 sps:$4 sm:$0xff]  }
 0x38d   : > { %v2392_v11 = vmax.f32 %v2390_v32, %v2372_v16  ;;  %v2022_v23 = vmax.f32 %v2020_v38, %v1982_v55  ;;  %v2374_v9 = vmax.f32 %v2328_v57, 0.0  ;;  %v1984_v2 = vmax.f32 %v1939_v62, 0.0  ;;  %v7124_v38 = vld [vmem:[#allocation13 + $0x304] ss:$16 sps:$4 sm:$0xff]   ;;  %v7122_v53 = vld [vmem:[#allocation13 + $0x300] ss:$16 sps:$4 sm:$0xff]  }
 0x38e   : > { %v2413_v24 = vmax.f32 %v2411_v39, %v2373_v63  ;;  %v2002_v12 = vmax.f32 %v2000_v41, %v1983_v1  ;;  %v2375_v33 = vmax.f32 %v2330_v14, 0.0  ;;  %v7133_v62 = vld [vmem:[#allocation13 + $0x32c] ss:$16 sps:$4 sm:$0xff]  }
 0x38f   : > { %v2393_v36 = vmax.f32 %v2391_v46, %v2374_v9  ;;  %v2023_v30 = vmax.f32 %v2021_v20, %v1984_v2  ;;  %4024 = vmatpush1.bf16.msra.mxu1 %v7110_v51  ;;  %4188 = vmatpush1.bf16.msra.mxu0 %v7113_v49  ;;  %v1942_v40 = vpop.f32.mrb[56].mxu1  ;;  %v7130_v49 = vld [vmem:[#allocation13 + $0x324] ss:$16 sps:$4 sm:$0xff]  }
 0x390   : > { %v2414_v5 = vmax.f32 %v2412_v52, %v2375_v33  ;;  %4025 = vmatprep.subr.bf16.mxu1 %v7118_v18  ;;  %4189 = vmatprep.subr.bf16.mxu0 %v7121_v21  ;;  %v1943_v56 = vadd.f32 %v1942_v40, %v8667_v60  ;;  %v2333_v6 = vpop.f32.mrb[88].mxu0  ;;  %v1944_v32 = vpop.f32.mrb[57].mxu1 }
 0x391   : > { %v2334_v39 = vadd.f32 %v2333_v6, %v8670_v59  ;;  %v1945_v41 = vadd.f32 %v1944_v32, %v8677_v10  ;;  %v2335_v46 = vpop.f32.mrb[89].mxu0  ;;  %v1946_v20 = vpop.f32.mrb[58].mxu1  ;;  %v7139_v32 = vld [vmem:[#allocation13 + $0x34c] ss:$16 sps:$4 sm:$0xff]  }
 0x392   : > { %v1985_v28 = vmax.f32 %v1943_v56, 0.0  ;;  %v2336_v42 = vadd.f32 %v2335_v46, %v8680_v25  ;;  %v1947_v47 = vadd.f32 %v1946_v20, %v8667_v60  ;;  %v2337_v52 = vpop.f32.mrb[90].mxu0  ;;  %v1948_v61 = vpop.f32.mrb[59].mxu1  ;;  %v7134_v46 = vld [vmem:[#allocation13 + $0x340] ss:$16 sps:$4 sm:$0xff]  }
 0x393   : > { %4026 = vmatpush1.bf16.msra.mxu1 %v7116_v22  ;;  %4190 = vmatpush1.bf16.msra.mxu0 %v7119_v15  ;;  %v2376_v3 = vmax.f32 %v2334_v39, 0.0  ;;  %v1986_v43 = vmax.f32 %v1945_v41, 0.0  ;;  %v2338_v17 = vadd.f32 %v2337_v52, %v8670_v59  ;;  %v1949_v31 = vadd.f32 %v1948_v61, %v8677_v10  ;;  %v2339_v51 = vpop.f32.mrb[91].mxu0  ;;  %v7131_v22 = vld [vmem:[#allocation13 + $0x328] ss:$16 sps:$4 sm:$0xff]  }
 0x394   : > { %v2003_v45 = vmax.f32 %v2001_v35, %v1985_v28  ;;  %v2377_v16 = vmax.f32 %v2336_v42, 0.0  ;;  %v1987_v55 = vmax.f32 %v1947_v47, 0.0  ;;  %4027 = vmatprep.subr.bf16.mxu1 %v7124_v38  ;;  %4191 = vmatprep.subr.bf16.mxu0 %v7127_v8  ;;  %v2340_v57 = vadd.f32 %v2339_v51, %v8680_v25  ;;  %v7128_v35 = vld [vmem:[#allocation13 + $0x320] ss:$16 sps:$4 sm:$0xff]   ;;  %v7137_v52 = vld [vmem:[#allocation13 + $0x348] ss:$16 sps:$4 sm:$0xff]  }
 0x395   : > { %v2394_v4 = vmax.f32 %v2392_v11, %v2376_v3  ;;  %v2024_v63 = vmax.f32 %v2022_v23, %v1986_v43  ;;  %v2378_v1 = vmax.f32 %v2338_v17, 0.0  ;;  %v1988_v14 = vmax.f32 %v1949_v31, 0.0  ;;  %v7136_v23 = vld [vmem:[#allocation13 + $0x344] ss:$16 sps:$4 sm:$0xff]   ;;  %v7145_v31 = vld [vmem:[#allocation13 + $0x36c] ss:$16 sps:$4 sm:$0xff]  }
 0x396   : > { %v2415_v18 = vmax.f32 %v2413_v24, %v2377_v16  ;;  %v2004_v21 = vmax.f32 %v2002_v12, %v1987_v55  ;;  %v2379_v9 = vmax.f32 %v2340_v57, 0.0  ;;  %v1617_v38 = vrot.slane %v8682_v37, 4 }
 0x397   : > { %v2395_v2 = vmax.f32 %v2393_v36, %v2378_v1  ;;  %v2025_v33 = vmax.f32 %v2023_v30, %v1988_v14  ;;  %4028 = vmatpush1.bf16.msra.mxu1 %v7122_v53  ;;  %4192 = vmatpush1.bf16.msra.mxu0 %v7125_v54  ;;  %v1952_v15 = vpop.f32.mrb[60].mxu1  ;;  %v7142_v54 = vld [vmem:[#allocation13 + $0x364] ss:$16 sps:$4 sm:$0xff]  }
 0x398   : > { %v2416_v40 = vmax.f32 %v2414_v5, %v2379_v9  ;;  %4029 = vmatprep.subr.bf16.mxu1 %v7130_v49  ;;  %4193 = vmatprep.subr.bf16.mxu0 %v7133_v62  ;;  %v1953_v56 = vadd.f32 %v1952_v15, %v8667_v60  ;;  %v2343_v6 = vpop.f32.mrb[92].mxu0  ;;  %v1954_v11 = vpop.f32.mrb[61].mxu1  ;;  %v1618_v9 = vmax.f32 %v8682_v37, %v1617_v38  ;;  %v7149_v15 = vld [vmem:[#allocation13 + $0x388] ss:$16 sps:$4 sm:$0xff]   ;;  %v7154_v37 = vld [vmem:[#allocation13 + $0x3a4] ss:$16 sps:$4 sm:$0xff]  }
 0x399   : > { %v2344_v24 = vadd.f32 %v2343_v6, %v8670_v59  ;;  %v1955_v12 = vadd.f32 %v1954_v11, %v8677_v10  ;;  %v2345_v36 = vpop.f32.mrb[93].mxu0  ;;  %v1956_v30 = vpop.f32.mrb[62].mxu1  ;;  %v7157_v6 = vld [vmem:[#allocation13 + $0x3ac] ss:$16 sps:$4 sm:$0xff]   ;;  %v7152_v11 = vld [vmem:[#allocation13 + $0x3a0] ss:$16 sps:$4 sm:$0xff]  }
 0x39a   : > { %v1989_v8 = vmax.f32 %v1953_v56, 0.0  ;;  %v2346_v39 = vadd.f32 %v2345_v36, %v8680_v25  ;;  %v1957_v5 = vadd.f32 %v1956_v30, %v8667_v60  ;;  %v2347_v41 = vpop.f32.mrb[94].mxu0  ;;  %v1958_v20 = vpop.f32.mrb[63].mxu1  ;;  %v1619_v56 = vrot.slane %v1618_v9, 2  ;;  %v7163_v36 = vld [vmem:[#allocation13 + $0x3cc] ss:$16 sps:$4 sm:$0xff]  }
 0x39b   : > { %4030 = vmatpush1.bf16.msra.mxu1 %v7128_v35  ;;  %4194 = vmatpush1.bf16.msra.mxu0 %v7131_v22  ;;  %v2380_v28 = vmax.f32 %v2344_v24, 0.0  ;;  %v1990_v42 = vmax.f32 %v1955_v12, 0.0  ;;  %v2348_v47 = vadd.f32 %v2347_v41, %v8670_v59  ;;  %v1959_v53 = vadd.f32 %v1958_v20, %v8677_v10  ;;  %v2349_v61 = vpop.f32.mrb[95].mxu0  ;;  %v7140_v10 = vld [vmem:[#allocation13 + $0x360] ss:$16 sps:$4 sm:$0xff]  }
 0x39c   : > { %v2005_v3 = vmax.f32 %v2003_v45, %v1989_v8  ;;  %v2381_v43 = vmax.f32 %v2346_v39, 0.0  ;;  %v1991_v17 = vmax.f32 %v1957_v5, 0.0  ;;  %4031 = vmatprep.subr.bf16.mxu1 %v7136_v23  ;;  %4195 = vmatprep.subr.bf16.mxu0 %v7139_v32  ;;  %v2350_v60 = vadd.f32 %v2349_v61, %v8680_v25  ;;  %v7143_v45 = vld [vmem:[#allocation13 + $0x368] ss:$16 sps:$4 sm:$0xff]   ;;  %v7160_v12 = vld [vmem:[#allocation13 + $0x3c4] ss:$16 sps:$4 sm:$0xff]  }
 0x39d   : > { %v2396_v51 = vmax.f32 %v2394_v4, %v2380_v28  ;;  %v2026_v16 = vmax.f32 %v2024_v63, %v1990_v42  ;;  %v2382_v55 = vmax.f32 %v2348_v47, 0.0  ;;  %v1992_v57 = vmax.f32 %v1959_v53, 0.0  ;;  %v7148_v4 = vld [vmem:[#allocation13 + $0x384] ss:$16 sps:$4 sm:$0xff]   ;;  %v7151_v63 = vld [vmem:[#allocation13 + $0x38c] ss:$16 sps:$4 sm:$0xff]  }
 0x39e   : > { %v2417_v49 = vmax.f32 %v2415_v18, %v2381_v43  ;;  %v2006_v62 = vmax.f32 %v2004_v21, %v1991_v17  ;;  %v2383_v59 = vmax.f32 %v2350_v60, 0.0  ;;  %v7155_v23 = vld [vmem:[#allocation13 + $0x3a8] ss:$16 sps:$4 sm:$0xff]   ;;  %v1620_v24 = vmax.f32 %v1618_v9, %v1619_v56  ;;  %v7158_v38 = vld [vmem:[#allocation13 + $0x3c0] ss:$16 sps:$4 sm:$0xff]  }
 0x39f   : > { %v2397_v1 = vmax.f32 %v2395_v2, %v2382_v55  ;;  %v2027_v14 = vmax.f32 %v2025_v33, %v1992_v57  ;;  %4032 = vmatpush1.bf16.msra.mxu1 %v7134_v46  ;;  %4196 = vmatpush1.bf16.msra.mxu0 %v7137_v52  ;;  %v7146_v33 = vld [vmem:[#allocation13 + $0x380] ss:$16 sps:$4 sm:$0xff]   ;;  %v7161_v8 = vld [vmem:[#allocation13 + $0x3c8] ss:$16 sps:$4 sm:$0xff]   ;;  %v7166_v5 = vld [vmem:[#allocation13 + $0x3e4] ss:$16 sps:$4 sm:$0xff]  }
 0x3a0   : > { %v8750_v35 = vmax.f32 %v2005_v3, %v2006_v62  ;;  %v2418_v25 = vmax.f32 %v2416_v40, %v2383_v59  ;;  %4033 = vmatprep.subr.bf16.mxu1 %v7142_v54  ;;  %4197 = vmatprep.subr.bf16.mxu0 %v7145_v31  ;;  %v7169_v41 = vld [vmem:[#allocation13 + $0x3ec] ss:$16 sps:$4 sm:$0xff]   ;;  %v1621_v46 = vrot.slane %v1620_v24, 1  ;;  %v7164_v20 = vld [vmem:[#allocation13 + $0x3e0] ss:$16 sps:$4 sm:$0xff]  }
 0x3a1   : > { %v8752_v22 = vmax.f32 %v2396_v51, %v2397_v1  ;;  %v2028_v18 = vmax.f32 %v2026_v16, %v2027_v14  ;;  %v7167_v28 = vld [vmem:[#allocation13 + $0x3e8] ss:$16 sps:$4 sm:$0xff]   ;;  %v7172_v52 = vld [vmem:[#allocation13 + $0x404] ss:$16 sps:$4 sm:$0xff]   ;;  %v7175_v53 = vld [vmem:[#allocation13 + $0x40c] ss:$16 sps:$4 sm:$0xff]  }
 0x3a2   : > { %v8754_v21 = vmax.f32 %v2417_v49, %v2418_v25  ;;  %v1622_v47 = vmax.f32 %v1620_v24, %v1621_v46  ;;  %v7170_v61 = vld [vmem:[#allocation13 + $0x400] ss:$16 sps:$4 sm:$0xff]   ;;  %v7173_v17 = vld [vmem:[#allocation13 + $0x408] ss:$16 sps:$4 sm:$0xff]   ;;  %v7178_v60 = vld [vmem:[#allocation13 + $0x424] ss:$16 sps:$4 sm:$0xff]  }
 0x3a3   : > { %v2029_v2 = vrot.slane %v2028_v18, 4  ;;  %4034 = vmatpush1.bf16.msra.mxu1 %v7140_v10  ;;  %4198 = vmatpush1.bf16.msra.mxu0 %v7143_v45  ;;  %v7181_v54 = vld [vmem:[#allocation13 + $0x42c] ss:$16 sps:$4 sm:$0xff]   ;;  %v7176_v31 = vld [vmem:[#allocation13 + $0x420] ss:$16 sps:$4 sm:$0xff]  }
 0x3a4   : > { %4035 = vmatprep.subr.bf16.mxu1 %v7148_v4  ;;  %4199 = vmatprep.subr.bf16.mxu0 %v7151_v63  ;;  %v2428_v43 = vpack.c.bf16 %v1622_v47, %v1622_v47  ;;  %v7179_v51 = vld [vmem:[#allocation13 + $0x428] ss:$16 sps:$4 sm:$0xff]   ;;  %v7184_v16 = vld [vmem:[#allocation13 + $0x444] ss:$16 sps:$4 sm:$0xff]   ;;  %v7187_v55 = vld [vmem:[#allocation13 + $0x44c] ss:$16 sps:$4 sm:$0xff]  }
 0x3a5   : > { %v2030_v40 = vmax.f32 %v2028_v18, %v2029_v2  ;;  %v7182_v57 = vld [vmem:[#allocation13 + $0x440] ss:$16 sps:$4 sm:$0xff]   ;;  %v7185_v49 = vld [vmem:[#allocation13 + $0x448] ss:$16 sps:$4 sm:$0xff]   ;;  %v7190_v62 = vld [vmem:[#allocation13 + $0x464] ss:$16 sps:$4 sm:$0xff]  }
 0x3a6   : > { %v7193_v59 = vld [vmem:[#allocation13 + $0x46c] ss:$16 sps:$4 sm:$0xff]   ;;  %v7188_v1 = vld [vmem:[#allocation13 + $0x460] ss:$16 sps:$4 sm:$0xff]   ;;  %v7191_v14 = vld [vmem:[#allocation13 + $0x468] ss:$16 sps:$4 sm:$0xff]  }
 0x3a7   : > { %4036 = vmatpush1.bf16.msra.mxu1 %v7146_v33  ;;  %4200 = vmatpush1.bf16.msra.mxu0 %v7149_v15  ;;  %v2031_v32 = vrot.slane %v2030_v40, 2  ;;  %v7196_v10 = vld [vmem:[#allocation13 + $0x484] ss:$16 sps:$4 sm:$0xff]   ;;  %v7199_v45 = vld [vmem:[#allocation13 + $0x48c] ss:$16 sps:$4 sm:$0xff]  }
 0x3a8   : > { %4037 = vmatprep.subr.bf16.mxu1 %v7154_v37  ;;  %4201 = vmatprep.subr.bf16.mxu0 %v7157_v6  ;;  %v7194_v9 = vld [vmem:[#allocation13 + $0x480] ss:$16 sps:$4 sm:$0xff]   ;;  %v7197_v25 = vld [vmem:[#allocation13 + $0x488] ss:$16 sps:$4 sm:$0xff]   ;;  %v7202_v4 = vld [vmem:[#allocation13 + $0x4a4] ss:$16 sps:$4 sm:$0xff]  }
 0x3a9   : > { %v2032_v30 = vmax.f32 %v2030_v40, %v2031_v32  ;;  %v7205_v63 = vld [vmem:[#allocation13 + $0x4ac] ss:$16 sps:$4 sm:$0xff]   ;;  %v7200_v18 = vld [vmem:[#allocation13 + $0x4a0] ss:$16 sps:$4 sm:$0xff]   ;;  %v7203_v2 = vld [vmem:[#allocation13 + $0x4a8] ss:$16 sps:$4 sm:$0xff]  }
 0x3aa   : > { %v7208_v33 = vld [vmem:[#allocation13 + $0x4c4] ss:$16 sps:$4 sm:$0xff]   ;;  %v7211_v15 = vld [vmem:[#allocation13 + $0x4cc] ss:$16 sps:$4 sm:$0xff]   ;;  %v7206_v56 = vld [vmem:[#allocation13 + $0x4c0] ss:$16 sps:$4 sm:$0xff]  }
 0x3ab   : > { %4038 = vmatpush1.bf16.msra.mxu1 %v7152_v11  ;;  %4202 = vmatpush1.bf16.msra.mxu0 %v7155_v23  ;;  %v2033_v39 = vrot.slane %v2032_v30, 1  ;;  %v7209_v37 = vld [vmem:[#allocation13 + $0x4c8] ss:$16 sps:$4 sm:$0xff]   ;;  %v7214_v6 = vld [vmem:[#allocation13 + $0x4e4] ss:$16 sps:$4 sm:$0xff]  }
 0x3ac   : > { %4039 = vmatprep.subr.bf16.mxu1 %v7160_v12  ;;  %4203 = vmatprep.subr.bf16.mxu0 %v7163_v36  ;;  %v7217_v40 = vld [vmem:[#allocation13 + $0x4ec] ss:$16 sps:$4 sm:$0xff]   ;;  %v7212_v11 = vld [vmem:[#allocation13 + $0x4e0] ss:$16 sps:$4 sm:$0xff]   ;;  %v7215_v23 = vld [vmem:[#allocation13 + $0x4e8] ss:$16 sps:$4 sm:$0xff]  }
 0x3ad   : > { %v2034_v42 = vmax.f32 %v2032_v30, %v2033_v39  ;;  %v7220_v32 = vld [vmem:[#allocation13 + $0x504] ss:$16 sps:$4 sm:$0xff]   ;;  %v7223_v24 = vld [vmem:[#allocation13 + $0x50c] ss:$16 sps:$4 sm:$0xff]   ;;  %v7218_v12 = vld [vmem:[#allocation13 + $0x500] ss:$16 sps:$4 sm:$0xff]  }
 0x3ae   : > { %v7221_v36 = vld [vmem:[#allocation13 + $0x508] ss:$16 sps:$4 sm:$0xff]   ;;  %v7226_v30 = vld [vmem:[#allocation13 + $0x524] ss:$16 sps:$4 sm:$0xff]   ;;  %v7230_v46 = vld [vmem:[#allocation13 + $0x540] ss:$16 sps:$4 sm:$0xff]  }
 0x3af   : > { %4040 = vmatpush1.bf16.msra.mxu1 %v7158_v38  ;;  %4204 = vmatpush1.bf16.msra.mxu0 %v7161_v8  ;;  %v2431_v3 = vpack.c.bf16 %v2034_v42, %v2034_v42  ;;  %v7229_v38 = vld [vmem:[#allocation13 + $0x52c] ss:$16 sps:$4 sm:$0xff]   ;;  %v7224_v8 = vld [vmem:[#allocation13 + $0x520] ss:$16 sps:$4 sm:$0xff]   ;;  %v7227_v39 = vld [vmem:[#allocation13 + $0x528] ss:$16 sps:$4 sm:$0xff]  }
 0x3b0   : > { %4041 = vmatprep.subr.bf16.mxu1 %v7166_v5  ;;  %4205 = vmatprep.subr.bf16.mxu0 %v7169_v41  ;;  %v7232_v5 = vld [vmem:[#allocation13 + $0x544] ss:$16 sps:$4 sm:$0xff]   ;;  %v7235_v41 = vld [vmem:[#allocation13 + $0x54c] ss:$16 sps:$4 sm:$0xff]  }
 0x3b1   : > { %v7238_v42 = vld [vmem:[#allocation13 + $0x564] ss:$16 sps:$4 sm:$0xff]   ;;  %v7241_v47 = vld [vmem:[#allocation13 + $0x56c] ss:$16 sps:$4 sm:$0xff]  }
 0x3b3   : > { %4042 = vmatpush1.bf16.msra.mxu1 %v7164_v20  ;;  %4206 = vmatpush1.bf16.msra.mxu0 %v7167_v28  ;;  %v2008_v20 = vrot.slane %v8750_v35, 4  ;;  %v7233_v28 = vld [vmem:[#allocation13 + $0x548] ss:$16 sps:$4 sm:$0xff]  }
 0x3b4   : > { %4052 = vmatprep.subr.bf16.mxu1 %v7172_v52  ;;  %4216 = vmatprep.subr.bf16.mxu0 %v7175_v53  ;;  %v2420_v52 = vrot.slane %v8754_v21, 4  ;;  %v7236_v53 = vld [vmem:[#allocation13 + $0x560] ss:$16 sps:$4 sm:$0xff]  }
 0x3b6   : > { %4044 = vmatmul.mubr.bf16.vlgmr.msra.gmra.mrb[64].mxu1 %v2428_v43  ;;  %4208 = vmatmul.mubr.bf16.vlgmr.msra.gmra.mrb[96].mxu0 %v2428_v43  ;;  %v7244_v43 = vld [vmem:[#allocation13 + $0x584] ss:$16 sps:$4 sm:$0xff]  }
 0x3b7   : > { %4053 = vmatpush1.bf16.msra.mxu1 %v7170_v61  ;;  %4084 = vmatprep.mubr.bf16.mxu1 %v2431_v3  ;;  %v2009_v61 = vmax.f32 %v8750_v35, %v2008_v20  ;;  %v7248_v35 = vld [vmem:[#allocation13 + $0x5a0] ss:$16 sps:$4 sm:$0xff]   ;;  %v7292_v20 = vld [vmem:[#allocation13 + $0x684] ss:$16 sps:$4 sm:$0xff]  }
 0x3b8   : > { %4217 = vmatpush1.bf16.msra.mxu0 %v7173_v17  ;;  %4248 = vmatprep.mubr.bf16.mxu0 %v2431_v3  ;;  %v7239_v3 = vld [vmem:[#allocation13 + $0x568] ss:$16 sps:$4 sm:$0xff]   ;;  %v7247_v17 = vld [vmem:[#allocation13 + $0x58c] ss:$16 sps:$4 sm:$0xff]  }
 0x3b9   : > { %4054 = vmatprep.subr.bf16.mxu1 %v7178_v60  ;;  %4218 = vmatprep.subr.bf16.mxu0 %v7181_v54  ;;  %v2421_v60 = vmax.f32 %v8754_v21, %v2420_v52  ;;  %v7242_v54 = vld [vmem:[#allocation13 + $0x580] ss:$16 sps:$4 sm:$0xff]   ;;  %v7298_v52 = vld [vmem:[#allocation13 + $0x6a4] ss:$16 sps:$4 sm:$0xff]  }
 0x3bb   : > { %4055 = vmatpush1.bf16.msra.mxu1 %v7176_v31  ;;  %v2010_v31 = vrot.slane %v2009_v61, 2 }
 0x3bc   : > { %4219 = vmatpush1.bf16.msra.mxu0 %v7179_v51  ;;  %4056 = vmatprep.subr.bf16.mxu1 %v7184_v16  ;;  %v7245_v51 = vld [vmem:[#allocation13 + $0x588] ss:$16 sps:$4 sm:$0xff]   ;;  %v7250_v16 = vld [vmem:[#allocation13 + $0x5a4] ss:$16 sps:$4 sm:$0xff]  }
 0x3bd   : > { %4220 = vmatprep.subr.bf16.mxu0 %v7187_v55  ;;  %v7253_v55 = vld [vmem:[#allocation13 + $0x5ac] ss:$16 sps:$4 sm:$0xff]  }
 0x3bf   : > { %4057 = vmatpush1.bf16.msra.mxu1 %v7182_v57  ;;  %v2422_v57 = vrot.slane %v2421_v60, 2 }
 0x3c0   : > { %4221 = vmatpush1.bf16.msra.mxu0 %v7185_v49  ;;  %4058 = vmatprep.subr.bf16.mxu1 %v7190_v62  ;;  %v2011_v49 = vmax.f32 %v2009_v61, %v2010_v31  ;;  %v7251_v62 = vld [vmem:[#allocation13 + $0x5a8] ss:$16 sps:$4 sm:$0xff]   ;;  %v7296_v61 = vld [vmem:[#allocation13 + $0x6a0] ss:$16 sps:$4 sm:$0xff]   ;;  %v7310_v31 = vld [vmem:[#allocation13 + $0x6e4] ss:$16 sps:$4 sm:$0xff]  }
 0x3c1   : > { %4222 = vmatprep.subr.bf16.mxu0 %v7193_v59  ;;  %v7256_v59 = vld [vmem:[#allocation13 + $0x5c4] ss:$16 sps:$4 sm:$0xff]   ;;  %v2423_v21 = vmax.f32 %v2421_v60, %v2422_v57  ;;  %v7302_v60 = vld [vmem:[#allocation13 + $0x6c0] ss:$16 sps:$4 sm:$0xff]  }
 0x3c2   : > { %v7316_v57 = vld [vmem:[#allocation13 + $0x704] ss:$16 sps:$4 sm:$0xff]  }
 0x3c3   : > { %4059 = vmatpush1.bf16.msra.mxu1 %v7188_v1  ;;  %v7259_v1 = vld [vmem:[#allocation13 + $0x5cc] ss:$16 sps:$4 sm:$0xff]  }
 0x3c4   : > { %4223 = vmatpush1.bf16.msra.mxu0 %v7191_v14  ;;  %4060 = vmatprep.subr.bf16.mxu1 %v7196_v10  ;;  %v7254_v14 = vld [vmem:[#allocation13 + $0x5c0] ss:$16 sps:$4 sm:$0xff]   ;;  %v7257_v10 = vld [vmem:[#allocation13 + $0x5c8] ss:$16 sps:$4 sm:$0xff]  }
 0x3c5   : > { %4224 = vmatprep.subr.bf16.mxu0 %v7199_v45  ;;  %v7262_v45 = vld [vmem:[#allocation13 + $0x5e4] ss:$16 sps:$4 sm:$0xff]  }
 0x3c7   : > { %4061 = vmatpush1.bf16.msra.mxu1 %v7194_v9  ;;  %v2012_v9 = vrot.slane %v2011_v49, 1 }
 0x3c8   : > { %4225 = vmatpush1.bf16.msra.mxu0 %v7197_v25  ;;  %4062 = vmatprep.subr.bf16.mxu1 %v7202_v4  ;;  %v7265_v25 = vld [vmem:[#allocation13 + $0x5ec] ss:$16 sps:$4 sm:$0xff]   ;;  %v2424_v4 = vrot.slane %v2423_v21, 1 }
 0x3c9   : > { %4226 = vmatprep.subr.bf16.mxu0 %v7205_v63  ;;  %v7260_v63 = vld [vmem:[#allocation13 + $0x5e0] ss:$16 sps:$4 sm:$0xff]  }
 0x3cb   : > { %4063 = vmatpush1.bf16.msra.mxu1 %v7200_v18  ;;  %v7263_v18 = vld [vmem:[#allocation13 + $0x5e8] ss:$16 sps:$4 sm:$0xff]  }
 0x3cc   : > { %4227 = vmatpush1.bf16.msra.mxu0 %v7203_v2  ;;  %4064 = vmatprep.subr.bf16.mxu1 %v7208_v33  ;;  %v2013_v2 = vmax.f32 %v2011_v49, %v2012_v9  ;;  %v7268_v33 = vld [vmem:[#allocation13 + $0x604] ss:$16 sps:$4 sm:$0xff]   ;;  %v7314_v49 = vld [vmem:[#allocation13 + $0x700] ss:$16 sps:$4 sm:$0xff]  }
 0x3cd   : > { %4228 = vmatprep.subr.bf16.mxu0 %v7211_v15  ;;  %v7271_v15 = vld [vmem:[#allocation13 + $0x60c] ss:$16 sps:$4 sm:$0xff]   ;;  %v7326_v9 = vld [vmem:[#allocation13 + $0x740] ss:$16 sps:$4 sm:$0xff]  }
 0x3cf   : > { %4065 = vmatpush1.bf16.msra.mxu1 %v7206_v56  ;;  %v2425_v56 = vmax.f32 %v2423_v21, %v2424_v4  ;;  %v7320_v21 = vld [vmem:[#allocation13 + $0x720] ss:$16 sps:$4 sm:$0xff]   ;;  %v7329_v4 = vld [vmem:[#allocation13 + $0x748] ss:$16 sps:$4 sm:$0xff]  }
 0x3d0   : > { %4229 = vmatpush1.bf16.msra.mxu0 %v7209_v37  ;;  %4066 = vmatprep.subr.bf16.mxu1 %v7214_v6  ;;  %v7266_v37 = vld [vmem:[#allocation13 + $0x600] ss:$16 sps:$4 sm:$0xff]   ;;  %v2430_v6 = vpack.c.bf16 %v2013_v2, %v2013_v2 }
 0x3d1   : > { %4230 = vmatprep.subr.bf16.mxu0 %v7217_v40  ;;  %v7269_v40 = vld [vmem:[#allocation13 + $0x608] ss:$16 sps:$4 sm:$0xff]   ;;  %v7332_v2 = vld [vmem:[#allocation13 + $0x760] ss:$16 sps:$4 sm:$0xff]  }
 0x3d3   : > { %4067 = vmatpush1.bf16.msra.mxu1 %v7212_v11  ;;  %v7274_v11 = vld [vmem:[#allocation13 + $0x624] ss:$16 sps:$4 sm:$0xff]  }
 0x3d4   : > { %4231 = vmatpush1.bf16.msra.mxu0 %v7215_v23  ;;  %4068 = vmatprep.subr.bf16.mxu1 %v7220_v32  ;;  %v2433_v23 = vpack.c.bf16 %v2425_v56, %v2425_v56  ;;  %v7277_v32 = vld [vmem:[#allocation13 + $0x62c] ss:$16 sps:$4 sm:$0xff]   ;;  %v7340_v56 = vld [vmem:[#allocation13 + $0x784] ss:$16 sps:$4 sm:$0xff]  }
 0x3d5   : > { %4232 = vmatprep.subr.bf16.mxu0 %v7223_v24  ;;  %v7272_v24 = vld [vmem:[#allocation13 + $0x620] ss:$16 sps:$4 sm:$0xff]  }
 0x3d7   : > { %4069 = vmatpush1.bf16.msra.mxu1 %v7218_v12  ;;  %v7275_v12 = vld [vmem:[#allocation13 + $0x628] ss:$16 sps:$4 sm:$0xff]  }
 0x3d8   : > { %4233 = vmatpush1.bf16.msra.mxu0 %v7221_v36  ;;  %4070 = vmatprep.subr.bf16.mxu1 %v7226_v30  ;;  %v7280_v36 = vld [vmem:[#allocation13 + $0x644] ss:$16 sps:$4 sm:$0xff]   ;;  %v7283_v30 = vld [vmem:[#allocation13 + $0x64c] ss:$16 sps:$4 sm:$0xff]  }
 0x3d9   : > { %4234 = vmatprep.subr.bf16.mxu0 %v7229_v38  ;;  %v7278_v38 = vld [vmem:[#allocation13 + $0x640] ss:$16 sps:$4 sm:$0xff]  }
 0x3db   : > { %4071 = vmatpush1.bf16.msra.mxu1 %v7224_v8  ;;  %v7281_v8 = vld [vmem:[#allocation13 + $0x648] ss:$16 sps:$4 sm:$0xff]  }
 0x3dc   : > { %4235 = vmatpush1.bf16.msra.mxu0 %v7227_v39  ;;  %4072 = vmatprep.subr.bf16.mxu1 %v7232_v5  ;;  %v7286_v39 = vld [vmem:[#allocation13 + $0x664] ss:$16 sps:$4 sm:$0xff]   ;;  %v7289_v5 = vld [vmem:[#allocation13 + $0x66c] ss:$16 sps:$4 sm:$0xff]  }
 0x3dd   : > { %4236 = vmatprep.subr.bf16.mxu0 %v7235_v41  ;;  %v7284_v41 = vld [vmem:[#allocation13 + $0x660] ss:$16 sps:$4 sm:$0xff]  }
 0x3df   : > { %4073 = vmatpush1.bf16.msra.mxu1 %v7230_v46  ;;  %v7287_v46 = vld [vmem:[#allocation13 + $0x668] ss:$16 sps:$4 sm:$0xff]  }
 0x3e0   : > { %4237 = vmatpush1.bf16.msra.mxu0 %v7233_v28  ;;  %4074 = vmatprep.subr.bf16.mxu1 %v7238_v42  ;;  %v7295_v28 = vld [vmem:[#allocation13 + $0x68c] ss:$16 sps:$4 sm:$0xff]   ;;  %v7290_v42 = vld [vmem:[#allocation13 + $0x680] ss:$16 sps:$4 sm:$0xff]  }
 0x3e1   : > { %4238 = vmatprep.subr.bf16.mxu0 %v7241_v47  ;;  %v7293_v47 = vld [vmem:[#allocation13 + $0x688] ss:$16 sps:$4 sm:$0xff]  }
 0x3e3   : > { %4075 = vmatpush1.bf16.msra.mxu1 %v7236_v53  ;;  %v7301_v53 = vld [vmem:[#allocation13 + $0x6ac] ss:$16 sps:$4 sm:$0xff]  }
 0x3e4   : > { %4239 = vmatpush1.bf16.msra.mxu0 %v7239_v3  ;;  %4076 = vmatprep.subr.bf16.mxu1 %v7244_v43  ;;  %v7299_v3 = vld [vmem:[#allocation13 + $0x6a8] ss:$16 sps:$4 sm:$0xff]   ;;  %v7304_v43 = vld [vmem:[#allocation13 + $0x6c4] ss:$16 sps:$4 sm:$0xff]  }
 0x3e5   : > { %4240 = vmatprep.subr.bf16.mxu0 %v7247_v17  ;;  %v7307_v17 = vld [vmem:[#allocation13 + $0x6cc] ss:$16 sps:$4 sm:$0xff]  }
 0x3e7   : > { %4077 = vmatpush1.bf16.msra.mxu1 %v7242_v54  ;;  %v7305_v54 = vld [vmem:[#allocation13 + $0x6c8] ss:$16 sps:$4 sm:$0xff]  }
 0x3e8   : > { %4241 = vmatpush1.bf16.msra.mxu0 %v7245_v51  ;;  %4078 = vmatprep.subr.bf16.mxu1 %v7250_v16  ;;  %v7313_v51 = vld [vmem:[#allocation13 + $0x6ec] ss:$16 sps:$4 sm:$0xff]   ;;  %v7308_v16 = vld [vmem:[#allocation13 + $0x6e0] ss:$16 sps:$4 sm:$0xff]  }
 0x3e9   : > { %4242 = vmatprep.subr.bf16.mxu0 %v7253_v55  ;;  %v7311_v55 = vld [vmem:[#allocation13 + $0x6e8] ss:$16 sps:$4 sm:$0xff]  }
 0x3eb   : > { %4079 = vmatpush1.bf16.msra.mxu1 %v7248_v35  ;;  %v7319_v35 = vld [vmem:[#allocation13 + $0x70c] ss:$16 sps:$4 sm:$0xff]  }
 0x3ec   : > { %4243 = vmatpush1.bf16.msra.mxu0 %v7251_v62  ;;  %4080 = vmatprep.subr.bf16.mxu1 %v7256_v59  ;;  %v7317_v62 = vld [vmem:[#allocation13 + $0x708] ss:$16 sps:$4 sm:$0xff]   ;;  %v7322_v59 = vld [vmem:[#allocation13 + $0x724] ss:$16 sps:$4 sm:$0xff]  }
 0x3ed   : > { %4244 = vmatprep.subr.bf16.mxu0 %v7259_v1  ;;  %v7325_v1 = vld [vmem:[#allocation13 + $0x72c] ss:$16 sps:$4 sm:$0xff]  }
 0x3ef   : > { %4081 = vmatpush1.bf16.msra.mxu1 %v7254_v14  ;;  %v7323_v14 = vld [vmem:[#allocation13 + $0x728] ss:$16 sps:$4 sm:$0xff]  }
 0x3f0   : > { %4245 = vmatpush1.bf16.msra.mxu0 %v7257_v10  ;;  %4082 = vmatprep.subr.bf16.mxu1 %v7262_v45  ;;  %v7328_v10 = vld [vmem:[#allocation13 + $0x744] ss:$16 sps:$4 sm:$0xff]   ;;  %v7331_v45 = vld [vmem:[#allocation13 + $0x74c] ss:$16 sps:$4 sm:$0xff]  }
 0x3f1   : > { %4246 = vmatprep.subr.bf16.mxu0 %v7265_v25  ;;  %v2399_v25 = vrot.slane %v8752_v22, 4 }
 0x3f3   : > { %4083 = vmatpush1.bf16.msra.mxu1 %v7260_v63  ;;  %v7334_v63 = vld [vmem:[#allocation13 + $0x764] ss:$16 sps:$4 sm:$0xff]  }
 0x3f4   : > { %4247 = vmatpush1.bf16.msra.mxu0 %v7263_v18  ;;  %4093 = vmatprep.subr.bf16.mxu1 %v7268_v33  ;;  %v7337_v18 = vld [vmem:[#allocation13 + $0x76c] ss:$16 sps:$4 sm:$0xff]   ;;  %v2400_v33 = vmax.f32 %v8752_v22, %v2399_v25  ;;  %v7347_v22 = vld [vmem:[#allocation13 + $0x7a8] ss:$16 sps:$4 sm:$0xff]   ;;  %v7400_v25 = vld [vmem:[#allocation11 + $0xc4] ss:$16 sps:$4 sm:$0xff]  }
 0x3f5   : > { %4257 = vmatprep.subr.bf16.mxu0 %v7271_v15  ;;  %v7335_v15 = vld [vmem:[#allocation13 + $0x768] ss:$16 sps:$4 sm:$0xff]  }
 0x3f6   : > { %4085 = vmatmul.mubr.bf16.vlgmr.msra.gmra.mrb[64].mxu1 %v2430_v6 }
 0x3f7   : > { %4249 = vmatmul.mubr.bf16.vlgmr.msra.gmra.mrb[96].mxu0 %v2430_v6  ;;  %4094 = vmatpush1.bf16.msra.mxu1 %v7266_v37  ;;  %v7343_v37 = vld [vmem:[#allocation13 + $0x78c] ss:$16 sps:$4 sm:$0xff]   ;;  %v7338_v6 = vld [vmem:[#allocation13 + $0x780] ss:$16 sps:$4 sm:$0xff]  }
 0x3f8   : > { %4125 = vmatprep.mubr.bf16.mxu1 %v2433_v23  ;;  %4258 = vmatpush1.bf16.msra.mxu0 %v7269_v40  ;;  %v2401_v40 = vrot.slane %v2400_v33, 2 }
 0x3f9   : > { %4289 = vmatprep.mubr.bf16.mxu0 %v2433_v23  ;;  %4095 = vmatprep.subr.bf16.mxu1 %v7274_v11  ;;  %v7341_v11 = vld [vmem:[#allocation13 + $0x788] ss:$16 sps:$4 sm:$0xff]   ;;  %v7346_v23 = vld [vmem:[#allocation13 + $0x7a4] ss:$16 sps:$4 sm:$0xff]  }
 0x3fa   : > { %4259 = vmatprep.subr.bf16.mxu0 %v7277_v32  ;;  %v7349_v32 = vld [vmem:[#allocation13 + $0x7ac] ss:$16 sps:$4 sm:$0xff]  }
 0x3fb   : > { %4096 = vmatpush1.bf16.msra.mxu1 %v7272_v24  ;;  %v7344_v24 = vld [vmem:[#allocation13 + $0x7a0] ss:$16 sps:$4 sm:$0xff]  }
 0x3fc   : > { %4260 = vmatpush1.bf16.msra.mxu0 %v7275_v12  ;;  %4097 = vmatprep.subr.bf16.mxu1 %v7280_v36  ;;  %v2402_v12 = vmax.f32 %v2400_v33, %v2401_v40  ;;  %v7352_v36 = vld [vmem:[#allocation13 + $0x7c4] ss:$16 sps:$4 sm:$0xff]   ;;  %v7409_v33 = vld [vmem:[#allocation11 + $0xec] ss:$16 sps:$4 sm:$0xff]   ;;  %v7415_v40 = vld [vmem:[#allocation16 + $0x14] ss:$8 sps:$4 sm:$0xff]  }
 0x3fd   : > { %4261 = vmatprep.subr.bf16.mxu0 %v7283_v30  ;;  %v7355_v30 = vld [vmem:[#allocation13 + $0x7cc] ss:$16 sps:$4 sm:$0xff]  }
 0x3ff   : > { %4098 = vmatpush1.bf16.msra.mxu1 %v7278_v38  ;;  %v7350_v38 = vld [vmem:[#allocation13 + $0x7c0] ss:$16 sps:$4 sm:$0xff]  }
 0x400   : > { %4262 = vmatpush1.bf16.msra.mxu0 %v7281_v8  ;;  %4099 = vmatprep.subr.bf16.mxu1 %v7286_v39  ;;  %v7353_v8 = vld [vmem:[#allocation13 + $0x7c8] ss:$16 sps:$4 sm:$0xff]   ;;  %v7358_v39 = vld [vmem:[#allocation13 + $0x7e4] ss:$16 sps:$4 sm:$0xff]  }
 0x401   : > { %4263 = vmatprep.subr.bf16.mxu0 %v7289_v5  ;;  %v2403_v5 = vrot.slane %v2402_v12, 1 }
 0x403   : > { %4100 = vmatpush1.bf16.msra.mxu1 %v7284_v41  ;;  %v7361_v41 = vld [vmem:[#allocation13 + $0x7ec] ss:$16 sps:$4 sm:$0xff]  }
 0x404   : > { %4264 = vmatpush1.bf16.msra.mxu0 %v7287_v46  ;;  %4101 = vmatprep.subr.bf16.mxu1 %v7292_v20  ;;  %v7356_v46 = vld [vmem:[#allocation13 + $0x7e0] ss:$16 sps:$4 sm:$0xff]   ;;  %v7359_v20 = vld [vmem:[#allocation13 + $0x7e8] ss:$16 sps:$4 sm:$0xff]  }
 0x405   : > { %4265 = vmatprep.subr.bf16.mxu0 %v7295_v28  ;;  %v2404_v28 = vmax.f32 %v2402_v12, %v2403_v5  ;;  %v7424_v12 = vld [vmem:[#allocation16 + $0x44] ss:$8 sps:$4 sm:$0xff]   ;;  %v7443_v5 = vld [vmem:[#allocation16 + $0xb0] ss:$8 sps:$4 sm:$0xff]  }
 0x407   : > { %4102 = vmatpush1.bf16.msra.mxu1 %v7290_v42  ;;  %v7364_v42 = vld [vmem:[#allocation11 + $0x4] ss:$16 sps:$4 sm:$0xff]  }
 0x408   : > { %4266 = vmatpush1.bf16.msra.mxu0 %v7293_v47  ;;  %4103 = vmatprep.subr.bf16.mxu1 %v7298_v52  ;;  %v7367_v47 = vld [vmem:[#allocation11 + $0xc] ss:$16 sps:$4 sm:$0xff]   ;;  %v7362_v52 = vld [vmem:[#allocation11] ss:$16 sps:$4 sm:$0xff]  }
 0x409   : > { %4267 = vmatprep.subr.bf16.mxu0 %v7301_v53  ;;  %v2432_v53 = vpack.c.bf16 %v2404_v28, %v2404_v28  ;;  %v7451_v28 = vld [vmem:[#allocation16 + $0xd4] ss:$8 sps:$4 sm:$0xff]  }
 0x40b   : > { %4104 = vmatpush1.bf16.msra.mxu1 %v7296_v61  ;;  %v7365_v61 = vld [vmem:[#allocation11 + $0x8] ss:$16 sps:$4 sm:$0xff]  }
 0x40c   : > { %4268 = vmatpush1.bf16.msra.mxu0 %v7299_v3  ;;  %4105 = vmatprep.subr.bf16.mxu1 %v7304_v43  ;;  %v7370_v3 = vld [vmem:[#allocation11 + $0x24] ss:$16 sps:$4 sm:$0xff]   ;;  %v7373_v43 = vld [vmem:[#allocation11 + $0x2c] ss:$16 sps:$4 sm:$0xff]  }
 0x40d   : > { %4269 = vmatprep.subr.bf16.mxu0 %v7307_v17  ;;  %v7368_v17 = vld [vmem:[#allocation11 + $0x20] ss:$16 sps:$4 sm:$0xff]  }
 0x40f   : > { %4106 = vmatpush1.bf16.msra.mxu1 %v7302_v60  ;;  %v7371_v60 = vld [vmem:[#allocation11 + $0x28] ss:$16 sps:$4 sm:$0xff]  }
 0x410   : > { %4270 = vmatpush1.bf16.msra.mxu0 %v7305_v54  ;;  %4107 = vmatprep.subr.bf16.mxu1 %v7310_v31  ;;  %v7376_v54 = vld [vmem:[#allocation11 + $0x44] ss:$16 sps:$4 sm:$0xff]   ;;  %v7379_v31 = vld [vmem:[#allocation11 + $0x4c] ss:$16 sps:$4 sm:$0xff]  }
 0x411   : > { %4271 = vmatprep.subr.bf16.mxu0 %v7313_v51  ;;  %v7374_v51 = vld [vmem:[#allocation11 + $0x40] ss:$16 sps:$4 sm:$0xff]  }
 0x413   : > { %4108 = vmatpush1.bf16.msra.mxu1 %v7308_v16  ;;  %v7377_v16 = vld [vmem:[#allocation11 + $0x48] ss:$16 sps:$4 sm:$0xff]  }
 0x414   : > { %4272 = vmatpush1.bf16.msra.mxu0 %v7311_v55  ;;  %4109 = vmatprep.subr.bf16.mxu1 %v7316_v57  ;;  %v7382_v55 = vld [vmem:[#allocation11 + $0x64] ss:$16 sps:$4 sm:$0xff]   ;;  %v7385_v57 = vld [vmem:[#allocation11 + $0x6c] ss:$16 sps:$4 sm:$0xff]  }
 0x415   : > { %4273 = vmatprep.subr.bf16.mxu0 %v7319_v35  ;;  %v7380_v35 = vld [vmem:[#allocation11 + $0x60] ss:$16 sps:$4 sm:$0xff]  }
 0x417   : > { %4110 = vmatpush1.bf16.msra.mxu1 %v7314_v49  ;;  %v7383_v49 = vld [vmem:[#allocation11 + $0x68] ss:$16 sps:$4 sm:$0xff]  }
 0x418   : > { %4274 = vmatpush1.bf16.msra.mxu0 %v7317_v62  ;;  %4111 = vmatprep.subr.bf16.mxu1 %v7322_v59  ;;  %v7388_v62 = vld [vmem:[#allocation11 + $0x84] ss:$16 sps:$4 sm:$0xff]   ;;  %v7391_v59 = vld [vmem:[#allocation11 + $0x8c] ss:$16 sps:$4 sm:$0xff]  }
 0x419   : > { %4275 = vmatprep.subr.bf16.mxu0 %v7325_v1  ;;  %v7386_v1 = vld [vmem:[#allocation11 + $0x80] ss:$16 sps:$4 sm:$0xff]  }
 0x41b   : > { %4112 = vmatpush1.bf16.msra.mxu1 %v7320_v21  ;;  %v7389_v21 = vld [vmem:[#allocation11 + $0x88] ss:$16 sps:$4 sm:$0xff]  }
 0x41c   : > { %4276 = vmatpush1.bf16.msra.mxu0 %v7323_v14  ;;  %4113 = vmatprep.subr.bf16.mxu1 %v7328_v10  ;;  %v7394_v14 = vld [vmem:[#allocation11 + $0xa4] ss:$16 sps:$4 sm:$0xff]   ;;  %v7397_v10 = vld [vmem:[#allocation11 + $0xac] ss:$16 sps:$4 sm:$0xff]  }
 0x41d   : > { %4277 = vmatprep.subr.bf16.mxu0 %v7331_v45  ;;  %v7392_v45 = vld [vmem:[#allocation11 + $0xa0] ss:$16 sps:$4 sm:$0xff]  }
 0x41f   : > { %4114 = vmatpush1.bf16.msra.mxu1 %v7326_v9  ;;  %v7395_v9 = vld [vmem:[#allocation11 + $0xa8] ss:$16 sps:$4 sm:$0xff]  }
 0x420   : > { %4278 = vmatpush1.bf16.msra.mxu0 %v7329_v4  ;;  %4115 = vmatprep.subr.bf16.mxu1 %v7334_v63  ;;  %v7403_v4 = vld [vmem:[#allocation11 + $0xcc] ss:$16 sps:$4 sm:$0xff]   ;;  %v7398_v63 = vld [vmem:[#allocation11 + $0xc0] ss:$16 sps:$4 sm:$0xff]  }
 0x421   : > { %4279 = vmatprep.subr.bf16.mxu0 %v7337_v18  ;;  %v7401_v18 = vld [vmem:[#allocation11 + $0xc8] ss:$16 sps:$4 sm:$0xff]  }
 0x423   : > { %4116 = vmatpush1.bf16.msra.mxu1 %v7332_v2  ;;  %v7406_v2 = vld [vmem:[#allocation11 + $0xe4] ss:$16 sps:$4 sm:$0xff]  }
 0x424   : > { %4280 = vmatpush1.bf16.msra.mxu0 %v7335_v15  ;;  %4117 = vmatprep.subr.bf16.mxu1 %v7340_v56  ;;  %v7404_v15 = vld [vmem:[#allocation11 + $0xe0] ss:$16 sps:$4 sm:$0xff]   ;;  %v7407_v56 = vld [vmem:[#allocation11 + $0xe8] ss:$16 sps:$4 sm:$0xff]  }
 0x425   : > { %4281 = vmatprep.subr.bf16.mxu0 %v7343_v37  ;;  %v7412_v37 = vld [vmem:[#allocation16 + $0x4] ss:$8 sps:$4 sm:$0xff]  }
 0x427   : > { %4118 = vmatpush1.bf16.msra.mxu1 %v7338_v6  ;;  %v7410_v6 = vld [vmem:[#allocation16] ss:$8 sps:$4 sm:$0xff]  }
 0x428   : > { %4282 = vmatpush1.bf16.msra.mxu0 %v7341_v11  ;;  %4119 = vmatprep.subr.bf16.mxu1 %v7346_v23  ;;  %v7413_v11 = vld [vmem:[#allocation16 + $0x10] ss:$8 sps:$4 sm:$0xff]   ;;  %v7418_v23 = vld [vmem:[#allocation16 + $0x24] ss:$8 sps:$4 sm:$0xff]  }
 0x429   : > { %4283 = vmatprep.subr.bf16.mxu0 %v7349_v32  ;;  %v7416_v32 = vld [vmem:[#allocation16 + $0x20] ss:$8 sps:$4 sm:$0xff]  }
 0x42b   : > { %4120 = vmatpush1.bf16.msra.mxu1 %v7344_v24  ;;  %v7421_v24 = vld [vmem:[#allocation16 + $0x34] ss:$8 sps:$4 sm:$0xff]  }
 0x42c   : > { %4284 = vmatpush1.bf16.msra.mxu0 %v7347_v22  ;;  %4121 = vmatprep.subr.bf16.mxu1 %v7352_v36  ;;  %v7422_v22 = vld [vmem:[#allocation16 + $0x40] ss:$8 sps:$4 sm:$0xff]   ;;  %v7431_v36 = vld [vmem:[#allocation16 + $0x70] ss:$8 sps:$4 sm:$0xff]  }
 0x42d   : > { %4285 = vmatprep.subr.bf16.mxu0 %v7355_v30  ;;  %v7434_v30 = vld [vmem:[#allocation16 + $0x80] ss:$8 sps:$4 sm:$0xff]  }
 0x42f   : > { %4122 = vmatpush1.bf16.msra.mxu1 %v7350_v38  ;;  %v7437_v38 = vld [vmem:[#allocation16 + $0x90] ss:$8 sps:$4 sm:$0xff]  }
 0x430   : > { %4286 = vmatpush1.bf16.msra.mxu0 %v7353_v8  ;;  %4123 = vmatprep.subr.bf16.mxu1 %v7358_v39  ;;  %v7442_v8 = vld [vmem:[#allocation16 + $0xa4] ss:$8 sps:$4 sm:$0xff]   ;;  %v7440_v39 = vld [vmem:[#allocation16 + $0xa0] ss:$8 sps:$4 sm:$0xff]  }
 0x431   : > { %4287 = vmatprep.subr.bf16.mxu0 %v7361_v41  ;;  %v7448_v41 = vld [vmem:[#allocation16 + $0xc4] ss:$8 sps:$4 sm:$0xff]  }
 0x433   : > { %4124 = vmatpush1.bf16.msra.mxu1 %v7356_v46  ;;  %v7446_v46 = vld [vmem:[#allocation16 + $0xc0] ss:$8 sps:$4 sm:$0xff]  }
 0x434   : > { %4288 = vmatpush1.bf16.msra.mxu0 %v7359_v20  ;;  %4490 = vmatprep.subr.bf16.mxu1 %v7364_v42  ;;  %v7449_v20 = vld [vmem:[#allocation16 + $0xd0] ss:$8 sps:$4 sm:$0xff]   ;;  %v7452_v42 = vld [vmem:[#allocation16 + $0xe0] ss:$8 sps:$4 sm:$0xff]  }
 0x435   : > { %4603 = vmatprep.subr.bf16.mxu0 %v7367_v47  ;;  %v7454_v47 = vld [vmem:[#allocation16 + $0xe4] ss:$8 sps:$4 sm:$0xff]  }
 0x436   : > { %4126 = vmatmul.mubr.bf16.vlgmr.msra.gmra.mrb[64].mxu1 %v2432_v53 }
 0x437   : > { %4290 = vmatmul.mubr.bf16.vlgmr.msra.gmra.mrb[96].mxu0 %v2432_v53  ;;  %4491 = vmatpush1.bf16.msra.mxu1 %v7362_v52  ;;  %v7455_v52 = vld [vmem:[#allocation16 + $0xf0] ss:$8 sps:$4 sm:$0xff]   ;;  %v7457_v53 = vld [vmem:[#allocation16 + $0xf4] ss:$8 sps:$4 sm:$0xff]  }
 0x438   : > { %4604 = vmatpush1.bf16.msra.mxu0 %v7365_v61  ;;  %4492 = vmatprep.subr.bf16.mxu1 %v7370_v3  ;;  %v7460_v61 = vld [vmem:[#allocation16 + $0x104] ss:$8 sps:$4 sm:$0xff]  }
 0x439   : > { %4605 = vmatprep.subr.bf16.mxu0 %v7373_v43  ;;  %4522 = vmatprep.mubr.bf16.mxu1 %v7972_v0 }
 0x43a   : > { %4635 = vmatprep.mubr.bf16.mxu0 %v7972_v0 }
 0x43b   : > { %4493 = vmatpush1.bf16.msra.mxu1 %v7368_v17 }
 0x43c   : > { %4606 = vmatpush1.bf16.msra.mxu0 %v7371_v60  ;;  %4494 = vmatprep.subr.bf16.mxu1 %v7376_v54 }
 0x43d   : > { %4607 = vmatprep.subr.bf16.mxu0 %v7379_v31 }
 0x43f   : > { %4495 = vmatpush1.bf16.msra.mxu1 %v7374_v51 }
 0x440   : > { %4608 = vmatpush1.bf16.msra.mxu0 %v7377_v16  ;;  %4496 = vmatprep.subr.bf16.mxu1 %v7382_v55  ;;  %v4796_v55 = vld [vmem:[#allocation14] sm:$0xf] }
 0x441   : > { %4609 = vmatprep.subr.bf16.mxu0 %v7385_v57  ;;  %v4808_v57 = vsub.s32 2, %v8452_v26 }
 0x443   : > { %4497 = vmatpush1.bf16.msra.mxu1 %v7380_v35  ;;  %v4812_v35 = vsub.s32 3, %v8452_v26 }
 0x444   : > { %4610 = vmatpush1.bf16.msra.mxu0 %v7383_v49  ;;  %4498 = vmatprep.subr.bf16.mxu1 %v7388_v62  ;;  %v8800_v62 = vrot.slane %v4796_v55, %v8455_v27 }
 0x445   : > { %4611 = vmatprep.subr.bf16.mxu0 %v7391_v59 }
 0x447   : > { %4499 = vmatpush1.bf16.msra.mxu1 %v7386_v1 }
 0x448   : > { %4612 = vmatpush1.bf16.msra.mxu0 %v7389_v21  ;;  %4500 = vmatprep.subr.bf16.mxu1 %v7394_v14  ;;  %v8808_v14 = vrot.slane %v4796_v55, %v4808_v57 }
 0x449   : > { %4613 = vmatprep.subr.bf16.mxu0 %v7397_v10  ;;  %v8811_v10 = vrot.slane %v4796_v55, %v8458_v29 }
 0x44b   : > { %4501 = vmatpush1.bf16.msra.mxu1 %v7392_v45 }
 0x44c   : > { %4614 = vmatpush1.bf16.msra.mxu0 %v7395_v9  ;;  %4502 = vmatprep.subr.bf16.mxu1 %v7400_v25 }
 0x44d   : > { %4615 = vmatprep.subr.bf16.mxu0 %v7403_v4  ;;  %v8817_v4 = vrot.slane %v4796_v55, %v4812_v35 }
 0x44f   : > { %4503 = vmatpush1.bf16.msra.mxu1 %v7398_v63 }
 0x450   : > { %4616 = vmatpush1.bf16.msra.mxu0 %v7401_v18  ;;  %4504 = vmatprep.subr.bf16.mxu1 %v7406_v2 }
 0x451   : > { %4617 = vmatprep.subr.bf16.mxu0 %v7409_v33 }
 0x453   : > { %4505 = vmatpush1.bf16.msra.mxu1 %v7404_v15 }
 0x454   : > { %4618 = vmatpush1.bf16.msra.mxu0 %v7407_v56  ;;  %5374 = vmatprep.subr.bf16.mxu1 %v7412_v37 }
 0x456   : > { %4523 = vmatmul.mubr.bf16.vlgmr.msra.gmra.mrb[68].mxu1 %v8470_v48 }
 0x457   : > { %4636 = vmatmul.mubr.bf16.vlgmr.msra.gmra.mrb[100].mxu0 %v8470_v48  ;;  %4532 = vmatprep.mubr.bf16.mxu1 %v7972_v0  ;;  %v7419_v48 = vld [vmem:[#allocation16 + $0x30] ss:$8 sps:$4 sm:$0xff]  }
 0x458   : > { %4645 = vmatprep.mubr.bf16.mxu0 %v7972_v0  ;;  %5375 = vmatpush1.bf16.msra.mxu1 %v7410_v6 }
 0x459   : > { %5376 = vmatprep.subr.bf16.mxu1 %v7415_v40 }
 0x45c   : > { %5377 = vmatpush1.bf16.msra.mxu1 %v7413_v11 }
 0x45d   : > { %5378 = vmatprep.subr.bf16.mxu1 %v7418_v23 }
 0x45e   : > { %4533 = vmatmul.mubr.bf16.gmra.mrb[72].mxu1 %v8482_v13 }
 0x45f   : > { %4646 = vmatmul.mubr.bf16.gmra.mrb[104].mxu0 %v8482_v13  ;;  %4542 = vmatprep.mubr.bf16.mxu1 %v7972_v0  ;;  %v7425_v13 = vld [vmem:[#allocation16 + $0x50] ss:$8 sps:$4 sm:$0xff]  }
 0x460   : > { %4655 = vmatprep.mubr.bf16.mxu0 %v7972_v0  ;;  %5379 = vmatpush1.bf16.msra.mxu1 %v7416_v32 }
 0x461   : > { %5380 = vmatprep.subr.bf16.mxu1 %v7421_v24 }
 0x464   : > { %5381 = vmatpush1.bf16.msra.mxu1 %v7419_v48 }
 0x465   : > { %5382 = vmatprep.subr.bf16.mxu1 %v7424_v12 }
 0x466   : > { %4543 = vmatmul.mubr.bf16.gmra.mrb[76].mxu1 %v8494_v50 }
 0x467   : > { %4656 = vmatmul.mubr.bf16.gmra.mrb[108].mxu0 %v8494_v50  ;;  %4552 = vmatprep.mubr.bf16.mxu1 %v7972_v0  ;;  %v7427_v50 = vld [vmem:[#allocation16 + $0x54] ss:$8 sps:$4 sm:$0xff]  }
 0x468   : > { %4665 = vmatprep.mubr.bf16.mxu0 %v7972_v0  ;;  %5383 = vmatpush1.bf16.msra.mxu1 %v7422_v22 }
 0x469   : > { %5384 = vmatprep.subr.bf16.mxu1 %v7427_v50  ;;  %v7506_v50 = vld [vmem:[#allocation19 + $0x40] sm:$0xff]  }
 0x46a   : > { %6645 = vmatprep.subr.bf16.mxu0 %v7506_v50 }
 0x46c   : > { %5385 = vmatpush1.bf16.msra.mxu1 %v7425_v13 }
 0x46e   : > { %4553 = vmatmul.mubr.bf16.gmra.mrb[80].mxu1 %v8506_v19 }
 0x46f   : > { %4666 = vmatmul.mubr.bf16.gmra.mrb[112].mxu0 %v8506_v19  ;;  %4562 = vmatprep.mubr.bf16.mxu1 %v7972_v0  ;;  %v7430_v19 = vld [vmem:[#allocation16 + $0x64] ss:$8 sps:$4 sm:$0xff]  }
 0x470   : > { %4675 = vmatprep.mubr.bf16.mxu0 %v7972_v0  ;;  %5386 = vmatprep.subr.bf16.mxu1 %v7430_v19  ;;  %v7507_v19 = vld [vmem:[#allocation19] sm:$0xff]  }
 0x471   : > { %6646 = vmatpush3.bf16.msra.mxu0 %v7507_v19 }
 0x476   : > { %4563 = vmatmul.mubr.bf16.gmra.mrb[84].mxu1 %v8518_v58 }
 0x477   : > { %4676 = vmatmul.mubr.bf16.gmra.mrb[116].mxu0 %v8518_v58  ;;  %4572 = vmatprep.mubr.bf16.mxu1 %v7972_v0  ;;  %v7428_v58 = vld [vmem:[#allocation16 + $0x60] ss:$8 sps:$4 sm:$0xff]  }
 0x478   : > { %4685 = vmatprep.mubr.bf16.mxu0 %v7972_v0  ;;  %5387 = vmatpush1.bf16.msra.mxu1 %v7428_v58  ;;  %v7508_v58 = vld [vmem:[#allocation19 + $0x48] sm:$0xff]  }
 0x479   : > { %6647 = vmatprep.subr.bf16.mxu0 %v7508_v58 }
 0x47e   : > { %4573 = vmatmul.mubr.bf16.gmra.mrb[88].mxu1 %v8530_v34 }
 0x47f   : > { %4686 = vmatmul.mubr.bf16.gmra.mrb[120].mxu0 %v8530_v34  ;;  %4582 = vmatprep.mubr.bf16.mxu1 %v7972_v0  ;;  %v7433_v34 = vld [vmem:[#allocation16 + $0x74] ss:$8 sps:$4 sm:$0xff]  }
 0x480   : > { %4695 = vmatprep.mubr.bf16.mxu0 %v7972_v0  ;;  %5388 = vmatprep.subr.bf16.mxu1 %v7433_v34 }
 0x481   : > { %5389 = vmatpush1.bf16.msra.mxu1 %v7431_v36 }
 0x486   : > { %4583 = vmatmul.mubr.bf16.gmra.mrb[92].mxu1 %v8542_v7 }
 0x487   : > { %4696 = vmatmul.mubr.bf16.gmra.mrb[124].mxu0 %v8542_v7  ;;  %4592 = vmatprep.mubr.bf16.mxu1 %v7972_v0  ;;  %v7436_v7 = vld [vmem:[#allocation16 + $0x84] ss:$8 sps:$4 sm:$0xff]  }
 0x488   : > { %4705 = vmatprep.mubr.bf16.mxu0 %v7972_v0  ;;  %5390 = vmatprep.subr.bf16.mxu1 %v7436_v7  ;;  %v7439_v0 = vld [vmem:[#allocation16 + $0x94] ss:$8 sps:$4 sm:$0xff]  }
 0x489   : > { %5391 = vmatpush1.bf16.msra.mxu1 %v7434_v30 }
 0x48a   : > { %5392 = vmatprep.subr.bf16.mxu1 %v7439_v0 }
 0x48d   : > { %5393 = vmatpush1.bf16.msra.mxu1 %v7437_v38 }
 0x48e   : > { %4593 = vmatmul.mubr.bf16.gmra.mrb[96].mxu1 %v8554_v44  ;;  %5394 = vmatprep.subr.bf16.mxu1 %v7442_v8 }
 0x48f   : > { %4706 = vmatmul.mubr.bf16.gmra.mrb[128].mxu0 %v8554_v44  ;;  %v7445_v44 = vld [vmem:[#allocation16 + $0xb4] ss:$8 sps:$4 sm:$0xff]  }
 0x491   : > { %5395 = vmatpush1.bf16.msra.mxu1 %v7440_v39 }
 0x492   : > { %5396 = vmatprep.subr.bf16.mxu1 %v7445_v44 }
 0x495   : > { %5397 = vmatpush1.bf16.msra.mxu1 %v7443_v5 }
 0x496   : > { %5398 = vmatprep.subr.bf16.mxu1 %v7448_v41 }
 0x499   : > { %5399 = vmatpush1.bf16.msra.mxu1 %v7446_v46 }
 0x49a   : > { %5400 = vmatprep.subr.bf16.mxu1 %v7451_v28 }
 0x49d   : > { %5401 = vmatpush1.bf16.msra.mxu1 %v7449_v20 }
 0x49e   : > { %5402 = vmatprep.subr.bf16.mxu1 %v7454_v47 }
 0x4a1   : > { %5403 = vmatpush1.bf16.msra.mxu1 %v7452_v42 }
 0x4a2   : > { %5404 = vmatprep.subr.bf16.mxu1 %v7457_v53 }
 0x4a5   : > { %5405 = vmatpush1.bf16.msra.mxu1 %v7455_v52  ;;  %v7509_v52 = vld [vmem:[#allocation19 + $0x8] sm:$0xff]  }
 0x4a6   : > { %5487 = vmatprep.subr.bf16.mxu1 %v7460_v61  ;;  %6648 = vmatpush3.bf16.msra.mxu0 %v7509_v52 }
 0x509   : > { %v4127_v3 = vpop.f32.mrb[64].mxu1 }
 0x50a   : > { %v4291_v43 = vpop.f32.mrb[96].mxu0  ;;  %v4129_v17 = vpop.f32.mrb[65].mxu1  ;;  %v8797_v49 = vrot.slane %v4127_v3, %v8455_v27 }
 0x50b   : > { %v4293_v60 = vpop.f32.mrb[97].mxu0  ;;  %v4131_v54 = vpop.f32.mrb[66].mxu1  ;;  %v8803_v59 = vrot.slane %v4291_v43, %v8455_v27  ;;  %v8806_v1 = vrot.slane %v4129_v17, %v8455_v27 }
 0x50c   : > { %v4295_v31 = vpop.f32.mrb[98].mxu0  ;;  %v4132_v51 = vpop.f32.mrb[67].mxu1  ;;  %v8814_v26 = vrot.slane %v4293_v60, %v8455_v27  ;;  %v7458_v54 = vld [vmem:[#allocation16 + $0x100] ss:$8 sps:$4 sm:$0xff]  }
 0x50d   : > { %v4296_v16 = vpop.f32.mrb[99].mxu0  ;;  %v7510_v31 = vld [vmem:[#allocation19 + $0x50] sm:$0xff]  }
 0x50e   : > { %6649 = vmatprep.subr.bf16.mxu0 %v7510_v31 }
 0x529   : > { %v4524_v21 = vpop.f32.mrb[68].mxu1 }
 0x52a   : > { %v4732_v45 = vadd.f32 %v8797_v49, %v4524_v21  ;;  %v4637_v9 = vpop.f32.mrb[100].mxu0  ;;  %v4526_v25 = vpop.f32.mrb[69].mxu1  ;;  %v7463_v21 = vld [vmem:[#allocation16 + $0x114] ss:$8 sps:$4 sm:$0xff]  }
 0x52b   : > { %v4734_v63 = vadd.f32 %v8803_v59, %v4637_v9  ;;  %v4733_v18 = vadd.f32 %v8806_v1, %v4526_v25  ;;  %v4639_v2 = vpop.f32.mrb[101].mxu0  ;;  %v4528_v33 = vpop.f32.mrb[70].mxu1 }
 0x52c   : > { %v4818_v15 = vadd.f32 %v8800_v62, %v4732_v45  ;;  %v4735_v56 = vadd.f32 %v8814_v26, %v4639_v2  ;;  %v4736_v37 = vadd.f32 %v8797_v49, %v4528_v33  ;;  %v4641_v6 = vpop.f32.mrb[102].mxu0  ;;  %v4530_v40 = vpop.f32.mrb[71].mxu1 }
 0x52d   : > { %v4820_v11 = vadd.f32 %v8808_v14, %v4734_v63  ;;  %v4819_v23 = vadd.f32 %v8811_v10, %v4733_v18  ;;  %v4738_v32 = vadd.f32 %v8803_v59, %v4641_v6  ;;  %v4737_v24 = vadd.f32 %v8806_v1, %v4530_v40  ;;  %v4643_v48 = vpop.f32.mrb[103].mxu0 }
 0x52e   : > { %v4821_v12 = vadd.f32 %v8817_v4, %v4735_v56  ;;  %v4822_v22 = vadd.f32 %v8800_v62, %v4736_v37  ;;  %v4739_v13 = vadd.f32 %v8814_v26, %v4643_v48  ;;  %v4882_v7 = vmax.f32 %v4818_v15, 0.0  ;;  %v7511_v37 = vld [vmem:[#allocation19 + $0x10] sm:$0xff]   ;;  %v7466_v48 = vld [vmem:[#allocation16 + $0x124] ss:$8 sps:$4 sm:$0xff]  }
 0x52f   : > { %v4824_v34 = vadd.f32 %v8808_v14, %v4738_v32  ;;  %v4823_v36 = vadd.f32 %v8811_v10, %v4737_v24  ;;  %v4884_v38 = vmax.f32 %v4820_v11, 0.0  ;;  %v4883_v8 = vmax.f32 %v4819_v23, 0.0  ;;  %v7461_v11 = vld [vmem:[#allocation16 + $0x110] ss:$8 sps:$4 sm:$0xff]   ;;  %6650 = vmatpush3.bf16.msra.mxu0 %v7511_v37 }
 0x530   : > { %v4886_v30 = vmax.f32 %v4822_v22, 0.0  ;;  %v4825_v0 = vadd.f32 %v8817_v4, %v4739_v13  ;;  %v4885_v41 = vmax.f32 %v4821_v12, 0.0 }
 0x531   : > { %v4888_v39 = vmax.f32 %v4824_v34, 0.0  ;;  %v4887_v44 = vmax.f32 %v4823_v36, 0.0  ;;  %v4534_v5 = vpop.f32.mrb[72].mxu1 }
 0x532   : > { %v4946_v46 = vpack.c.bf16 %v4886_v30, %v4882_v7  ;;  %v4889_v20 = vmax.f32 %v4825_v0, 0.0  ;;  %v4740_v28 = vadd.f32 %v8797_v49, %v4534_v5  ;;  %v4647_v42 = vpop.f32.mrb[104].mxu0  ;;  %v4536_v47 = vpop.f32.mrb[73].mxu1 }
 0x533   : > { %v8835_v53 = vpack.c.bf16 %v4888_v39, %v4884_v38  ;;  %v4742_v61 = vadd.f32 %v8803_v59, %v4647_v42  ;;  %v4741_v3 = vadd.f32 %v8806_v1, %v4536_v47  ;;  %v4649_v43 = vpop.f32.mrb[105].mxu0  ;;  %v4538_v17 = vpop.f32.mrb[74].mxu1  ;;  %v4947_v60 = vpack.c.bf16 %v4887_v44, %v4883_v8  ;;  %v7512_v38 = vld [vmem:[#allocation19 + $0x58] sm:$0xff]  }
 0x534   : > { %v4826_v51 = vadd.f32 %v8800_v62, %v4740_v28  ;;  %v4743_v16 = vadd.f32 %v8814_v26, %v4649_v43  ;;  %v4744_v55 = vadd.f32 %v8797_v49, %v4538_v17  ;;  %v4651_v57 = vpop.f32.mrb[106].mxu0  ;;  %v4540_v35 = vpop.f32.mrb[75].mxu1  ;;  %v8842_v45 = vpack.c.bf16 %v4889_v20, %v4885_v41  ;;  %v7513_v28 = vld [vmem:[#allocation19 + $0x18] sm:$0xff]   ;;  %6651 = vmatprep.subr.bf16.mxu0 %v7512_v38 }
 0x535   : > { %v4828_v9 = vadd.f32 %v8808_v14, %v4742_v61  ;;  %v4827_v25 = vadd.f32 %v8811_v10, %v4741_v3  ;;  %v4746_v63 = vadd.f32 %v8803_v59, %v4651_v57  ;;  %v4745_v18 = vadd.f32 %v8806_v1, %v4540_v35  ;;  %v4653_v2 = vpop.f32.mrb[107].mxu0  ;;  %5406 = vmatprep.mubr.bf16.mxu1 %v4947_v60  ;;  %v7469_v43 = vld [vmem:[#allocation16 + $0x134] ss:$8 sps:$4 sm:$0xff]   ;;  %v7514_v60 = vld [vmem:[#allocation19 + $0x60] sm:$0xff]  }
 0x536   : > { %v4829_v33 = vadd.f32 %v8817_v4, %v4743_v16  ;;  %v4830_v15 = vadd.f32 %v8800_v62, %v4744_v55  ;;  %v4747_v56 = vadd.f32 %v8814_v26, %v4653_v2  ;;  %5407 = vmatmul.mubr.bf16.vlgmr.msra.gmra.mrb[100].mxu1 %v4946_v46  ;;  %v4890_v23 = vmax.f32 %v4826_v51, 0.0  ;;  %v7464_v46 = vld [vmem:[#allocation16 + $0x120] ss:$8 sps:$4 sm:$0xff]   ;;  %6652 = vmatpush3.bf16.msra.mxu0 %v7513_v28 }
 0x537   : > { %v4832_v6 = vadd.f32 %v8808_v14, %v4746_v63  ;;  %v4831_v40 = vadd.f32 %v8811_v10, %v4745_v18  ;;  %5488 = vmatpush1.bf16.msra.mxu1 %v7458_v54  ;;  %v4892_v12 = vmax.f32 %v4828_v9, 0.0  ;;  %v4891_v22 = vmax.f32 %v4827_v25, 0.0  ;;  %v7467_v63 = vld [vmem:[#allocation16 + $0x130] ss:$8 sps:$4 sm:$0xff]   ;;  %6653 = vmatprep.subr.bf16.mxu0 %v7514_v60 }
 0x538   : > { %v4894_v32 = vmax.f32 %v4830_v15, 0.0  ;;  %v4833_v24 = vadd.f32 %v8817_v4, %v4747_v56  ;;  %5489 = vmatprep.subr.bf16.mxu1 %v7463_v21  ;;  %v4893_v58 = vmax.f32 %v4829_v33, 0.0  ;;  %v7472_v15 = vld [vmem:[#allocation16 + $0x144] ss:$8 sps:$4 sm:$0xff]  }
 0x539   : > { %v4896_v13 = vmax.f32 %v4832_v6, 0.0  ;;  %v4895_v50 = vmax.f32 %v4831_v40, 0.0  ;;  %v4544_v19 = vpop.f32.mrb[76].mxu1 }
 0x53a   : > { %v4897_v34 = vmax.f32 %v4833_v24, 0.0  ;;  %v4748_v36 = vadd.f32 %v8797_v49, %v4544_v19  ;;  %v4657_v7 = vpop.f32.mrb[108].mxu0  ;;  %v4546_v30 = vpop.f32.mrb[77].mxu1  ;;  %v4950_v0 = vpack.c.bf16 %v4894_v32, %v4890_v23 }
 0x53b   : > { %v4750_v8 = vadd.f32 %v8803_v59, %v4657_v7  ;;  %v4749_v39 = vadd.f32 %v8806_v1, %v4546_v30  ;;  %v4659_v44 = vpop.f32.mrb[109].mxu0  ;;  %5490 = vmatpush1.bf16.msra.mxu1 %v7461_v11  ;;  %v4548_v5 = vpop.f32.mrb[78].mxu1  ;;  %v4951_v41 = vpack.c.bf16 %v4895_v50, %v4891_v22  ;;  %v8857_v20 = vpack.c.bf16 %v4896_v13, %v4892_v12  ;;  %v7515_v13 = vld [vmem:[#allocation19 + $0x20] sm:$0xff]  }
 0x53c   : > { %v4834_v42 = vadd.f32 %v8800_v62, %v4748_v36  ;;  %v4751_v47 = vadd.f32 %v8814_v26, %v4659_v44  ;;  %v4752_v52 = vadd.f32 %v8797_v49, %v4548_v5  ;;  %v4661_v61 = vpop.f32.mrb[110].mxu0  ;;  %v4550_v3 = vpop.f32.mrb[79].mxu1  ;;  %5491 = vmatprep.subr.bf16.mxu1 %v7466_v48  ;;  %v8862_v17 = vpack.c.bf16 %v4897_v34, %v4893_v58  ;;  %v7470_v7 = vld [vmem:[#allocation16 + $0x140] ss:$8 sps:$4 sm:$0xff]  }
 0x53d   : > { %v4836_v54 = vadd.f32 %v8808_v14, %v4750_v8  ;;  %v4835_v31 = vadd.f32 %v8811_v10, %v4749_v39  ;;  %v4754_v51 = vadd.f32 %v8803_v59, %v4661_v61  ;;  %v4753_v16 = vadd.f32 %v8806_v1, %v4550_v3  ;;  %v4663_v55 = vpop.f32.mrb[111].mxu0  ;;  %5416 = vmatprep.mubr.bf16.mxu1 %v4951_v41  ;;  %v7475_v41 = vld [vmem:[#allocation16 + $0x154] ss:$8 sps:$4 sm:$0xff]  }
 0x53e   : > { %v4837_v57 = vadd.f32 %v8817_v4, %v4751_v47  ;;  %v4838_v35 = vadd.f32 %v8800_v62, %v4752_v52  ;;  %v4755_v21 = vadd.f32 %v8814_v26, %v4663_v55  ;;  %5417 = vmatmul.mubr.bf16.gmra.mrb[104].mxu1 %v4950_v0  ;;  %v4898_v18 = vmax.f32 %v4834_v42, 0.0  ;;  %v7516_v0 = vld [vmem:[#allocation19 + $0x68] sm:$0xff]   ;;  %6654 = vmatpush3.bf16.msra.mxu0 %v7515_v13 }
 0x53f   : > { %v4840_v9 = vadd.f32 %v8808_v14, %v4754_v51  ;;  %v4839_v25 = vadd.f32 %v8811_v10, %v4753_v16  ;;  %5492 = vmatpush1.bf16.msra.mxu1 %v7464_v46  ;;  %v4900_v56 = vmax.f32 %v4836_v54, 0.0  ;;  %v4899_v37 = vmax.f32 %v4835_v31, 0.0  ;;  %v7517_v54 = vld [vmem:[#allocation19 + $0x28] sm:$0xff]   ;;  %6655 = vmatprep.subr.bf16.mxu0 %v7516_v0  ;;  %v7481_v0 = vld [vmem:[#allocation16 + $0x174] ss:$8 sps:$4 sm:$0xff]  }
 0x540   : > { %v4902_v2 = vmax.f32 %v4838_v35, 0.0  ;;  %v4841_v33 = vadd.f32 %v8817_v4, %v4755_v21  ;;  %5493 = vmatprep.subr.bf16.mxu1 %v7469_v43  ;;  %v4901_v23 = vmax.f32 %v4837_v57, 0.0  ;;  %v7473_v16 = vld [vmem:[#allocation16 + $0x150] ss:$8 sps:$4 sm:$0xff]   ;;  %v7478_v21 = vld [vmem:[#allocation16 + $0x164] ss:$8 sps:$4 sm:$0xff]  }
 0x541   : > { %v4904_v6 = vmax.f32 %v4840_v9, 0.0  ;;  %v4903_v40 = vmax.f32 %v4839_v25, 0.0  ;;  %v4554_v11 = vpop.f32.mrb[80].mxu1 }
 0x542   : > { %v4905_v32 = vmax.f32 %v4841_v33, 0.0  ;;  %v4756_v24 = vadd.f32 %v8797_v49, %v4554_v11  ;;  %v4667_v48 = vpop.f32.mrb[112].mxu0  ;;  %v4556_v12 = vpop.f32.mrb[81].mxu1  ;;  %v4954_v22 = vpack.c.bf16 %v4902_v2, %v4898_v18  ;;  %6656 = vmatpush3.bf16.msra.mxu0 %v7517_v54  ;;  %v7518_v11 = vld [vmem:[#allocation19 + $0x70] sm:$0xff]  }
 0x543   : > { %v4758_v50 = vadd.f32 %v8803_v59, %v4667_v48  ;;  %v4757_v19 = vadd.f32 %v8806_v1, %v4556_v12  ;;  %v4669_v58 = vpop.f32.mrb[113].mxu0  ;;  %5494 = vmatpush1.bf16.msra.mxu1 %v7467_v63  ;;  %v4558_v34 = vpop.f32.mrb[82].mxu1  ;;  %v4955_v36 = vpack.c.bf16 %v4903_v40, %v4899_v37  ;;  %v8877_v30 = vpack.c.bf16 %v4904_v6, %v4900_v56 }
 0x544   : > { %v4842_v38 = vadd.f32 %v8800_v62, %v4756_v24  ;;  %v4759_v8 = vadd.f32 %v8814_v26, %v4669_v58  ;;  %v4760_v39 = vadd.f32 %v8797_v49, %v4558_v34  ;;  %v4671_v44 = vpop.f32.mrb[114].mxu0  ;;  %v4560_v5 = vpop.f32.mrb[83].mxu1  ;;  %5495 = vmatprep.subr.bf16.mxu1 %v7472_v15  ;;  %v8882_v46 = vpack.c.bf16 %v4905_v32, %v4901_v23 }
 0x545   : > { %v4844_v28 = vadd.f32 %v8808_v14, %v4758_v50  ;;  %v4843_v42 = vadd.f32 %v8811_v10, %v4757_v19  ;;  %v4762_v47 = vadd.f32 %v8803_v59, %v4671_v44  ;;  %v4761_v52 = vadd.f32 %v8806_v1, %v4560_v5  ;;  %v4673_v61 = vpop.f32.mrb[115].mxu0  ;;  %5426 = vmatprep.mubr.bf16.mxu1 %v4955_v36  ;;  %v7519_v50 = vld [vmem:[#allocation19 + $0x30] sm:$0xff]  }
 0x546   : > { %v4845_v3 = vadd.f32 %v8817_v4, %v4759_v8  ;;  %v4846_v43 = vadd.f32 %v8800_v62, %v4760_v39  ;;  %v4763_v60 = vadd.f32 %v8814_v26, %v4673_v61  ;;  %5427 = vmatmul.mubr.bf16.gmra.mrb[108].mxu1 %v4954_v22  ;;  %v4906_v55 = vmax.f32 %v4842_v38, 0.0  ;;  %v7476_v22 = vld [vmem:[#allocation16 + $0x160] ss:$8 sps:$4 sm:$0xff]   ;;  %6657 = vmatprep.subr.bf16.mxu0 %v7518_v11 }
 0x547   : > { %v4848_v31 = vadd.f32 %v8808_v14, %v4762_v47  ;;  %v4847_v51 = vadd.f32 %v8811_v10, %v4761_v52  ;;  %5496 = vmatpush1.bf16.msra.mxu1 %v7470_v7  ;;  %v4908_v9 = vmax.f32 %v4844_v28, 0.0  ;;  %v4907_v25 = vmax.f32 %v4843_v42, 0.0  ;;  %6658 = vmatpush3.bf16.msra.mxu0 %v7519_v50 }
 0x548   : > { %v4910_v57 = vmax.f32 %v4846_v43, 0.0  ;;  %v4849_v35 = vadd.f32 %v8817_v4, %v4763_v60  ;;  %5497 = vmatprep.subr.bf16.mxu1 %v7475_v41  ;;  %v4909_v33 = vmax.f32 %v4845_v3, 0.0  ;;  %v7479_v3 = vld [vmem:[#allocation16 + $0x170] ss:$8 sps:$4 sm:$0xff]  }
 0x549   : > { %v4912_v63 = vmax.f32 %v4848_v31, 0.0  ;;  %v4911_v18 = vmax.f32 %v4847_v51, 0.0  ;;  %v4564_v2 = vpop.f32.mrb[84].mxu1  ;;  %v7484_v31 = vld [vmem:[#allocation16 + $0x184] ss:$8 sps:$4 sm:$0xff]  }
 0x54a   : > { %v4913_v15 = vmax.f32 %v4849_v35, 0.0  ;;  %v4764_v56 = vadd.f32 %v8797_v49, %v4564_v2  ;;  %v4677_v37 = vpop.f32.mrb[116].mxu0  ;;  %v4566_v6 = vpop.f32.mrb[85].mxu1  ;;  %v4958_v40 = vpack.c.bf16 %v4910_v57, %v4906_v55 }
 0x54b   : > { %v4766_v23 = vadd.f32 %v8803_v59, %v4677_v37  ;;  %v4765_v32 = vadd.f32 %v8806_v1, %v4566_v6  ;;  %v4679_v24 = vpop.f32.mrb[117].mxu0  ;;  %5498 = vmatpush1.bf16.msra.mxu1 %v7473_v16  ;;  %v4568_v48 = vpop.f32.mrb[86].mxu1  ;;  %v4959_v12 = vpack.c.bf16 %v4911_v18, %v4907_v25  ;;  %v8897_v13 = vpack.c.bf16 %v4912_v63, %v4908_v9 }
 0x54c   : > { %v4850_v19 = vadd.f32 %v8800_v62, %v4764_v56  ;;  %v4767_v58 = vadd.f32 %v8814_v26, %v4679_v24  ;;  %v4768_v34 = vadd.f32 %v8797_v49, %v4568_v48  ;;  %v4681_v36 = vpop.f32.mrb[118].mxu0  ;;  %v4570_v7 = vpop.f32.mrb[87].mxu1  ;;  %5499 = vmatprep.subr.bf16.mxu1 %v7478_v21  ;;  %v8902_v38 = vpack.c.bf16 %v4913_v15, %v4909_v33 }
 0x54d   : > { %v4852_v8 = vadd.f32 %v8808_v14, %v4766_v23  ;;  %v4851_v39 = vadd.f32 %v8811_v10, %v4765_v32  ;;  %v4770_v44 = vadd.f32 %v8803_v59, %v4681_v36  ;;  %v4769_v5 = vadd.f32 %v8806_v1, %v4570_v7  ;;  %v4683_v41 = vpop.f32.mrb[119].mxu0  ;;  %5436 = vmatprep.mubr.bf16.mxu1 %v4959_v12 }
 0x54e   : > { %v4853_v28 = vadd.f32 %v8817_v4, %v4767_v58  ;;  %v4854_v42 = vadd.f32 %v8800_v62, %v4768_v34  ;;  %v4771_v47 = vadd.f32 %v8814_v26, %v4683_v41  ;;  %5437 = vmatmul.mubr.bf16.gmra.mrb[112].mxu1 %v4958_v40  ;;  %v4914_v43 = vmax.f32 %v4850_v19, 0.0  ;;  %v7482_v40 = vld [vmem:[#allocation16 + $0x180] ss:$8 sps:$4 sm:$0xff]   ;;  %v7485_v41 = vld [vmem:[#allocation16 + $0x190] ss:$8 sps:$4 sm:$0xff]  }
 0x54f   : > { %v4856_v52 = vadd.f32 %v8808_v14, %v4770_v44  ;;  %v4855_v61 = vadd.f32 %v8811_v10, %v4769_v5  ;;  %5500 = vmatpush1.bf16.msra.mxu1 %v7476_v22  ;;  %v4916_v51 = vmax.f32 %v4852_v8, 0.0  ;;  %v4915_v16 = vmax.f32 %v4851_v39, 0.0  ;;  %v7487_v22 = vld [vmem:[#allocation16 + $0x194] ss:$8 sps:$4 sm:$0xff]  }
 0x550   : > { %v4918_v60 = vmax.f32 %v4854_v42, 0.0  ;;  %v4857_v54 = vadd.f32 %v8817_v4, %v4771_v47  ;;  %5501 = vmatprep.subr.bf16.mxu1 %v7481_v0  ;;  %v4917_v21 = vmax.f32 %v4853_v28, 0.0 }
 0x551   : > { %v4920_v55 = vmax.f32 %v4856_v52, 0.0  ;;  %v4919_v57 = vmax.f32 %v4855_v61, 0.0  ;;  %v4574_v35 = vpop.f32.mrb[88].mxu1  ;;  %v7490_v52 = vld [vmem:[#allocation16 + $0x1a4] ss:$8 sps:$4 sm:$0xff]  }
 0x552   : > { %v4921_v9 = vmax.f32 %v4857_v54, 0.0  ;;  %v4772_v25 = vadd.f32 %v8797_v49, %v4574_v35  ;;  %v4687_v63 = vpop.f32.mrb[120].mxu0  ;;  %v4576_v18 = vpop.f32.mrb[89].mxu1  ;;  %v4962_v2 = vpack.c.bf16 %v4918_v60, %v4914_v43 }
 0x553   : > { %v4774_v33 = vadd.f32 %v8803_v59, %v4687_v63  ;;  %v4773_v15 = vadd.f32 %v8806_v1, %v4576_v18  ;;  %v4689_v56 = vpop.f32.mrb[121].mxu0  ;;  %5502 = vmatpush1.bf16.msra.mxu1 %v7479_v3  ;;  %v4578_v37 = vpop.f32.mrb[90].mxu1  ;;  %v4963_v6 = vpack.c.bf16 %v4919_v57, %v4915_v16  ;;  %v8917_v11 = vpack.c.bf16 %v4920_v55, %v4916_v51 }
 0x554   : > { %v4858_v23 = vadd.f32 %v8800_v62, %v4772_v25  ;;  %v4775_v32 = vadd.f32 %v8814_v26, %v4689_v56  ;;  %v4776_v24 = vadd.f32 %v8797_v49, %v4578_v37  ;;  %v4691_v48 = vpop.f32.mrb[122].mxu0  ;;  %v4580_v12 = vpop.f32.mrb[91].mxu1  ;;  %5503 = vmatprep.subr.bf16.mxu1 %v7484_v31  ;;  %v8922_v50 = vpack.c.bf16 %v4921_v9, %v4917_v21 }
 0x555   : > { %v4860_v19 = vadd.f32 %v8808_v14, %v4774_v33  ;;  %v4859_v58 = vadd.f32 %v8811_v10, %v4773_v15  ;;  %v4778_v34 = vadd.f32 %v8803_v59, %v4691_v48  ;;  %v4777_v36 = vadd.f32 %v8806_v1, %v4580_v12  ;;  %v4693_v7 = vpop.f32.mrb[123].mxu0  ;;  %5446 = vmatprep.mubr.bf16.mxu1 %v4963_v6 }
 0x556   : > { %v4861_v0 = vadd.f32 %v8817_v4, %v4775_v32  ;;  %v4862_v8 = vadd.f32 %v8800_v62, %v4776_v24  ;;  %v4779_v39 = vadd.f32 %v8814_v26, %v4693_v7  ;;  %5447 = vmatmul.mubr.bf16.gmra.mrb[116].mxu1 %v4962_v2  ;;  %v4922_v28 = vmax.f32 %v4858_v23, 0.0  ;;  %v7488_v2 = vld [vmem:[#allocation16 + $0x1a0] ss:$8 sps:$4 sm:$0xff]   ;;  %v7493_v23 = vld [vmem:[#allocation16 + $0x1b4] ss:$8 sps:$4 sm:$0xff]  }
 0x557   : > { %v4864_v44 = vadd.f32 %v8808_v14, %v4778_v34  ;;  %v4863_v5 = vadd.f32 %v8811_v10, %v4777_v36  ;;  %5504 = vmatpush1.bf16.msra.mxu1 %v7482_v40  ;;  %v4924_v61 = vmax.f32 %v4860_v19, 0.0  ;;  %v4923_v3 = vmax.f32 %v4859_v58, 0.0 }
 0x558   : > { %v4926_v42 = vmax.f32 %v4862_v8, 0.0  ;;  %v4865_v47 = vadd.f32 %v8817_v4, %v4779_v39  ;;  %5505 = vmatprep.subr.bf16.mxu1 %v7487_v22  ;;  %v4925_v31 = vmax.f32 %v4861_v0, 0.0  ;;  %v7491_v8 = vld [vmem:[#allocation16 + $0x1b0] ss:$8 sps:$4 sm:$0xff]  }
 0x559   : > { %v4928_v43 = vmax.f32 %v4864_v44, 0.0  ;;  %v4927_v60 = vmax.f32 %v4863_v5, 0.0  ;;  %v4584_v54 = vpop.f32.mrb[92].mxu1 }
 0x55a   : > { %v4929_v51 = vmax.f32 %v4865_v47, 0.0  ;;  %v4780_v16 = vadd.f32 %v8797_v49, %v4584_v54  ;;  %v4697_v55 = vpop.f32.mrb[124].mxu0  ;;  %v4586_v57 = vpop.f32.mrb[93].mxu1  ;;  %v4966_v35 = vpack.c.bf16 %v4926_v42, %v4922_v28 }
 0x55b   : > { %v4782_v21 = vadd.f32 %v8803_v59, %v4697_v55  ;;  %v4781_v9 = vadd.f32 %v8806_v1, %v4586_v57  ;;  %v4699_v25 = vpop.f32.mrb[125].mxu0  ;;  %5506 = vmatpush1.bf16.msra.mxu1 %v7485_v41  ;;  %v4588_v63 = vpop.f32.mrb[94].mxu1  ;;  %v4967_v18 = vpack.c.bf16 %v4927_v60, %v4923_v3  ;;  %v8937_v33 = vpack.c.bf16 %v4928_v43, %v4924_v61  ;;  %v7496_v41 = vld [vmem:[#allocation16 + $0x1c4] ss:$8 sps:$4 sm:$0xff]  }
 0x55c   : > { %v4866_v15 = vadd.f32 %v8800_v62, %v4780_v16  ;;  %v4783_v56 = vadd.f32 %v8814_v26, %v4699_v25  ;;  %v4784_v37 = vadd.f32 %v8797_v49, %v4588_v63  ;;  %v4701_v6 = vpop.f32.mrb[126].mxu0  ;;  %v4590_v40 = vpop.f32.mrb[95].mxu1  ;;  %5507 = vmatprep.subr.bf16.mxu1 %v7490_v52  ;;  %v8942_v32 = vpack.c.bf16 %v4929_v51, %v4925_v31 }
 0x55d   : > { %v4868_v24 = vadd.f32 %v8808_v14, %v4782_v21  ;;  %v4867_v48 = vadd.f32 %v8811_v10, %v4781_v9  ;;  %v4786_v12 = vadd.f32 %v8803_v59, %v4701_v6  ;;  %v4785_v22 = vadd.f32 %v8806_v1, %v4590_v40  ;;  %v4703_v19 = vpop.f32.mrb[127].mxu0  ;;  %5456 = vmatprep.mubr.bf16.mxu1 %v4967_v18  ;;  %v7494_v9 = vld [vmem:[#allocation16 + $0x1c0] ss:$8 sps:$4 sm:$0xff]  }
 0x55e   : > { %v4869_v58 = vadd.f32 %v8817_v4, %v4783_v56  ;;  %v4870_v34 = vadd.f32 %v8800_v62, %v4784_v37  ;;  %v4787_v36 = vadd.f32 %v8814_v26, %v4703_v19  ;;  %5457 = vmatmul.mubr.bf16.gmra.mrb[120].mxu1 %v4966_v35  ;;  %v4930_v39 = vmax.f32 %v4866_v15, 0.0  ;;  %v7499_v37 = vld [vmem:[#allocation16 + $0x1d4] ss:$8 sps:$4 sm:$0xff]  }
 0x55f   : > { %v4872_v7 = vadd.f32 %v8808_v14, %v4786_v12  ;;  %v4871_v0 = vadd.f32 %v8811_v10, %v4785_v22  ;;  %5508 = vmatpush1.bf16.msra.mxu1 %v7488_v2  ;;  %v4932_v28 = vmax.f32 %v4868_v24, 0.0  ;;  %v4931_v42 = vmax.f32 %v4867_v48, 0.0 }
 0x560   : > { %v4934_v44 = vmax.f32 %v4870_v34, 0.0  ;;  %v4873_v5 = vadd.f32 %v8817_v4, %v4787_v36  ;;  %5509 = vmatprep.subr.bf16.mxu1 %v7493_v23  ;;  %v4933_v3 = vmax.f32 %v4869_v58, 0.0  ;;  %v7497_v36 = vld [vmem:[#allocation16 + $0x1d0] ss:$8 sps:$4 sm:$0xff]  }
 0x561   : > { %v4936_v47 = vmax.f32 %v4872_v7, 0.0  ;;  %v4935_v52 = vmax.f32 %v4871_v0, 0.0  ;;  %v4594_v61 = vpop.f32.mrb[96].mxu1 }
 0x562   : > { %v4937_v43 = vmax.f32 %v4873_v5, 0.0  ;;  %v4788_v60 = vadd.f32 %v8797_v49, %v4594_v61  ;;  %v4707_v54 = vpop.f32.mrb[128].mxu0  ;;  %v4596_v31 = vpop.f32.mrb[97].mxu1  ;;  %v4970_v51 = vpack.c.bf16 %v4934_v44, %v4930_v39 }
 0x563   : > { %v4790_v16 = vadd.f32 %v8803_v59, %v4707_v54  ;;  %v4789_v55 = vadd.f32 %v8806_v1, %v4596_v31  ;;  %v4709_v57 = vpop.f32.mrb[129].mxu0  ;;  %5510 = vmatpush1.bf16.msra.mxu1 %v7491_v8  ;;  %v4598_v35 = vpop.f32.mrb[98].mxu1  ;;  %v4971_v21 = vpack.c.bf16 %v4935_v52, %v4931_v42  ;;  %v4972_v25 = vpack.c.bf16 %v4936_v47, %v4932_v28 }
 0x564   : > { %v4874_v63 = vadd.f32 %v8800_v62, %v4788_v60  ;;  %v4791_v18 = vadd.f32 %v8814_v26, %v4709_v57  ;;  %v4792_v2 = vadd.f32 %v8797_v49, %v4598_v35  ;;  %v4711_v15 = vpop.f32.mrb[130].mxu0  ;;  %v4600_v56 = vpop.f32.mrb[99].mxu1  ;;  %5511 = vmatprep.subr.bf16.mxu1 %v7496_v41  ;;  %v4973_v6 = vpack.c.bf16 %v4937_v43, %v4933_v3 }
 0x565   : > { %v4876_v40 = vadd.f32 %v8808_v14, %v4790_v16  ;;  %v4875_v23 = vadd.f32 %v8811_v10, %v4789_v55  ;;  %v4794_v24 = vadd.f32 %v8803_v59, %v4711_v15  ;;  %v4793_v48 = vadd.f32 %v8806_v1, %v4600_v56  ;;  %v4713_v12 = vpop.f32.mrb[131].mxu0  ;;  %5466 = vmatprep.mubr.bf16.mxu1 %v4971_v21  ;;  %v7502_v1 = vld [vmem:[#allocation16 + $0x1e4] ss:$8 sps:$4 sm:$0xff]  }
 0x566   : > { %v4877_v22 = vadd.f32 %v8817_v4, %v4791_v18  ;;  %v4878_v19 = vadd.f32 %v8800_v62, %v4792_v2  ;;  %v4795_v49 = vadd.f32 %v8814_v26, %v4713_v12  ;;  %5467 = vmatmul.mubr.bf16.gmra.mrb[124].mxu1 %v4970_v51  ;;  %v4938_v7 = vmax.f32 %v4874_v63, 0.0 }
 0x567   : > { %v4880_v58 = vadd.f32 %v8808_v14, %v4794_v24  ;;  %v4879_v34 = vadd.f32 %v8811_v10, %v4793_v48  ;;  %5512 = vmatpush1.bf16.msra.mxu1 %v7494_v9  ;;  %v4940_v8 = vmax.f32 %v4876_v40, 0.0  ;;  %v4939_v39 = vmax.f32 %v4875_v23, 0.0  ;;  %v7500_v14 = vld [vmem:[#allocation16 + $0x1e0] ss:$8 sps:$4 sm:$0xff]   ;;  %v7505_v10 = vld [vmem:[#allocation16 + $0x1f4] ss:$8 sps:$4 sm:$0xff]  }
 0x568   : > { %v4942_v0 = vmax.f32 %v4878_v19, 0.0  ;;  %v4881_v59 = vadd.f32 %v8817_v4, %v4795_v49  ;;  %5513 = vmatprep.subr.bf16.mxu1 %v7499_v37  ;;  %v4941_v62 = vmax.f32 %v4877_v22, 0.0  ;;  %v7503_v4 = vld [vmem:[#allocation16 + $0x1f0] ss:$8 sps:$4 sm:$0xff]  }
 0x569   : > { %v4944_v44 = vmax.f32 %v4880_v58, 0.0  ;;  %v4943_v5 = vmax.f32 %v4879_v34, 0.0 }
 0x56a   : > { %v4945_v41 = vmax.f32 %v4881_v59, 0.0  ;;  %v4974_v26 = vpack.c.bf16 %v4942_v0, %v4938_v7 }
 0x56b   : > { %5514 = vmatpush1.bf16.msra.mxu1 %v7497_v36  ;;  %v4975_v28 = vpack.c.bf16 %v4943_v5, %v4939_v39  ;;  %v4976_v42 = vpack.c.bf16 %v4944_v44, %v4940_v8 }
 0x56c   : > { %5515 = vmatprep.subr.bf16.mxu1 %v7502_v1  ;;  %v4977_v47 = vpack.c.bf16 %v4945_v41, %v4941_v62 }
 0x56d   : > { %5476 = vmatprep.mubr.bf16.mxu1 %v4975_v28 }
 0x56e   : > { %5477 = vmatmul.mubr.bf16.gmra.mrb[128].mxu1 %v4974_v26 }
 0x56f   : > { %5516 = vmatpush1.bf16.msra.mxu1 %v7500_v14  ;;  %5519 = vmatprep.mubr.bf16.mxu1 %v8842_v45  ;;  %v7521_v45 = vld [vmem:[#allocation19 + $0x38] sm:$0xff]  }
 0x570   : > { %5517 = vmatprep.subr.bf16.mxu1 %v7505_v10 }
 0x573   : > { %5518 = vmatpush1.bf16.msra.mxu1 %v7503_v4 }
 0x576   : > { %5520 = vmatmul.mubr.bf16.vlgmr.msra.gmra.mrb[100].mxu1 %v8835_v53  ;;  %v7520_v53 = vld [vmem:[#allocation19 + $0x78] sm:$0xff]  }
 0x577   : > { %5529 = vmatprep.mubr.bf16.mxu1 %v8862_v17  ;;  %6659 = vmatprep.subr.bf16.mxu0 %v7520_v53 }
 0x578   : > { %6660 = vmatpush3.bf16.msra.mxu0 %v7521_v45 }
 0x57e   : > { %5530 = vmatmul.mubr.bf16.gmra.mrb[104].mxu1 %v8857_v20  ;;  %v5042_v20 = vld [vmem:[#allocation17] sm:$0x3] }
 0x57f   : > { %5539 = vmatprep.mubr.bf16.mxu1 %v8882_v46  ;;  %v8983_v17 = vrot.slane %v5042_v20, %v8455_v27 }
 0x586   : > { %5540 = vmatmul.mubr.bf16.gmra.mrb[108].mxu1 %v8877_v30  ;;  %v8986_v30 = vrot.slane %v5042_v20, %v8458_v29 }
 0x587   : > { %5549 = vmatprep.mubr.bf16.mxu1 %v8902_v38 }
 0x58e   : > { %5550 = vmatmul.mubr.bf16.gmra.mrb[112].mxu1 %v8897_v13 }
 0x58f   : > { %5559 = vmatprep.mubr.bf16.mxu1 %v8922_v50 }
 0x596   : > { %5560 = vmatmul.mubr.bf16.gmra.mrb[116].mxu1 %v8917_v11 }
 0x597   : > { %5569 = vmatprep.mubr.bf16.mxu1 %v8942_v32 }
 0x59e   : > { %5570 = vmatmul.mubr.bf16.gmra.mrb[120].mxu1 %v8937_v33 }
 0x59f   : > { %5579 = vmatprep.mubr.bf16.mxu1 %v4973_v6 }
 0x5a6   : > { %5580 = vmatmul.mubr.bf16.gmra.mrb[124].mxu1 %v4972_v25 }
 0x5a7   : > { %5589 = vmatprep.mubr.bf16.mxu1 %v4977_v47 }
 0x5ae   : > { %5590 = vmatmul.mubr.bf16.gmra.mrb[128].mxu1 %v4976_v42 }
 0x649   : > { %v5521_v46 = vpop.f32.mrb[100].mxu1 }
 0x64a   : > { %v6709_v13 = vadd.f32 %v5521_v46, %v8983_v17  ;;  %v5523_v38 = vpop.f32.mrb[101].mxu1 }
 0x64b   : > { %v6710_v11 = vadd.f32 %v5523_v38, %v8986_v30  ;;  %v5525_v50 = vpop.f32.mrb[102].mxu1 }
 0x64c   : > { %v6711_v33 = vadd.f32 %v5525_v50, %v8983_v17  ;;  %v5527_v32 = vpop.f32.mrb[103].mxu1  ;;  %v5600_v61 = vmax.f32 %v6709_v13, 0.0 }
 0x64d   : > { %v6712_v52 = vadd.f32 %v5527_v32, %v8986_v30  ;;  %v5601_v43 = vmax.f32 %v6710_v11, 0.0 }
 0x64e   : > { %v5602_v3 = vmax.f32 %v6711_v33, 0.0 }
 0x64f   : > { %v5603_v27 = vmax.f32 %v6712_v52, 0.0 }
 0x650   : > { %v5632_v60 = vpack.c.bf16 %v5602_v3, %v5600_v61 }
 0x651   : > { %v5633_v54 = vpack.c.bf16 %v5603_v27, %v5601_v43  ;;  %v5531_v29 = vpop.f32.mrb[104].mxu1 }
 0x652   : > { %v6713_v31 = vadd.f32 %v5531_v29, %v8983_v17  ;;  %v5533_v51 = vpop.f32.mrb[105].mxu1 }
 0x653   : > { %v6714_v16 = vadd.f32 %v5533_v51, %v8986_v30  ;;  %v5535_v55 = vpop.f32.mrb[106].mxu1  ;;  %5815 = vmatprep.mubr.bf16.mxu0 %v5633_v54 }
 0x654   : > { %v6715_v57 = vadd.f32 %v5535_v55, %v8983_v17  ;;  %v5537_v35 = vpop.f32.mrb[107].mxu1  ;;  %5816 = vmatmul.mubr.bf16.vlgmr.msra.gmra.mrb[132].mxu0 %v5632_v60  ;;  %v5604_v9 = vmax.f32 %v6713_v31, 0.0 }
 0x655   : > { %v6716_v21 = vadd.f32 %v5537_v35, %v8986_v30  ;;  %v5605_v63 = vmax.f32 %v6714_v16, 0.0 }
 0x656   : > { %v5606_v25 = vmax.f32 %v6715_v57, 0.0 }
 0x657   : > { %v5607_v18 = vmax.f32 %v6716_v21, 0.0 }
 0x658   : > { %v5634_v2 = vpack.c.bf16 %v5606_v25, %v5604_v9 }
 0x659   : > { %v5635_v15 = vpack.c.bf16 %v5607_v18, %v5605_v63  ;;  %v5541_v56 = vpop.f32.mrb[108].mxu1 }
 0x65a   : > { %v6717_v37 = vadd.f32 %v5541_v56, %v8983_v17  ;;  %v5543_v6 = vpop.f32.mrb[109].mxu1 }
 0x65b   : > { %v6718_v40 = vadd.f32 %v5543_v6, %v8986_v30  ;;  %v5545_v23 = vpop.f32.mrb[110].mxu1  ;;  %5823 = vmatprep.mubr.bf16.mxu0 %v5635_v15 }
 0x65c   : > { %v6719_v24 = vadd.f32 %v5545_v23, %v8983_v17  ;;  %v5547_v48 = vpop.f32.mrb[111].mxu1  ;;  %5824 = vmatmul.mubr.bf16.gmra.mrb[136].mxu0 %v5634_v2  ;;  %v5608_v22 = vmax.f32 %v6717_v37, 0.0 }
 0x65d   : > { %v6720_v12 = vadd.f32 %v5547_v48, %v8986_v30  ;;  %v5609_v49 = vmax.f32 %v6718_v40, 0.0 }
 0x65e   : > { %v5610_v19 = vmax.f32 %v6719_v24, 0.0 }
 0x65f   : > { %v5611_v58 = vmax.f32 %v6720_v12, 0.0 }
 0x660   : > { %v5636_v34 = vpack.c.bf16 %v5610_v19, %v5608_v22 }
 0x661   : > { %v5637_v36 = vpack.c.bf16 %v5611_v58, %v5609_v49  ;;  %v5551_v7 = vpop.f32.mrb[112].mxu1 }
 0x662   : > { %v6721_v0 = vadd.f32 %v5551_v7, %v8983_v17  ;;  %v5553_v59 = vpop.f32.mrb[113].mxu1 }
 0x663   : > { %v6722_v1 = vadd.f32 %v5553_v59, %v8986_v30  ;;  %v5555_v8 = vpop.f32.mrb[114].mxu1  ;;  %5831 = vmatprep.mubr.bf16.mxu0 %v5637_v36 }
 0x664   : > { %v6723_v39 = vadd.f32 %v5555_v8, %v8983_v17  ;;  %v5557_v44 = vpop.f32.mrb[115].mxu1  ;;  %5832 = vmatmul.mubr.bf16.gmra.mrb[140].mxu0 %v5636_v34  ;;  %v5612_v62 = vmax.f32 %v6721_v0, 0.0 }
 0x665   : > { %v6724_v5 = vadd.f32 %v5557_v44, %v8986_v30  ;;  %v5613_v26 = vmax.f32 %v6722_v1, 0.0 }
 0x666   : > { %v5614_v41 = vmax.f32 %v6723_v39, 0.0 }
 0x667   : > { %v5615_v28 = vmax.f32 %v6724_v5, 0.0 }
 0x668   : > { %v5638_v14 = vpack.c.bf16 %v5614_v41, %v5612_v62  ;;  %v9021_v41 = vld [vmem:[#allocation20] ss:$0 sm:$0xff] }
 0x669   : > { %v5639_v42 = vpack.c.bf16 %v5615_v28, %v5613_v26  ;;  %v5561_v10 = vpop.f32.mrb[116].mxu1 }
 0x66a   : > { %v6725_v47 = vadd.f32 %v5561_v10, %v8983_v17  ;;  %v5563_v4 = vpop.f32.mrb[117].mxu1 }
 0x66b   : > { %v6726_v53 = vadd.f32 %v5563_v4, %v8986_v30  ;;  %v5565_v45 = vpop.f32.mrb[118].mxu1  ;;  %5839 = vmatprep.mubr.bf16.mxu0 %v5639_v42 }
 0x66c   : > { %v6727_v20 = vadd.f32 %v5565_v45, %v8983_v17  ;;  %v5567_v46 = vpop.f32.mrb[119].mxu1  ;;  %5840 = vmatmul.mubr.bf16.gmra.mrb[144].mxu0 %v5638_v14  ;;  %v5616_v38 = vmax.f32 %v6725_v47, 0.0 }
 0x66d   : > { %v6728_v13 = vadd.f32 %v5567_v46, %v8986_v30  ;;  %v5617_v50 = vmax.f32 %v6726_v53, 0.0 }
 0x66e   : > { %v5618_v11 = vmax.f32 %v6727_v20, 0.0 }
 0x66f   : > { %v5619_v33 = vmax.f32 %v6728_v13, 0.0 }
 0x670   : > { %v5640_v32 = vpack.c.bf16 %v5618_v11, %v5616_v38 }
 0x671   : > { %v5641_v52 = vpack.c.bf16 %v5619_v33, %v5617_v50  ;;  %v5571_v61 = vpop.f32.mrb[120].mxu1 }
 0x672   : > { %v6729_v3 = vadd.f32 %v5571_v61, %v8983_v17  ;;  %v5573_v43 = vpop.f32.mrb[121].mxu1 }
 0x673   : > { %v6730_v27 = vadd.f32 %v5573_v43, %v8986_v30  ;;  %v5575_v60 = vpop.f32.mrb[122].mxu1  ;;  %5847 = vmatprep.mubr.bf16.mxu0 %v5641_v52 }
 0x674   : > { %v6731_v54 = vadd.f32 %v5575_v60, %v8983_v17  ;;  %v5577_v29 = vpop.f32.mrb[123].mxu1  ;;  %5848 = vmatmul.mubr.bf16.gmra.mrb[148].mxu0 %v5640_v32  ;;  %v5620_v51 = vmax.f32 %v6729_v3, 0.0 }
 0x675   : > { %v6732_v31 = vadd.f32 %v5577_v29, %v8986_v30  ;;  %v5621_v55 = vmax.f32 %v6730_v27, 0.0 }
 0x676   : > { %v5622_v16 = vmax.f32 %v6731_v54, 0.0 }
 0x677   : > { %v5623_v57 = vmax.f32 %v6732_v31, 0.0 }
 0x678   : > { %v5642_v35 = vpack.c.bf16 %v5622_v16, %v5620_v51 }
 0x679   : > { %v5643_v21 = vpack.c.bf16 %v5623_v57, %v5621_v55  ;;  %v5581_v9 = vpop.f32.mrb[124].mxu1 }
 0x67a   : > { %v6733_v25 = vadd.f32 %v5581_v9, %v8983_v17  ;;  %v5583_v63 = vpop.f32.mrb[125].mxu1 }
 0x67b   : > { %v6734_v18 = vadd.f32 %v5583_v63, %v8986_v30  ;;  %v5585_v2 = vpop.f32.mrb[126].mxu1  ;;  %5855 = vmatprep.mubr.bf16.mxu0 %v5643_v21 }
 0x67c   : > { %v6735_v15 = vadd.f32 %v5585_v2, %v8983_v17  ;;  %v5587_v56 = vpop.f32.mrb[127].mxu1  ;;  %5856 = vmatmul.mubr.bf16.gmra.mrb[152].mxu0 %v5642_v35  ;;  %v5624_v6 = vmax.f32 %v6733_v25, 0.0 }
 0x67d   : > { %v6736_v37 = vadd.f32 %v5587_v56, %v8986_v30  ;;  %v5625_v23 = vmax.f32 %v6734_v18, 0.0 }
 0x67e   : > { %v5626_v40 = vmax.f32 %v6735_v15, 0.0 }
 0x67f   : > { %v5627_v24 = vmax.f32 %v6736_v37, 0.0 }
 0x680   : > { %v5644_v48 = vpack.c.bf16 %v5626_v40, %v5624_v6 }
 0x681   : > { %v5645_v12 = vpack.c.bf16 %v5627_v24, %v5625_v23  ;;  %v5591_v22 = vpop.f32.mrb[128].mxu1 }
 0x682   : > { %v6737_v19 = vadd.f32 %v5591_v22, %v8983_v17  ;;  %v5593_v49 = vpop.f32.mrb[129].mxu1 }
 0x683   : > { %v6738_v58 = vadd.f32 %v5593_v49, %v8986_v30  ;;  %v5595_v34 = vpop.f32.mrb[130].mxu1  ;;  %5863 = vmatprep.mubr.bf16.mxu0 %v5645_v12 }
 0x684   : > { %v6739_v36 = vadd.f32 %v5595_v34, %v8983_v17  ;;  %v5597_v7 = vpop.f32.mrb[131].mxu1  ;;  %5864 = vmatmul.mubr.bf16.gmra.mrb[156].mxu0 %v5644_v48  ;;  %v5628_v59 = vmax.f32 %v6737_v19, 0.0 }
 0x685   : > { %v6740_v0 = vadd.f32 %v5597_v7, %v8986_v30  ;;  %v5629_v8 = vmax.f32 %v6738_v58, 0.0 }
 0x686   : > { %v5630_v1 = vmax.f32 %v6739_v36, 0.0 }
 0x687   : > { %v5631_v39 = vmax.f32 %v6740_v0, 0.0 }
 0x688   : > { %v5646_v44 = vpack.c.bf16 %v5630_v1, %v5628_v59 }
 0x689   : > { %v5647_v5 = vpack.c.bf16 %v5631_v39, %v5629_v8 }
 0x68b   : > { %5871 = vmatprep.mubr.bf16.mxu0 %v5647_v5 }
 0x68c   : > { %5872 = vmatmul.mubr.bf16.gmra.mrb[160].mxu0 %v5646_v44 }
 0x727   : > { %v6661_v62 = vpop.f32.mrb[132].mxu0 }
 0x728   : > { %v6662_v26 = vpop.f32.mrb[133].mxu0 }
 0x729   : > { %v6663_v28 = vadd.f32 %v6662_v26, %v6661_v62  ;;  %v6664_v14 = vpop.f32.mrb[134].mxu0 }
 0x72a   : > { %v6665_v17 = vpop.f32.mrb[135].mxu0 }
 0x72b   : > { %v5818_v42 = vadd.f32 %v6663_v28, %v9021_v41  ;;  %v6666_v30 = vadd.f32 %v6665_v17, %v6664_v14 }
 0x72d   : > { %5881 = vst.msk [vmem:[%s9024_s29] sm:$0xff] %vm5880_vm2, %v5818_v42  ;;  %v5821_v10 = vadd.f32 %v6666_v30, %v9021_v41 }
 0x72f   : > { %5882 = vst.msk [vmem:[%s9024_s29 + $0x8] sm:$0xff] %vm5880_vm2, %v5821_v10  ;;  %v6667_v47 = vpop.f32.mrb[136].mxu0 }
 0x730   : > { %v6668_v4 = vpop.f32.mrb[137].mxu0 }
 0x731   : > { %v6669_v53 = vadd.f32 %v6668_v4, %v6667_v47  ;;  %v6670_v45 = vpop.f32.mrb[138].mxu0 }
 0x732   : > { %v6671_v20 = vpop.f32.mrb[139].mxu0 }
 0x733   : > { %v5826_v46 = vadd.f32 %v6669_v53, %v9021_v41  ;;  %v6672_v13 = vadd.f32 %v6671_v20, %v6670_v45 }
 0x735   : > { %5883 = vst.msk [vmem:[%s9024_s29 + $0x10] sm:$0xff] %vm5880_vm2, %v5826_v46  ;;  %v5829_v38 = vadd.f32 %v6672_v13, %v9021_v41 }
 0x737   : > { %5884 = vst.msk [vmem:[%s9024_s29 + $0x18] sm:$0xff] %vm5880_vm2, %v5829_v38  ;;  %v6673_v11 = vpop.f32.mrb[140].mxu0 }
 0x738   : > { %v6674_v50 = vpop.f32.mrb[141].mxu0 }
 0x739   : > { %v6675_v33 = vadd.f32 %v6674_v50, %v6673_v11  ;;  %v6676_v32 = vpop.f32.mrb[142].mxu0 }
 0x73a   : > { %v6677_v52 = vpop.f32.mrb[143].mxu0 }
 0x73b   : > { %v5834_v61 = vadd.f32 %v6675_v33, %v9021_v41  ;;  %v6678_v3 = vadd.f32 %v6677_v52, %v6676_v32 }
 0x73d   : > { %5885 = vst.msk [vmem:[%s9024_s29 + $0x20] sm:$0xff] %vm5880_vm2, %v5834_v61  ;;  %v5837_v43 = vadd.f32 %v6678_v3, %v9021_v41 }
 0x73f   : > { %5886 = vst.msk [vmem:[%s9024_s29 + $0x28] sm:$0xff] %vm5880_vm2, %v5837_v43  ;;  %v6679_v27 = vpop.f32.mrb[144].mxu0 }
 0x740   : > { %v6680_v60 = vpop.f32.mrb[145].mxu0 }
 0x741   : > { %v6681_v54 = vadd.f32 %v6680_v60, %v6679_v27  ;;  %v6682_v29 = vpop.f32.mrb[146].mxu0 }
 0x742   : > { %v6683_v31 = vpop.f32.mrb[147].mxu0 }
 0x743   : > { %v5842_v51 = vadd.f32 %v6681_v54, %v9021_v41  ;;  %v6684_v16 = vadd.f32 %v6683_v31, %v6682_v29 }
 0x745   : > { %5887 = vst.msk [vmem:[%s9024_s29 + $0x30] sm:$0xff] %vm5880_vm2, %v5842_v51  ;;  %v5845_v55 = vadd.f32 %v6684_v16, %v9021_v41 }
 0x747   : > { %5888 = vst.msk [vmem:[%s9024_s29 + $0x38] sm:$0xff] %vm5880_vm2, %v5845_v55  ;;  %v6685_v57 = vpop.f32.mrb[148].mxu0 }
 0x748   : > { %v6686_v35 = vpop.f32.mrb[149].mxu0 }
 0x749   : > { %v6687_v21 = vadd.f32 %v6686_v35, %v6685_v57  ;;  %v6688_v9 = vpop.f32.mrb[150].mxu0 }
 0x74a   : > { %v6689_v25 = vpop.f32.mrb[151].mxu0 }
 0x74b   : > { %v5850_v63 = vadd.f32 %v6687_v21, %v9021_v41  ;;  %v6690_v18 = vadd.f32 %v6689_v25, %v6688_v9 }
 0x74d   : > { %5889 = vst.msk [vmem:[%s9024_s29 + $0x40] sm:$0xff] %vm5880_vm2, %v5850_v63  ;;  %v5853_v2 = vadd.f32 %v6690_v18, %v9021_v41 }
 0x74f   : > { %5890 = vst.msk [vmem:[%s9024_s29 + $0x48] sm:$0xff] %vm5880_vm2, %v5853_v2  ;;  %v6691_v15 = vpop.f32.mrb[152].mxu0 }
 0x750   : > { %v6692_v56 = vpop.f32.mrb[153].mxu0 }
 0x751   : > { %v6693_v37 = vadd.f32 %v6692_v56, %v6691_v15  ;;  %v6694_v6 = vpop.f32.mrb[154].mxu0 }
 0x752   : > { %v6695_v40 = vpop.f32.mrb[155].mxu0 }
 0x753   : > { %v5858_v23 = vadd.f32 %v6693_v37, %v9021_v41  ;;  %v6696_v24 = vadd.f32 %v6695_v40, %v6694_v6 }
 0x755   : > { %5891 = vst.msk [vmem:[%s9024_s29 + $0x50] sm:$0xff] %vm5880_vm2, %v5858_v23  ;;  %v5861_v48 = vadd.f32 %v6696_v24, %v9021_v41 }
 0x757   : > { %5892 = vst.msk [vmem:[%s9024_s29 + $0x58] sm:$0xff] %vm5880_vm2, %v5861_v48  ;;  %v6697_v12 = vpop.f32.mrb[156].mxu0 }
 0x758   : > { %v6698_v22 = vpop.f32.mrb[157].mxu0 }
 0x759   : > { %v6699_v19 = vadd.f32 %v6698_v22, %v6697_v12  ;;  %v6700_v49 = vpop.f32.mrb[158].mxu0 }
 0x75a   : > { %v6701_v58 = vpop.f32.mrb[159].mxu0 }
 0x75b   : > { %v5866_v34 = vadd.f32 %v6699_v19, %v9021_v41  ;;  %v6702_v36 = vadd.f32 %v6701_v58, %v6700_v49 }
 0x75d   : > { %5893 = vst.msk [vmem:[%s9024_s29 + $0x60] sm:$0xff] %vm5880_vm2, %v5866_v34  ;;  %v5869_v7 = vadd.f32 %v6702_v36, %v9021_v41 }
 0x75f   : > { %5894 = vst.msk [vmem:[%s9024_s29 + $0x68] sm:$0xff] %vm5880_vm2, %v5869_v7  ;;  %v6703_v0 = vpop.f32.mrb[160].mxu0 }
 0x760   : > { %v6704_v59 = vpop.f32.mrb[161].mxu0 }
 0x761   : > { %v6705_v1 = vadd.f32 %v6704_v59, %v6703_v0  ;;  %v6706_v8 = vpop.f32.mrb[162].mxu0 }
 0x762   : > { %v6707_v39 = vpop.f32.mrb[163].mxu0 }
 0x763   : > { %v5874_v44 = vadd.f32 %v6705_v1, %v9021_v41  ;;  %v6708_v5 = vadd.f32 %v6707_v39, %v6706_v8 }
 0x765   : > { %5895 = vst.msk [vmem:[%s9024_s29 + $0x70] sm:$0xff] %vm5880_vm2, %v5874_v44  ;;  %v5877_v62 = vadd.f32 %v6708_v5, %v9021_v41 }
 0x767   : > { %5896 = vst.msk [vmem:[%s9024_s29 + $0x78] sm:$0xff] %vm5880_vm2, %v5877_v62 }
 0x768   : > { %7873 = shalt.err (!%p7870_p5)
}
 0x769   : > { %s7874_s29 = scalar_lea.hbm %s9073_s18, 2048  ;;  %s7878_s28 = scalar_lea.hbm %s9185_s20, 4096 }
 0x76a   : > { %p7875_p2 = scmp.ne.s32.totalorder %s9073_s18, %s7874_s29  ;;  %p7879_p1 = scmp.lt.u32.totalorder %s9073_s18, %s9185_s20 }
 0x76b   : > { %p7880_p11 = scmp.lt.u32.totalorder %s7878_s28, %s7874_s29  ;;  %p7882_p13 = scmp.lt.u32.totalorder %s7874_s29, %s9073_s18 }
 0x76c   : > { %p7876_p7 = pnand %p7875_p2, %p9186_p8 }
 0x76d   : > { %p7881_p12 = por %p7880_p11, %p7879_p1 }
 0x76e   : > { %p7877_p10 = pneg %p7876_p7 }
 0x76f   : > { %p7883_p6 = por %p7882_p13, %p7881_p12 }
 0x771   : > { %p7884_p9 = pnand %p7883_p6, %p7877_p10 }
 0x773   : > { %7887 = shalt.err (!%p7884_p9)
}
 0x774   : > { %s7974_s3 = smov 128   ;;  %s7975_s14 = smov 8  }
 0x775   : > { %6843 = dma.vmem_to_hbm [thread:$0]  (%p9186_p8), %s9075_s19, 2048, %s9073_s18, %s5898_s27, %s7974_s3, %s7974_s3, %s7975_s14  }
 0x776 PF: > { %s5926_s30 = sand.u32 1, %s7938_s21   ;;  %p9187_p4 = scmp.ne.s32.totalorder %s9166_s17, 0 }
 0x777   : > { %p9188_p3 = scmp.ge.s32.totalorder %s7950_s24, 2  ;;  %s5927_s29 = scalar_lea.sflag [#allocation4], %s5926_s30 }
 0x779   : > { %p6884_p0 = pnand %p9188_p3, %p9187_p4 }
 0x77b   : > { %7933 = dma.done.wait (!%p6884_p0), %s5927_s29, 2048  }
 0x77c   : > { %7935 = vsyncadd (!%p6884_p0), %s5927_s29, 4294965248  ;;  %p31_p5 = scmp.ge.s32.totalorder %s8318_s13, 4   ;;  %s9189_s21 = smov %s7942_s22 }
 0x77d   : > { %s9190_s22 = smov %s7946_s23  ;;  %s9191_s23 = smov %s8330_s26 }
 0x77e   : > { %s9192_s24 = smov %s8318_s13  ;;  %33 = sbr.rel (!%p31_p5) target bundleno = 16 (0x10), region = 157 }
 0x785   :  { %5932 = vsyncpa [#allocation3], 1 }
 0x786   :  { %5934 = vsyncpa [#allocation3 + $0x1], 1 }
 0x787   :  { %5935 = vsyncpa [#allocation6], 1 }
 0x788   :  { %5936 = vsyncpa [#allocation9], 1 }
 0x789   :  { %5937 = vsyncpa [#allocation12], 1 }
 0x78a   :  { %5938 = vsyncpa [#allocation15], 1 }
 0x78b   :  { %5939 = vsyncpa [#allocation18], 1 }
 0x78c   :  { %5940 = vsyncpa [#allocation21], 1 }
 0x78d   :  { %5941 = vsyncpa [#allocation4], 1 }
 0x78e   :  { %5943 = vsyncpa [#allocation4 + $0x1], 1 }

</bundles_post_ra>
